<compile_context>
chip_gen: v5e
topology: v5e:2x2
jax: 0.10.0
libtpu: 0.0.40
codegen_flags: <defaults>
</compile_context>

<pallas_src>
import functools

import jax
import jax.numpy as jnp
from jax.experimental import pallas as pl
from jax.experimental.pallas import tpu as pltpu  # noqa: F401  (TPU backend)


# -----------------------------------------------------------------------------
# Pallas kernel (single invocation, everything resident in VMEM)
# -----------------------------------------------------------------------------
def _draft_lstm_kernel(
    x_ref,          # (T*B, 2C) full input, flattened over time
    wih0_ref,       # (2C, 4C) layer-0 input weights
    whh0_ref,       # (C, 4C)  layer-0 recurrent weights
    b0_ref,         # (1, 4C)  layer-0 bias (b_ih + b_hh)
    w1_ref,         # (2C, 4C) layer-1 stacked [W_ih; W_hh]
    b1_ref,         # (1, 4C)
    w2_ref,         # (2C, 4C) layer-2 stacked [W_ih; W_hh]
    b2_ref,         # (1, 4C)
    wlin_ref,       # (C, C)   final linear
    blin_ref,       # (1, C)
    out_ref,        # (T*B, C) log-probs
    *,
    T, B, C,
):
    x = x_ref[...].astype(jnp.float32)                       # (T*B, 2C)

    # ---- hoisted layer-0 input projection: one batched matmul over all steps
    xproj0 = (
        jnp.dot(x, wih0_ref[...], preferred_element_type=jnp.float32)
        + b0_ref[...]
    )                                                         # (T*B, 4C)

    whh0 = whh0_ref[...]
    w1, b1 = w1_ref[...], b1_ref[...]
    w2, b2 = w2_ref[...], b2_ref[...]

    def gate_act(gates):
        # Apply nonlinearities on the full (B, 4C) tile: sigmoid everywhere,
        # tanh on the g-gate lane range [2C, 3C), selected via lane iota.
        lane = jax.lax.broadcasted_iota(jnp.int32, gates.shape, 1)
        sig = jax.nn.sigmoid(gates)
        tnh = jnp.tanh(gates)
        act = jnp.where((lane >= 2 * C) & (lane < 3 * C), tnh, sig)
        i = act[:, 0 * C:1 * C]
        f = act[:, 1 * C:2 * C]
        g = act[:, 2 * C:3 * C]
        o = act[:, 3 * C:4 * C]
        return i, f, g, o

    zeros = jnp.zeros((B, C), jnp.float32)
    h0 = c0 = h1 = c1 = h2 = c2 = zeros
    h2_steps = []

    # T is small and static -> fully unrolled straight-line recurrence.
    # TODO(synk): nn.LSTM applies dropout(p=0.5) between layers only in
    # training mode; this kernel implements the inference/eval forward path.
    for t in range(T):
        # ---- layer 0: input projection precomputed; only recurrent matmul here
        g0 = xproj0[t * B:(t + 1) * B, :] + jnp.dot(
            h0, whh0, preferred_element_type=jnp.float32
        )
        i, f, g, o = gate_act(g0)
        c0 = f * c0 + i * g
        h0 = o * jnp.tanh(c0)

        # ---- layer 1: fused [x; h] @ [W_ih; W_hh] -> one matmul per cell
        g1 = (
            jnp.dot(
                jnp.concatenate([h0, h1], axis=-1),
                w1,
                preferred_element_type=jnp.float32,
            )
            + b1
        )
        i, f, g, o = gate_act(g1)
        c1 = f * c1 + i * g
        h1 = o * jnp.tanh(c1)

        # ---- layer 2
        g2 = (
            jnp.dot(
                jnp.concatenate([h1, h2], axis=-1),
                w2,
                preferred_element_type=jnp.float32,
            )
            + b2
        )
        i, f, g, o = gate_act(g2)
        c2 = f * c2 + i * g
        h2 = o * jnp.tanh(c2)

        h2_steps.append(h2)

    # ---- batched final linear + in-pack mask + log_softmax, single writeback
    H2 = jnp.concatenate(h2_steps, axis=0)                    # (T*B, C)
    logits = (
        jnp.dot(H2, wlin_ref[...], preferred_element_type=jnp.float32)
        + blin_ref[...]
    )
    pack = x[:, :C]                                           # in-pack mask
    logits = logits * pack

    m = jnp.max(logits, axis=-1, keepdims=True)
    shifted = logits - m
    lse = jnp.log(jnp.sum(jnp.exp(shifted), axis=-1, keepdims=True))
    out_ref[...] = (shifted - lse).astype(out_ref.dtype)


# -----------------------------------------------------------------------------
# Wrapper
# -----------------------------------------------------------------------------
def draft_pick_lstm_forward(draft_sequence, params):
    """draft_sequence: (T, B, 2C) float32.  Returns (T, B, C) log-probs."""
    T, B, twoC = draft_sequence.shape
    C = twoC // 2

    x_flat = draft_sequence.reshape(T * B, twoC)

    # Pre-stack layer-1/2 input + recurrent weights -> one matmul per cell.
    w1 = jnp.concatenate([params["wih1"], params["whh1"]], axis=0)  # (2C, 4C)
    w2 = jnp.concatenate([params["wih2"], params["whh2"]], axis=0)  # (2C, 4C)

    kernel = functools.partial(_draft_lstm_kernel, T=T, B=B, C=C)

    # No grid: single kernel invocation; all operands fully resident in VMEM
    # (working set ~0.1 MiB, far below VMEM on v5e/v6e/v7x).
    out_flat = pl.pallas_call(
        kernel,
        out_shape=jax.ShapeDtypeStruct((T * B, C), jnp.float32),
    )(
        x_flat,
        params["wih0"], params["whh0"], params["b0"],
        w1, params["b1"],
        w2, params["b2"],
        params["wlin"], params["blin"],
    )
    return out_flat.reshape(T, B, C)


# -----------------------------------------------------------------------------
# Deterministic parameter init (PyTorch-style uniform(-1/sqrt(H), 1/sqrt(H)))
# -----------------------------------------------------------------------------
def init_params(key, card_pool_size):
    C = card_pool_size
    k = 1.0 / jnp.sqrt(jnp.float32(C))
    keys = jax.random.split(key, 16)
    u = lambda kk, shape: jax.random.uniform(kk, shape, jnp.float32, -k, k)

    params = {}
    # layer 0: input 2C, layers 1/2: input C. Weights stored as (in_dim, 4C)
    # (transposed relative to PyTorch's (4C, in_dim)) so the kernel does x @ W.
    params["wih0"] = u(keys[0], (2 * C, 4 * C))
    params["whh0"] = u(keys[1], (C, 4 * C))
    params["b0"] = u(keys[2], (1, 4 * C)) + u(keys[3], (1, 4 * C))   # b_ih + b_hh
    params["wih1"] = u(keys[4], (C, 4 * C))
    params["whh1"] = u(keys[5], (C, 4 * C))
    params["b1"] = u(keys[6], (1, 4 * C)) + u(keys[7], (1, 4 * C))
    params["wih2"] = u(keys[8], (C, 4 * C))
    params["whh2"] = u(keys[9], (C, 4 * C))
    params["b2"] = u(keys[10], (1, 4 * C)) + u(keys[11], (1, 4 * C))
    params["wlin"] = u(keys[12], (C, C))
    params["blin"] = u(keys[13], (1, C))
    return params


# -----------------------------------------------------------------------------
# Pure-JAX reference (for correctness check)
# -----------------------------------------------------------------------------
def reference_forward(draft_sequence, params):
    T, B, twoC = draft_sequence.shape
    C = twoC // 2

    def cell(inp, w_ih, w_hh, b, h, c):
        gates = inp @ w_ih + h @ w_hh + b
        i = jax.nn.sigmoid(gates[:, 0 * C:1 * C])
        f = jax.nn.sigmoid(gates[:, 1 * C:2 * C])
        g = jnp.tanh(gates[:, 2 * C:3 * C])
        o = jax.nn.sigmoid(gates[:, 3 * C:4 * C])
        c_new = f * c + i * g
        h_new = o * jnp.tanh(c_new)
        return h_new, c_new

    def step(carry, xt):
        h0, c0, h1, c1, h2, c2 = carry
        h0, c0 = cell(xt, params["wih0"], params["whh0"], params["b0"], h0, c0)
        h1, c1 = cell(h0, params["wih1"], params["whh1"], params["b1"], h1, c1)
        h2, c2 = cell(h1, params["wih2"], params["whh2"], params["b2"], h2, c2)
        out = h2 @ params["wlin"] + params["blin"]
        return (h0, c0, h1, c1, h2, c2), out

    zeros = jnp.zeros((B, C), jnp.float32)
    carry0 = (zeros,) * 6
    _, lstm_out = jax.lax.scan(step, carry0, draft_sequence)  # (T, B, C)

    pack = draft_sequence[:, :, :C]
    logits = lstm_out * pack
    return jax.nn.log_softmax(logits, axis=2)


# -----------------------------------------------------------------------------
# Main
# -----------------------------------------------------------------------------
if __name__ == "__main__":
    card_pool_size = 32   # C: hidden size == output size == card pool size
    T, B = 8, 2           # sequence length, batch

    key = jax.random.PRNGKey(0)
    k_param, k_x = jax.random.split(key)

    params = init_params(k_param, card_pool_size)

    # Synthetic draft sequence: first C columns act as the "pack" mask
    # (binary availability), last C columns as the "picked so far" signal.
    k_pack, k_pick = jax.random.split(k_x)
    pack = (jax.random.uniform(k_pack, (T, B, card_pool_size)) > 0.5).astype(jnp.float32)
    picks = jax.random.uniform(k_pick, (T, B, card_pool_size), jnp.float32)
    draft_sequence = jnp.concatenate([pack, picks], axis=-1)  # (T, B, 2C)

    out = draft_pick_lstm_forward(draft_sequence, params)
    out = jax.block_until_ready(out)

    ref = jax.block_until_ready(reference_forward(draft_sequence, params))
    assert out.shape == (T, B, card_pool_size)
    assert jnp.allclose(out, ref, atol=1e-4, rtol=1e-4), (
        f"max abs err = {jnp.max(jnp.abs(out - ref))}"
    )

    print("KERNEL_OK")
</pallas_src>

<mosaic_0001>
module attributes {stable_mosaic.version = 11 : i64} {
  func.func @_draft_lstm_kernel(%arg0: memref<16x64xf32, #tpu.memory_space<vmem>>, %arg1: memref<64x128xf32, #tpu.memory_space<vmem>>, %arg2: memref<32x128xf32, #tpu.memory_space<vmem>>, %arg3: memref<1x128xf32, #tpu.memory_space<vmem>>, %arg4: memref<64x128xf32, #tpu.memory_space<vmem>>, %arg5: memref<1x128xf32, #tpu.memory_space<vmem>>, %arg6: memref<64x128xf32, #tpu.memory_space<vmem>>, %arg7: memref<1x128xf32, #tpu.memory_space<vmem>>, %arg8: memref<32x32xf32, #tpu.memory_space<vmem>>, %arg9: memref<1x32xf32, #tpu.memory_space<vmem>>, %arg10: memref<16x32xf32, #tpu.memory_space<vmem>>) attributes {dimension_semantics = [], scalar_prefetch = 0 : i64, scratch_operands = 0 : i64, tpu.core_type = #tpu.core_type<tc>} {
    %c0 = arith.constant 0 : index
    %c0_0 = arith.constant 0 : index
    %0 = vector.load %arg0[%c0, %c0_0] : memref<16x64xf32, #tpu.memory_space<vmem>>, vector<16x64xf32>
    %c0_1 = arith.constant 0 : index
    %c0_2 = arith.constant 0 : index
    %1 = vector.load %arg1[%c0_1, %c0_2] : memref<64x128xf32, #tpu.memory_space<vmem>>, vector<64x128xf32>
    %cst = arith.constant dense<0.000000e+00> : vector<16x128xf32>
    %2 = tpu.matmul %0, %1, %cst {dimension_numbers = #tpu.dot_dimension_numbers<[1], [0], [0], [1], [0, 0, 1, 1], [], []>} : vector<16x64xf32>, vector<64x128xf32>, vector<16x128xf32> -> vector<16x128xf32>
    %c0_3 = arith.constant 0 : index
    %c0_4 = arith.constant 0 : index
    %3 = vector.load %arg3[%c0_3, %c0_4] : memref<1x128xf32, #tpu.memory_space<vmem>>, vector<1x128xf32>
    %4 = vector.broadcast %3 : vector<1x128xf32> to vector<16x128xf32>
    %5 = arith.addf %2, %4 : vector<16x128xf32>
    %c0_5 = arith.constant 0 : index
    %c0_6 = arith.constant 0 : index
    %6 = vector.load %arg2[%c0_5, %c0_6] : memref<32x128xf32, #tpu.memory_space<vmem>>, vector<32x128xf32>
    %c0_7 = arith.constant 0 : index
    %c0_8 = arith.constant 0 : index
    %7 = vector.load %arg4[%c0_7, %c0_8] : memref<64x128xf32, #tpu.memory_space<vmem>>, vector<64x128xf32>
    %c0_9 = arith.constant 0 : index
    %c0_10 = arith.constant 0 : index
    %8 = vector.load %arg5[%c0_9, %c0_10] : memref<1x128xf32, #tpu.memory_space<vmem>>, vector<1x128xf32>
    %c0_11 = arith.constant 0 : index
    %c0_12 = arith.constant 0 : index
    %9 = vector.load %arg6[%c0_11, %c0_12] : memref<64x128xf32, #tpu.memory_space<vmem>>, vector<64x128xf32>
    %c0_13 = arith.constant 0 : index
    %c0_14 = arith.constant 0 : index
    %10 = vector.load %arg7[%c0_13, %c0_14] : memref<1x128xf32, #tpu.memory_space<vmem>>, vector<1x128xf32>
    %cst_15 = arith.constant 0.000000e+00 : f32
    %11 = vector.broadcast %cst_15 : f32 to vector<2x32xf32>
    %12 = vector.extract_strided_slice %5 {offsets = [0, 0], sizes = [2, 128], strides = [1, 1]} : vector<16x128xf32> to vector<2x128xf32>
    %cst_16 = arith.constant dense<0.000000e+00> : vector<2x128xf32>
    %13 = tpu.matmul %11, %6, %cst_16 {dimension_numbers = #tpu.dot_dimension_numbers<[1], [0], [0], [1], [0, 0, 1, 1], [], []>} : vector<2x32xf32>, vector<32x128xf32>, vector<2x128xf32> -> vector<2x128xf32>
    %14 = arith.addf %12, %13 : vector<2x128xf32>
    %15 = tpu.iota {dimensions = array<i32: 1>} : vector<2x128xi32>
    %16 = arith.negf %14 : vector<2x128xf32>
    %17 = math.exp %16 : vector<2x128xf32>
    %cst_17 = arith.constant 1.000000e+00 : f32
    %18 = vector.broadcast %cst_17 : f32 to vector<2x128xf32>
    %19 = arith.addf %18, %17 : vector<2x128xf32>
    %20 = arith.divf %18, %19 : vector<2x128xf32>
    %21 = math.tanh %14 : vector<2x128xf32>
    %c64_i32 = arith.constant 64 : i32
    %22 = vector.broadcast %c64_i32 : i32 to vector<2x128xi32>
    %23 = arith.cmpi sge, %15, %22 : vector<2x128xi32>
    %c96_i32 = arith.constant 96 : i32
    %24 = vector.broadcast %c96_i32 : i32 to vector<2x128xi32>
    %25 = arith.cmpi slt, %15, %24 : vector<2x128xi32>
    %26 = arith.andi %23, %25 : vector<2x128xi1>
    %27 = arith.select %26, %21, %20 : vector<2x128xi1>, vector<2x128xf32>
    %28 = vector.extract_strided_slice %27 {offsets = [0, 0], sizes = [2, 32], strides = [1, 1]} : vector<2x128xf32> to vector<2x32xf32>
    %29 = vector.extract_strided_slice %27 {offsets = [0, 32], sizes = [2, 32], strides = [1, 1]} : vector<2x128xf32> to vector<2x32xf32>
    %30 = vector.extract_strided_slice %27 {offsets = [0, 64], sizes = [2, 32], strides = [1, 1]} : vector<2x128xf32> to vector<2x32xf32>
    %31 = vector.extract_strided_slice %27 {offsets = [0, 96], sizes = [2, 32], strides = [1, 1]} : vector<2x128xf32> to vector<2x32xf32>
    %32 = arith.mulf %29, %11 : vector<2x32xf32>
    %33 = arith.mulf %28, %30 : vector<2x32xf32>
    %34 = arith.addf %32, %33 : vector<2x32xf32>
    %35 = math.tanh %34 : vector<2x32xf32>
    %36 = arith.mulf %31, %35 : vector<2x32xf32>
    %37 = tpu.concatenate %36, %11 in 1 : vector<2x32xf32>, vector<2x32xf32> -> vector<2x64xf32>
    %cst_18 = arith.constant dense<0.000000e+00> : vector<2x128xf32>
    %38 = tpu.matmul %37, %7, %cst_18 {dimension_numbers = #tpu.dot_dimension_numbers<[1], [0], [0], [1], [0, 0, 1, 1], [], []>} : vector<2x64xf32>, vector<64x128xf32>, vector<2x128xf32> -> vector<2x128xf32>
    %39 = vector.broadcast %8 : vector<1x128xf32> to vector<2x128xf32>
    %40 = arith.addf %38, %39 : vector<2x128xf32>
    %41 = tpu.iota {dimensions = array<i32: 1>} : vector<2x128xi32>
    %42 = arith.negf %40 : vector<2x128xf32>
    %43 = math.exp %42 : vector<2x128xf32>
    %cst_19 = arith.constant 1.000000e+00 : f32
    %44 = vector.broadcast %cst_19 : f32 to vector<2x128xf32>
    %45 = arith.addf %44, %43 : vector<2x128xf32>
    %46 = arith.divf %44, %45 : vector<2x128xf32>
    %47 = math.tanh %40 : vector<2x128xf32>
    %c64_i32_20 = arith.constant 64 : i32
    %48 = vector.broadcast %c64_i32_20 : i32 to vector<2x128xi32>
    %49 = arith.cmpi sge, %41, %48 : vector<2x128xi32>
    %c96_i32_21 = arith.constant 96 : i32
    %50 = vector.broadcast %c96_i32_21 : i32 to vector<2x128xi32>
    %51 = arith.cmpi slt, %41, %50 : vector<2x128xi32>
    %52 = arith.andi %49, %51 : vector<2x128xi1>
    %53 = arith.select %52, %47, %46 : vector<2x128xi1>, vector<2x128xf32>
    %54 = vector.extract_strided_slice %53 {offsets = [0, 0], sizes = [2, 32], strides = [1, 1]} : vector<2x128xf32> to vector<2x32xf32>
    %55 = vector.extract_strided_slice %53 {offsets = [0, 32], sizes = [2, 32], strides = [1, 1]} : vector<2x128xf32> to vector<2x32xf32>
    %56 = vector.extract_strided_slice %53 {offsets = [0, 64], sizes = [2, 32], strides = [1, 1]} : vector<2x128xf32> to vector<2x32xf32>
    %57 = vector.extract_strided_slice %53 {offsets = [0, 96], sizes = [2, 32], strides = [1, 1]} : vector<2x128xf32> to vector<2x32xf32>
    %58 = arith.mulf %55, %11 : vector<2x32xf32>
    %59 = arith.mulf %54, %56 : vector<2x32xf32>
    %60 = arith.addf %58, %59 : vector<2x32xf32>
    %61 = math.tanh %60 : vector<2x32xf32>
    %62 = arith.mulf %57, %61 : vector<2x32xf32>
    %63 = tpu.concatenate %62, %11 in 1 : vector<2x32xf32>, vector<2x32xf32> -> vector<2x64xf32>
    %cst_22 = arith.constant dense<0.000000e+00> : vector<2x128xf32>
    %64 = tpu.matmul %63, %9, %cst_22 {dimension_numbers = #tpu.dot_dimension_numbers<[1], [0], [0], [1], [0, 0, 1, 1], [], []>} : vector<2x64xf32>, vector<64x128xf32>, vector<2x128xf32> -> vector<2x128xf32>
    %65 = vector.broadcast %10 : vector<1x128xf32> to vector<2x128xf32>
    %66 = arith.addf %64, %65 : vector<2x128xf32>
    %67 = tpu.iota {dimensions = array<i32: 1>} : vector<2x128xi32>
    %68 = arith.negf %66 : vector<2x128xf32>
    %69 = math.exp %68 : vector<2x128xf32>
    %cst_23 = arith.constant 1.000000e+00 : f32
    %70 = vector.broadcast %cst_23 : f32 to vector<2x128xf32>
    %71 = arith.addf %70, %69 : vector<2x128xf32>
    %72 = arith.divf %70, %71 : vector<2x128xf32>
    %73 = math.tanh %66 : vector<2x128xf32>
    %c64_i32_24 = arith.constant 64 : i32
    %74 = vector.broadcast %c64_i32_24 : i32 to vector<2x128xi32>
    %75 = arith.cmpi sge, %67, %74 : vector<2x128xi32>
    %c96_i32_25 = arith.constant 96 : i32
    %76 = vector.broadcast %c96_i32_25 : i32 to vector<2x128xi32>
    %77 = arith.cmpi slt, %67, %76 : vector<2x128xi32>
    %78 = arith.andi %75, %77 : vector<2x128xi1>
    %79 = arith.select %78, %73, %72 : vector<2x128xi1>, vector<2x128xf32>
    %80 = vector.extract_strided_slice %79 {offsets = [0, 0], sizes = [2, 32], strides = [1, 1]} : vector<2x128xf32> to vector<2x32xf32>
    %81 = vector.extract_strided_slice %79 {offsets = [0, 32], sizes = [2, 32], strides = [1, 1]} : vector<2x128xf32> to vector<2x32xf32>
    %82 = vector.extract_strided_slice %79 {offsets = [0, 64], sizes = [2, 32], strides = [1, 1]} : vector<2x128xf32> to vector<2x32xf32>
    %83 = vector.extract_strided_slice %79 {offsets = [0, 96], sizes = [2, 32], strides = [1, 1]} : vector<2x128xf32> to vector<2x32xf32>
    %84 = arith.mulf %81, %11 : vector<2x32xf32>
    %85 = arith.mulf %80, %82 : vector<2x32xf32>
    %86 = arith.addf %84, %85 : vector<2x32xf32>
    %87 = math.tanh %86 : vector<2x32xf32>
    %88 = arith.mulf %83, %87 : vector<2x32xf32>
    %89 = vector.extract_strided_slice %5 {offsets = [2, 0], sizes = [2, 128], strides = [1, 1]} : vector<16x128xf32> to vector<2x128xf32>
    %cst_26 = arith.constant dense<0.000000e+00> : vector<2x128xf32>
    %90 = tpu.matmul %36, %6, %cst_26 {dimension_numbers = #tpu.dot_dimension_numbers<[1], [0], [0], [1], [0, 0, 1, 1], [], []>} : vector<2x32xf32>, vector<32x128xf32>, vector<2x128xf32> -> vector<2x128xf32>
    %91 = arith.addf %89, %90 : vector<2x128xf32>
    %92 = tpu.iota {dimensions = array<i32: 1>} : vector<2x128xi32>
    %93 = arith.negf %91 : vector<2x128xf32>
    %94 = math.exp %93 : vector<2x128xf32>
    %cst_27 = arith.constant 1.000000e+00 : f32
    %95 = vector.broadcast %cst_27 : f32 to vector<2x128xf32>
    %96 = arith.addf %95, %94 : vector<2x128xf32>
    %97 = arith.divf %95, %96 : vector<2x128xf32>
    %98 = math.tanh %91 : vector<2x128xf32>
    %c64_i32_28 = arith.constant 64 : i32
    %99 = vector.broadcast %c64_i32_28 : i32 to vector<2x128xi32>
    %100 = arith.cmpi sge, %92, %99 : vector<2x128xi32>
    %c96_i32_29 = arith.constant 96 : i32
    %101 = vector.broadcast %c96_i32_29 : i32 to vector<2x128xi32>
    %102 = arith.cmpi slt, %92, %101 : vector<2x128xi32>
    %103 = arith.andi %100, %102 : vector<2x128xi1>
    %104 = arith.select %103, %98, %97 : vector<2x128xi1>, vector<2x128xf32>
    %105 = vector.extract_strided_slice %104 {offsets = [0, 0], sizes = [2, 32], strides = [1, 1]} : vector<2x128xf32> to vector<2x32xf32>
    %106 = vector.extract_strided_slice %104 {offsets = [0, 32], sizes = [2, 32], strides = [1, 1]} : vector<2x128xf32> to vector<2x32xf32>
    %107 = vector.extract_strided_slice %104 {offsets = [0, 64], sizes = [2, 32], strides = [1, 1]} : vector<2x128xf32> to vector<2x32xf32>
    %108 = vector.extract_strided_slice %104 {offsets = [0, 96], sizes = [2, 32], strides = [1, 1]} : vector<2x128xf32> to vector<2x32xf32>
    %109 = arith.mulf %106, %34 : vector<2x32xf32>
    %110 = arith.mulf %105, %107 : vector<2x32xf32>
    %111 = arith.addf %109, %110 : vector<2x32xf32>
    %112 = math.tanh %111 : vector<2x32xf32>
    %113 = arith.mulf %108, %112 : vector<2x32xf32>
    %114 = tpu.concatenate %113, %62 in 1 : vector<2x32xf32>, vector<2x32xf32> -> vector<2x64xf32>
    %cst_30 = arith.constant dense<0.000000e+00> : vector<2x128xf32>
    %115 = tpu.matmul %114, %7, %cst_30 {dimension_numbers = #tpu.dot_dimension_numbers<[1], [0], [0], [1], [0, 0, 1, 1], [], []>} : vector<2x64xf32>, vector<64x128xf32>, vector<2x128xf32> -> vector<2x128xf32>
    %116 = vector.broadcast %8 : vector<1x128xf32> to vector<2x128xf32>
    %117 = arith.addf %115, %116 : vector<2x128xf32>
    %118 = tpu.iota {dimensions = array<i32: 1>} : vector<2x128xi32>
    %119 = arith.negf %117 : vector<2x128xf32>
    %120 = math.exp %119 : vector<2x128xf32>
    %cst_31 = arith.constant 1.000000e+00 : f32
    %121 = vector.broadcast %cst_31 : f32 to vector<2x128xf32>
    %122 = arith.addf %121, %120 : vector<2x128xf32>
    %123 = arith.divf %121, %122 : vector<2x128xf32>
    %124 = math.tanh %117 : vector<2x128xf32>
    %c64_i32_32 = arith.constant 64 : i32
    %125 = vector.broadcast %c64_i32_32 : i32 to vector<2x128xi32>
    %126 = arith.cmpi sge, %118, %125 : vector<2x128xi32>
    %c96_i32_33 = arith.constant 96 : i32
    %127 = vector.broadcast %c96_i32_33 : i32 to vector<2x128xi32>
    %128 = arith.cmpi slt, %118, %127 : vector<2x128xi32>
    %129 = arith.andi %126, %128 : vector<2x128xi1>
    %130 = arith.select %129, %124, %123 : vector<2x128xi1>, vector<2x128xf32>
    %131 = vector.extract_strided_slice %130 {offsets = [0, 0], sizes = [2, 32], strides = [1, 1]} : vector<2x128xf32> to vector<2x32xf32>
    %132 = vector.extract_strided_slice %130 {offsets = [0, 32], sizes = [2, 32], strides = [1, 1]} : vector<2x128xf32> to vector<2x32xf32>
    %133 = vector.extract_strided_slice %130 {offsets = [0, 64], sizes = [2, 32], strides = [1, 1]} : vector<2x128xf32> to vector<2x32xf32>
    %134 = vector.extract_strided_slice %130 {offsets = [0, 96], sizes = [2, 32], strides = [1, 1]} : vector<2x128xf32> to vector<2x32xf32>
    %135 = arith.mulf %132, %60 : vector<2x32xf32>
    %136 = arith.mulf %131, %133 : vector<2x32xf32>
    %137 = arith.addf %135, %136 : vector<2x32xf32>
    %138 = math.tanh %137 : vector<2x32xf32>
    %139 = arith.mulf %134, %138 : vector<2x32xf32>
    %140 = tpu.concatenate %139, %88 in 1 : vector<2x32xf32>, vector<2x32xf32> -> vector<2x64xf32>
    %cst_34 = arith.constant dense<0.000000e+00> : vector<2x128xf32>
    %141 = tpu.matmul %140, %9, %cst_34 {dimension_numbers = #tpu.dot_dimension_numbers<[1], [0], [0], [1], [0, 0, 1, 1], [], []>} : vector<2x64xf32>, vector<64x128xf32>, vector<2x128xf32> -> vector<2x128xf32>
    %142 = vector.broadcast %10 : vector<1x128xf32> to vector<2x128xf32>
    %143 = arith.addf %141, %142 : vector<2x128xf32>
    %144 = tpu.iota {dimensions = array<i32: 1>} : vector<2x128xi32>
    %145 = arith.negf %143 : vector<2x128xf32>
    %146 = math.exp %145 : vector<2x128xf32>
    %cst_35 = arith.constant 1.000000e+00 : f32
    %147 = vector.broadcast %cst_35 : f32 to vector<2x128xf32>
    %148 = arith.addf %147, %146 : vector<2x128xf32>
    %149 = arith.divf %147, %148 : vector<2x128xf32>
    %150 = math.tanh %143 : vector<2x128xf32>
    %c64_i32_36 = arith.constant 64 : i32
    %151 = vector.broadcast %c64_i32_36 : i32 to vector<2x128xi32>
    %152 = arith.cmpi sge, %144, %151 : vector<2x128xi32>
    %c96_i32_37 = arith.constant 96 : i32
    %153 = vector.broadcast %c96_i32_37 : i32 to vector<2x128xi32>
    %154 = arith.cmpi slt, %144, %153 : vector<2x128xi32>
    %155 = arith.andi %152, %154 : vector<2x128xi1>
    %156 = arith.select %155, %150, %149 : vector<2x128xi1>, vector<2x128xf32>
    %157 = vector.extract_strided_slice %156 {offsets = [0, 0], sizes = [2, 32], strides = [1, 1]} : vector<2x128xf32> to vector<2x32xf32>
    %158 = vector.extract_strided_slice %156 {offsets = [0, 32], sizes = [2, 32], strides = [1, 1]} : vector<2x128xf32> to vector<2x32xf32>
    %159 = vector.extract_strided_slice %156 {offsets = [0, 64], sizes = [2, 32], strides = [1, 1]} : vector<2x128xf32> to vector<2x32xf32>
    %160 = vector.extract_strided_slice %156 {offsets = [0, 96], sizes = [2, 32], strides = [1, 1]} : vector<2x128xf32> to vector<2x32xf32>
    %161 = arith.mulf %158, %86 : vector<2x32xf32>
    %162 = arith.mulf %157, %159 : vector<2x32xf32>
    %163 = arith.addf %161, %162 : vector<2x32xf32>
    %164 = math.tanh %163 : vector<2x32xf32>
    %165 = arith.mulf %160, %164 : vector<2x32xf32>
    %166 = vector.extract_strided_slice %5 {offsets = [4, 0], sizes = [2, 128], strides = [1, 1]} : vector<16x128xf32> to vector<2x128xf32>
    %cst_38 = arith.constant dense<0.000000e+00> : vector<2x128xf32>
    %167 = tpu.matmul %113, %6, %cst_38 {dimension_numbers = #tpu.dot_dimension_numbers<[1], [0], [0], [1], [0, 0, 1, 1], [], []>} : vector<2x32xf32>, vector<32x128xf32>, vector<2x128xf32> -> vector<2x128xf32>
    %168 = arith.addf %166, %167 : vector<2x128xf32>
    %169 = tpu.iota {dimensions = array<i32: 1>} : vector<2x128xi32>
    %170 = arith.negf %168 : vector<2x128xf32>
    %171 = math.exp %170 : vector<2x128xf32>
    %cst_39 = arith.constant 1.000000e+00 : f32
    %172 = vector.broadcast %cst_39 : f32 to vector<2x128xf32>
    %173 = arith.addf %172, %171 : vector<2x128xf32>
    %174 = arith.divf %172, %173 : vector<2x128xf32>
    %175 = math.tanh %168 : vector<2x128xf32>
    %c64_i32_40 = arith.constant 64 : i32
    %176 = vector.broadcast %c64_i32_40 : i32 to vector<2x128xi32>
    %177 = arith.cmpi sge, %169, %176 : vector<2x128xi32>
    %c96_i32_41 = arith.constant 96 : i32
    %178 = vector.broadcast %c96_i32_41 : i32 to vector<2x128xi32>
    %179 = arith.cmpi slt, %169, %178 : vector<2x128xi32>
    %180 = arith.andi %177, %179 : vector<2x128xi1>
    %181 = arith.select %180, %175, %174 : vector<2x128xi1>, vector<2x128xf32>
    %182 = vector.extract_strided_slice %181 {offsets = [0, 0], sizes = [2, 32], strides = [1, 1]} : vector<2x128xf32> to vector<2x32xf32>
    %183 = vector.extract_strided_slice %181 {offsets = [0, 32], sizes = [2, 32], strides = [1, 1]} : vector<2x128xf32> to vector<2x32xf32>
    %184 = vector.extract_strided_slice %181 {offsets = [0, 64], sizes = [2, 32], strides = [1, 1]} : vector<2x128xf32> to vector<2x32xf32>
    %185 = vector.extract_strided_slice %181 {offsets = [0, 96], sizes = [2, 32], strides = [1, 1]} : vector<2x128xf32> to vector<2x32xf32>
    %186 = arith.mulf %183, %111 : vector<2x32xf32>
    %187 = arith.mulf %182, %184 : vector<2x32xf32>
    %188 = arith.addf %186, %187 : vector<2x32xf32>
    %189 = math.tanh %188 : vector<2x32xf32>
    %190 = arith.mulf %185, %189 : vector<2x32xf32>
    %191 = tpu.concatenate %190, %139 in 1 : vector<2x32xf32>, vector<2x32xf32> -> vector<2x64xf32>
    %cst_42 = arith.constant dense<0.000000e+00> : vector<2x128xf32>
    %192 = tpu.matmul %191, %7, %cst_42 {dimension_numbers = #tpu.dot_dimension_numbers<[1], [0], [0], [1], [0, 0, 1, 1], [], []>} : vector<2x64xf32>, vector<64x128xf32>, vector<2x128xf32> -> vector<2x128xf32>
    %193 = vector.broadcast %8 : vector<1x128xf32> to vector<2x128xf32>
    %194 = arith.addf %192, %193 : vector<2x128xf32>
    %195 = tpu.iota {dimensions = array<i32: 1>} : vector<2x128xi32>
    %196 = arith.negf %194 : vector<2x128xf32>
    %197 = math.exp %196 : vector<2x128xf32>
    %cst_43 = arith.constant 1.000000e+00 : f32
    %198 = vector.broadcast %cst_43 : f32 to vector<2x128xf32>
    %199 = arith.addf %198, %197 : vector<2x128xf32>
    %200 = arith.divf %198, %199 : vector<2x128xf32>
    %201 = math.tanh %194 : vector<2x128xf32>
    %c64_i32_44 = arith.constant 64 : i32
    %202 = vector.broadcast %c64_i32_44 : i32 to vector<2x128xi32>
    %203 = arith.cmpi sge, %195, %202 : vector<2x128xi32>
    %c96_i32_45 = arith.constant 96 : i32
    %204 = vector.broadcast %c96_i32_45 : i32 to vector<2x128xi32>
    %205 = arith.cmpi slt, %195, %204 : vector<2x128xi32>
    %206 = arith.andi %203, %205 : vector<2x128xi1>
    %207 = arith.select %206, %201, %200 : vector<2x128xi1>, vector<2x128xf32>
    %208 = vector.extract_strided_slice %207 {offsets = [0, 0], sizes = [2, 32], strides = [1, 1]} : vector<2x128xf32> to vector<2x32xf32>
    %209 = vector.extract_strided_slice %207 {offsets = [0, 32], sizes = [2, 32], strides = [1, 1]} : vector<2x128xf32> to vector<2x32xf32>
    %210 = vector.extract_strided_slice %207 {offsets = [0, 64], sizes = [2, 32], strides = [1, 1]} : vector<2x128xf32> to vector<2x32xf32>
    %211 = vector.extract_strided_slice %207 {offsets = [0, 96], sizes = [2, 32], strides = [1, 1]} : vector<2x128xf32> to vector<2x32xf32>
    %212 = arith.mulf %209, %137 : vector<2x32xf32>
    %213 = arith.mulf %208, %210 : vector<2x32xf32>
    %214 = arith.addf %212, %213 : vector<2x32xf32>
    %215 = math.tanh %214 : vector<2x32xf32>
    %216 = arith.mulf %211, %215 : vector<2x32xf32>
    %217 = tpu.concatenate %216, %165 in 1 : vector<2x32xf32>, vector<2x32xf32> -> vector<2x64xf32>
    %cst_46 = arith.constant dense<0.000000e+00> : vector<2x128xf32>
    %218 = tpu.matmul %217, %9, %cst_46 {dimension_numbers = #tpu.dot_dimension_numbers<[1], [0], [0], [1], [0, 0, 1, 1], [], []>} : vector<2x64xf32>, vector<64x128xf32>, vector<2x128xf32> -> vector<2x128xf32>
    %219 = vector.broadcast %10 : vector<1x128xf32> to vector<2x128xf32>
    %220 = arith.addf %218, %219 : vector<2x128xf32>
    %221 = tpu.iota {dimensions = array<i32: 1>} : vector<2x128xi32>
    %222 = arith.negf %220 : vector<2x128xf32>
    %223 = math.exp %222 : vector<2x128xf32>
    %cst_47 = arith.constant 1.000000e+00 : f32
    %224 = vector.broadcast %cst_47 : f32 to vector<2x128xf32>
    %225 = arith.addf %224, %223 : vector<2x128xf32>
    %226 = arith.divf %224, %225 : vector<2x128xf32>
    %227 = math.tanh %220 : vector<2x128xf32>
    %c64_i32_48 = arith.constant 64 : i32
    %228 = vector.broadcast %c64_i32_48 : i32 to vector<2x128xi32>
    %229 = arith.cmpi sge, %221, %228 : vector<2x128xi32>
    %c96_i32_49 = arith.constant 96 : i32
    %230 = vector.broadcast %c96_i32_49 : i32 to vector<2x128xi32>
    %231 = arith.cmpi slt, %221, %230 : vector<2x128xi32>
    %232 = arith.andi %229, %231 : vector<2x128xi1>
    %233 = arith.select %232, %227, %226 : vector<2x128xi1>, vector<2x128xf32>
    %234 = vector.extract_strided_slice %233 {offsets = [0, 0], sizes = [2, 32], strides = [1, 1]} : vector<2x128xf32> to vector<2x32xf32>
    %235 = vector.extract_strided_slice %233 {offsets = [0, 32], sizes = [2, 32], strides = [1, 1]} : vector<2x128xf32> to vector<2x32xf32>
    %236 = vector.extract_strided_slice %233 {offsets = [0, 64], sizes = [2, 32], strides = [1, 1]} : vector<2x128xf32> to vector<2x32xf32>
    %237 = vector.extract_strided_slice %233 {offsets = [0, 96], sizes = [2, 32], strides = [1, 1]} : vector<2x128xf32> to vector<2x32xf32>
    %238 = arith.mulf %235, %163 : vector<2x32xf32>
    %239 = arith.mulf %234, %236 : vector<2x32xf32>
    %240 = arith.addf %238, %239 : vector<2x32xf32>
    %241 = math.tanh %240 : vector<2x32xf32>
    %242 = arith.mulf %237, %241 : vector<2x32xf32>
    %243 = vector.extract_strided_slice %5 {offsets = [6, 0], sizes = [2, 128], strides = [1, 1]} : vector<16x128xf32> to vector<2x128xf32>
    %cst_50 = arith.constant dense<0.000000e+00> : vector<2x128xf32>
    %244 = tpu.matmul %190, %6, %cst_50 {dimension_numbers = #tpu.dot_dimension_numbers<[1], [0], [0], [1], [0, 0, 1, 1], [], []>} : vector<2x32xf32>, vector<32x128xf32>, vector<2x128xf32> -> vector<2x128xf32>
    %245 = arith.addf %243, %244 : vector<2x128xf32>
    %246 = tpu.iota {dimensions = array<i32: 1>} : vector<2x128xi32>
    %247 = arith.negf %245 : vector<2x128xf32>
    %248 = math.exp %247 : vector<2x128xf32>
    %cst_51 = arith.constant 1.000000e+00 : f32
    %249 = vector.broadcast %cst_51 : f32 to vector<2x128xf32>
    %250 = arith.addf %249, %248 : vector<2x128xf32>
    %251 = arith.divf %249, %250 : vector<2x128xf32>
    %252 = math.tanh %245 : vector<2x128xf32>
    %c64_i32_52 = arith.constant 64 : i32
    %253 = vector.broadcast %c64_i32_52 : i32 to vector<2x128xi32>
    %254 = arith.cmpi sge, %246, %253 : vector<2x128xi32>
    %c96_i32_53 = arith.constant 96 : i32
    %255 = vector.broadcast %c96_i32_53 : i32 to vector<2x128xi32>
    %256 = arith.cmpi slt, %246, %255 : vector<2x128xi32>
    %257 = arith.andi %254, %256 : vector<2x128xi1>
    %258 = arith.select %257, %252, %251 : vector<2x128xi1>, vector<2x128xf32>
    %259 = vector.extract_strided_slice %258 {offsets = [0, 0], sizes = [2, 32], strides = [1, 1]} : vector<2x128xf32> to vector<2x32xf32>
    %260 = vector.extract_strided_slice %258 {offsets = [0, 32], sizes = [2, 32], strides = [1, 1]} : vector<2x128xf32> to vector<2x32xf32>
    %261 = vector.extract_strided_slice %258 {offsets = [0, 64], sizes = [2, 32], strides = [1, 1]} : vector<2x128xf32> to vector<2x32xf32>
    %262 = vector.extract_strided_slice %258 {offsets = [0, 96], sizes = [2, 32], strides = [1, 1]} : vector<2x128xf32> to vector<2x32xf32>
    %263 = arith.mulf %260, %188 : vector<2x32xf32>
    %264 = arith.mulf %259, %261 : vector<2x32xf32>
    %265 = arith.addf %263, %264 : vector<2x32xf32>
    %266 = math.tanh %265 : vector<2x32xf32>
    %267 = arith.mulf %262, %266 : vector<2x32xf32>
    %268 = tpu.concatenate %267, %216 in 1 : vector<2x32xf32>, vector<2x32xf32> -> vector<2x64xf32>
    %cst_54 = arith.constant dense<0.000000e+00> : vector<2x128xf32>
    %269 = tpu.matmul %268, %7, %cst_54 {dimension_numbers = #tpu.dot_dimension_numbers<[1], [0], [0], [1], [0, 0, 1, 1], [], []>} : vector<2x64xf32>, vector<64x128xf32>, vector<2x128xf32> -> vector<2x128xf32>
    %270 = vector.broadcast %8 : vector<1x128xf32> to vector<2x128xf32>
    %271 = arith.addf %269, %270 : vector<2x128xf32>
    %272 = tpu.iota {dimensions = array<i32: 1>} : vector<2x128xi32>
    %273 = arith.negf %271 : vector<2x128xf32>
    %274 = math.exp %273 : vector<2x128xf32>
    %cst_55 = arith.constant 1.000000e+00 : f32
    %275 = vector.broadcast %cst_55 : f32 to vector<2x128xf32>
    %276 = arith.addf %275, %274 : vector<2x128xf32>
    %277 = arith.divf %275, %276 : vector<2x128xf32>
    %278 = math.tanh %271 : vector<2x128xf32>
    %c64_i32_56 = arith.constant 64 : i32
    %279 = vector.broadcast %c64_i32_56 : i32 to vector<2x128xi32>
    %280 = arith.cmpi sge, %272, %279 : vector<2x128xi32>
    %c96_i32_57 = arith.constant 96 : i32
    %281 = vector.broadcast %c96_i32_57 : i32 to vector<2x128xi32>
    %282 = arith.cmpi slt, %272, %281 : vector<2x128xi32>
    %283 = arith.andi %280, %282 : vector<2x128xi1>
    %284 = arith.select %283, %278, %277 : vector<2x128xi1>, vector<2x128xf32>
    %285 = vector.extract_strided_slice %284 {offsets = [0, 0], sizes = [2, 32], strides = [1, 1]} : vector<2x128xf32> to vector<2x32xf32>
    %286 = vector.extract_strided_slice %284 {offsets = [0, 32], sizes = [2, 32], strides = [1, 1]} : vector<2x128xf32> to vector<2x32xf32>
    %287 = vector.extract_strided_slice %284 {offsets = [0, 64], sizes = [2, 32], strides = [1, 1]} : vector<2x128xf32> to vector<2x32xf32>
    %288 = vector.extract_strided_slice %284 {offsets = [0, 96], sizes = [2, 32], strides = [1, 1]} : vector<2x128xf32> to vector<2x32xf32>
    %289 = arith.mulf %286, %214 : vector<2x32xf32>
    %290 = arith.mulf %285, %287 : vector<2x32xf32>
    %291 = arith.addf %289, %290 : vector<2x32xf32>
    %292 = math.tanh %291 : vector<2x32xf32>
    %293 = arith.mulf %288, %292 : vector<2x32xf32>
    %294 = tpu.concatenate %293, %242 in 1 : vector<2x32xf32>, vector<2x32xf32> -> vector<2x64xf32>
    %cst_58 = arith.constant dense<0.000000e+00> : vector<2x128xf32>
    %295 = tpu.matmul %294, %9, %cst_58 {dimension_numbers = #tpu.dot_dimension_numbers<[1], [0], [0], [1], [0, 0, 1, 1], [], []>} : vector<2x64xf32>, vector<64x128xf32>, vector<2x128xf32> -> vector<2x128xf32>
    %296 = vector.broadcast %10 : vector<1x128xf32> to vector<2x128xf32>
    %297 = arith.addf %295, %296 : vector<2x128xf32>
    %298 = tpu.iota {dimensions = array<i32: 1>} : vector<2x128xi32>
    %299 = arith.negf %297 : vector<2x128xf32>
    %300 = math.exp %299 : vector<2x128xf32>
    %cst_59 = arith.constant 1.000000e+00 : f32
    %301 = vector.broadcast %cst_59 : f32 to vector<2x128xf32>
    %302 = arith.addf %301, %300 : vector<2x128xf32>
    %303 = arith.divf %301, %302 : vector<2x128xf32>
    %304 = math.tanh %297 : vector<2x128xf32>
    %c64_i32_60 = arith.constant 64 : i32
    %305 = vector.broadcast %c64_i32_60 : i32 to vector<2x128xi32>
    %306 = arith.cmpi sge, %298, %305 : vector<2x128xi32>
    %c96_i32_61 = arith.constant 96 : i32
    %307 = vector.broadcast %c96_i32_61 : i32 to vector<2x128xi32>
    %308 = arith.cmpi slt, %298, %307 : vector<2x128xi32>
    %309 = arith.andi %306, %308 : vector<2x128xi1>
    %310 = arith.select %309, %304, %303 : vector<2x128xi1>, vector<2x128xf32>
    %311 = vector.extract_strided_slice %310 {offsets = [0, 0], sizes = [2, 32], strides = [1, 1]} : vector<2x128xf32> to vector<2x32xf32>
    %312 = vector.extract_strided_slice %310 {offsets = [0, 32], sizes = [2, 32], strides = [1, 1]} : vector<2x128xf32> to vector<2x32xf32>
    %313 = vector.extract_strided_slice %310 {offsets = [0, 64], sizes = [2, 32], strides = [1, 1]} : vector<2x128xf32> to vector<2x32xf32>
    %314 = vector.extract_strided_slice %310 {offsets = [0, 96], sizes = [2, 32], strides = [1, 1]} : vector<2x128xf32> to vector<2x32xf32>
    %315 = arith.mulf %312, %240 : vector<2x32xf32>
    %316 = arith.mulf %311, %313 : vector<2x32xf32>
    %317 = arith.addf %315, %316 : vector<2x32xf32>
    %318 = math.tanh %317 : vector<2x32xf32>
    %319 = arith.mulf %314, %318 : vector<2x32xf32>
    %320 = vector.extract_strided_slice %5 {offsets = [8, 0], sizes = [2, 128], strides = [1, 1]} : vector<16x128xf32> to vector<2x128xf32>
    %cst_62 = arith.constant dense<0.000000e+00> : vector<2x128xf32>
    %321 = tpu.matmul %267, %6, %cst_62 {dimension_numbers = #tpu.dot_dimension_numbers<[1], [0], [0], [1], [0, 0, 1, 1], [], []>} : vector<2x32xf32>, vector<32x128xf32>, vector<2x128xf32> -> vector<2x128xf32>
    %322 = arith.addf %320, %321 : vector<2x128xf32>
    %323 = tpu.iota {dimensions = array<i32: 1>} : vector<2x128xi32>
    %324 = arith.negf %322 : vector<2x128xf32>
    %325 = math.exp %324 : vector<2x128xf32>
    %cst_63 = arith.constant 1.000000e+00 : f32
    %326 = vector.broadcast %cst_63 : f32 to vector<2x128xf32>
    %327 = arith.addf %326, %325 : vector<2x128xf32>
    %328 = arith.divf %326, %327 : vector<2x128xf32>
    %329 = math.tanh %322 : vector<2x128xf32>
    %c64_i32_64 = arith.constant 64 : i32
    %330 = vector.broadcast %c64_i32_64 : i32 to vector<2x128xi32>
    %331 = arith.cmpi sge, %323, %330 : vector<2x128xi32>
    %c96_i32_65 = arith.constant 96 : i32
    %332 = vector.broadcast %c96_i32_65 : i32 to vector<2x128xi32>
    %333 = arith.cmpi slt, %323, %332 : vector<2x128xi32>
    %334 = arith.andi %331, %333 : vector<2x128xi1>
    %335 = arith.select %334, %329, %328 : vector<2x128xi1>, vector<2x128xf32>
    %336 = vector.extract_strided_slice %335 {offsets = [0, 0], sizes = [2, 32], strides = [1, 1]} : vector<2x128xf32> to vector<2x32xf32>
    %337 = vector.extract_strided_slice %335 {offsets = [0, 32], sizes = [2, 32], strides = [1, 1]} : vector<2x128xf32> to vector<2x32xf32>
    %338 = vector.extract_strided_slice %335 {offsets = [0, 64], sizes = [2, 32], strides = [1, 1]} : vector<2x128xf32> to vector<2x32xf32>
    %339 = vector.extract_strided_slice %335 {offsets = [0, 96], sizes = [2, 32], strides = [1, 1]} : vector<2x128xf32> to vector<2x32xf32>
    %340 = arith.mulf %337, %265 : vector<2x32xf32>
    %341 = arith.mulf %336, %338 : vector<2x32xf32>
    %342 = arith.addf %340, %341 : vector<2x32xf32>
    %343 = math.tanh %342 : vector<2x32xf32>
    %344 = arith.mulf %339, %343 : vector<2x32xf32>
    %345 = tpu.concatenate %344, %293 in 1 : vector<2x32xf32>, vector<2x32xf32> -> vector<2x64xf32>
    %cst_66 = arith.constant dense<0.000000e+00> : vector<2x128xf32>
    %346 = tpu.matmul %345, %7, %cst_66 {dimension_numbers = #tpu.dot_dimension_numbers<[1], [0], [0], [1], [0, 0, 1, 1], [], []>} : vector<2x64xf32>, vector<64x128xf32>, vector<2x128xf32> -> vector<2x128xf32>
    %347 = vector.broadcast %8 : vector<1x128xf32> to vector<2x128xf32>
    %348 = arith.addf %346, %347 : vector<2x128xf32>
    %349 = tpu.iota {dimensions = array<i32: 1>} : vector<2x128xi32>
    %350 = arith.negf %348 : vector<2x128xf32>
    %351 = math.exp %350 : vector<2x128xf32>
    %cst_67 = arith.constant 1.000000e+00 : f32
    %352 = vector.broadcast %cst_67 : f32 to vector<2x128xf32>
    %353 = arith.addf %352, %351 : vector<2x128xf32>
    %354 = arith.divf %352, %353 : vector<2x128xf32>
    %355 = math.tanh %348 : vector<2x128xf32>
    %c64_i32_68 = arith.constant 64 : i32
    %356 = vector.broadcast %c64_i32_68 : i32 to vector<2x128xi32>
    %357 = arith.cmpi sge, %349, %356 : vector<2x128xi32>
    %c96_i32_69 = arith.constant 96 : i32
    %358 = vector.broadcast %c96_i32_69 : i32 to vector<2x128xi32>
    %359 = arith.cmpi slt, %349, %358 : vector<2x128xi32>
    %360 = arith.andi %357, %359 : vector<2x128xi1>
    %361 = arith.select %360, %355, %354 : vector<2x128xi1>, vector<2x128xf32>
    %362 = vector.extract_strided_slice %361 {offsets = [0, 0], sizes = [2, 32], strides = [1, 1]} : vector<2x128xf32> to vector<2x32xf32>
    %363 = vector.extract_strided_slice %361 {offsets = [0, 32], sizes = [2, 32], strides = [1, 1]} : vector<2x128xf32> to vector<2x32xf32>
    %364 = vector.extract_strided_slice %361 {offsets = [0, 64], sizes = [2, 32], strides = [1, 1]} : vector<2x128xf32> to vector<2x32xf32>
    %365 = vector.extract_strided_slice %361 {offsets = [0, 96], sizes = [2, 32], strides = [1, 1]} : vector<2x128xf32> to vector<2x32xf32>
    %366 = arith.mulf %363, %291 : vector<2x32xf32>
    %367 = arith.mulf %362, %364 : vector<2x32xf32>
    %368 = arith.addf %366, %367 : vector<2x32xf32>
    %369 = math.tanh %368 : vector<2x32xf32>
    %370 = arith.mulf %365, %369 : vector<2x32xf32>
    %371 = tpu.concatenate %370, %319 in 1 : vector<2x32xf32>, vector<2x32xf32> -> vector<2x64xf32>
    %cst_70 = arith.constant dense<0.000000e+00> : vector<2x128xf32>
    %372 = tpu.matmul %371, %9, %cst_70 {dimension_numbers = #tpu.dot_dimension_numbers<[1], [0], [0], [1], [0, 0, 1, 1], [], []>} : vector<2x64xf32>, vector<64x128xf32>, vector<2x128xf32> -> vector<2x128xf32>
    %373 = vector.broadcast %10 : vector<1x128xf32> to vector<2x128xf32>
    %374 = arith.addf %372, %373 : vector<2x128xf32>
    %375 = tpu.iota {dimensions = array<i32: 1>} : vector<2x128xi32>
    %376 = arith.negf %374 : vector<2x128xf32>
    %377 = math.exp %376 : vector<2x128xf32>
    %cst_71 = arith.constant 1.000000e+00 : f32
    %378 = vector.broadcast %cst_71 : f32 to vector<2x128xf32>
    %379 = arith.addf %378, %377 : vector<2x128xf32>
    %380 = arith.divf %378, %379 : vector<2x128xf32>
    %381 = math.tanh %374 : vector<2x128xf32>
    %c64_i32_72 = arith.constant 64 : i32
    %382 = vector.broadcast %c64_i32_72 : i32 to vector<2x128xi32>
    %383 = arith.cmpi sge, %375, %382 : vector<2x128xi32>
    %c96_i32_73 = arith.constant 96 : i32
    %384 = vector.broadcast %c96_i32_73 : i32 to vector<2x128xi32>
    %385 = arith.cmpi slt, %375, %384 : vector<2x128xi32>
    %386 = arith.andi %383, %385 : vector<2x128xi1>
    %387 = arith.select %386, %381, %380 : vector<2x128xi1>, vector<2x128xf32>
    %388 = vector.extract_strided_slice %387 {offsets = [0, 0], sizes = [2, 32], strides = [1, 1]} : vector<2x128xf32> to vector<2x32xf32>
    %389 = vector.extract_strided_slice %387 {offsets = [0, 32], sizes = [2, 32], strides = [1, 1]} : vector<2x128xf32> to vector<2x32xf32>
    %390 = vector.extract_strided_slice %387 {offsets = [0, 64], sizes = [2, 32], strides = [1, 1]} : vector<2x128xf32> to vector<2x32xf32>
    %391 = vector.extract_strided_slice %387 {offsets = [0, 96], sizes = [2, 32], strides = [1, 1]} : vector<2x128xf32> to vector<2x32xf32>
    %392 = arith.mulf %389, %317 : vector<2x32xf32>
    %393 = arith.mulf %388, %390 : vector<2x32xf32>
    %394 = arith.addf %392, %393 : vector<2x32xf32>
    %395 = math.tanh %394 : vector<2x32xf32>
    %396 = arith.mulf %391, %395 : vector<2x32xf32>
    %397 = vector.extract_strided_slice %5 {offsets = [10, 0], sizes = [2, 128], strides = [1, 1]} : vector<16x128xf32> to vector<2x128xf32>
    %cst_74 = arith.constant dense<0.000000e+00> : vector<2x128xf32>
    %398 = tpu.matmul %344, %6, %cst_74 {dimension_numbers = #tpu.dot_dimension_numbers<[1], [0], [0], [1], [0, 0, 1, 1], [], []>} : vector<2x32xf32>, vector<32x128xf32>, vector<2x128xf32> -> vector<2x128xf32>
    %399 = arith.addf %397, %398 : vector<2x128xf32>
    %400 = tpu.iota {dimensions = array<i32: 1>} : vector<2x128xi32>
    %401 = arith.negf %399 : vector<2x128xf32>
    %402 = math.exp %401 : vector<2x128xf32>
    %cst_75 = arith.constant 1.000000e+00 : f32
    %403 = vector.broadcast %cst_75 : f32 to vector<2x128xf32>
    %404 = arith.addf %403, %402 : vector<2x128xf32>
    %405 = arith.divf %403, %404 : vector<2x128xf32>
    %406 = math.tanh %399 : vector<2x128xf32>
    %c64_i32_76 = arith.constant 64 : i32
    %407 = vector.broadcast %c64_i32_76 : i32 to vector<2x128xi32>
    %408 = arith.cmpi sge, %400, %407 : vector<2x128xi32>
    %c96_i32_77 = arith.constant 96 : i32
    %409 = vector.broadcast %c96_i32_77 : i32 to vector<2x128xi32>
    %410 = arith.cmpi slt, %400, %409 : vector<2x128xi32>
    %411 = arith.andi %408, %410 : vector<2x128xi1>
    %412 = arith.select %411, %406, %405 : vector<2x128xi1>, vector<2x128xf32>
    %413 = vector.extract_strided_slice %412 {offsets = [0, 0], sizes = [2, 32], strides = [1, 1]} : vector<2x128xf32> to vector<2x32xf32>
    %414 = vector.extract_strided_slice %412 {offsets = [0, 32], sizes = [2, 32], strides = [1, 1]} : vector<2x128xf32> to vector<2x32xf32>
    %415 = vector.extract_strided_slice %412 {offsets = [0, 64], sizes = [2, 32], strides = [1, 1]} : vector<2x128xf32> to vector<2x32xf32>
    %416 = vector.extract_strided_slice %412 {offsets = [0, 96], sizes = [2, 32], strides = [1, 1]} : vector<2x128xf32> to vector<2x32xf32>
    %417 = arith.mulf %414, %342 : vector<2x32xf32>
    %418 = arith.mulf %413, %415 : vector<2x32xf32>
    %419 = arith.addf %417, %418 : vector<2x32xf32>
    %420 = math.tanh %419 : vector<2x32xf32>
    %421 = arith.mulf %416, %420 : vector<2x32xf32>
    %422 = tpu.concatenate %421, %370 in 1 : vector<2x32xf32>, vector<2x32xf32> -> vector<2x64xf32>
    %cst_78 = arith.constant dense<0.000000e+00> : vector<2x128xf32>
    %423 = tpu.matmul %422, %7, %cst_78 {dimension_numbers = #tpu.dot_dimension_numbers<[1], [0], [0], [1], [0, 0, 1, 1], [], []>} : vector<2x64xf32>, vector<64x128xf32>, vector<2x128xf32> -> vector<2x128xf32>
    %424 = vector.broadcast %8 : vector<1x128xf32> to vector<2x128xf32>
    %425 = arith.addf %423, %424 : vector<2x128xf32>
    %426 = tpu.iota {dimensions = array<i32: 1>} : vector<2x128xi32>
    %427 = arith.negf %425 : vector<2x128xf32>
    %428 = math.exp %427 : vector<2x128xf32>
    %cst_79 = arith.constant 1.000000e+00 : f32
    %429 = vector.broadcast %cst_79 : f32 to vector<2x128xf32>
    %430 = arith.addf %429, %428 : vector<2x128xf32>
    %431 = arith.divf %429, %430 : vector<2x128xf32>
    %432 = math.tanh %425 : vector<2x128xf32>
    %c64_i32_80 = arith.constant 64 : i32
    %433 = vector.broadcast %c64_i32_80 : i32 to vector<2x128xi32>
    %434 = arith.cmpi sge, %426, %433 : vector<2x128xi32>
    %c96_i32_81 = arith.constant 96 : i32
    %435 = vector.broadcast %c96_i32_81 : i32 to vector<2x128xi32>
    %436 = arith.cmpi slt, %426, %435 : vector<2x128xi32>
    %437 = arith.andi %434, %436 : vector<2x128xi1>
    %438 = arith.select %437, %432, %431 : vector<2x128xi1>, vector<2x128xf32>
    %439 = vector.extract_strided_slice %438 {offsets = [0, 0], sizes = [2, 32], strides = [1, 1]} : vector<2x128xf32> to vector<2x32xf32>
    %440 = vector.extract_strided_slice %438 {offsets = [0, 32], sizes = [2, 32], strides = [1, 1]} : vector<2x128xf32> to vector<2x32xf32>
    %441 = vector.extract_strided_slice %438 {offsets = [0, 64], sizes = [2, 32], strides = [1, 1]} : vector<2x128xf32> to vector<2x32xf32>
    %442 = vector.extract_strided_slice %438 {offsets = [0, 96], sizes = [2, 32], strides = [1, 1]} : vector<2x128xf32> to vector<2x32xf32>
    %443 = arith.mulf %440, %368 : vector<2x32xf32>
    %444 = arith.mulf %439, %441 : vector<2x32xf32>
    %445 = arith.addf %443, %444 : vector<2x32xf32>
    %446 = math.tanh %445 : vector<2x32xf32>
    %447 = arith.mulf %442, %446 : vector<2x32xf32>
    %448 = tpu.concatenate %447, %396 in 1 : vector<2x32xf32>, vector<2x32xf32> -> vector<2x64xf32>
    %cst_82 = arith.constant dense<0.000000e+00> : vector<2x128xf32>
    %449 = tpu.matmul %448, %9, %cst_82 {dimension_numbers = #tpu.dot_dimension_numbers<[1], [0], [0], [1], [0, 0, 1, 1], [], []>} : vector<2x64xf32>, vector<64x128xf32>, vector<2x128xf32> -> vector<2x128xf32>
    %450 = vector.broadcast %10 : vector<1x128xf32> to vector<2x128xf32>
    %451 = arith.addf %449, %450 : vector<2x128xf32>
    %452 = tpu.iota {dimensions = array<i32: 1>} : vector<2x128xi32>
    %453 = arith.negf %451 : vector<2x128xf32>
    %454 = math.exp %453 : vector<2x128xf32>
    %cst_83 = arith.constant 1.000000e+00 : f32
    %455 = vector.broadcast %cst_83 : f32 to vector<2x128xf32>
    %456 = arith.addf %455, %454 : vector<2x128xf32>
    %457 = arith.divf %455, %456 : vector<2x128xf32>
    %458 = math.tanh %451 : vector<2x128xf32>
    %c64_i32_84 = arith.constant 64 : i32
    %459 = vector.broadcast %c64_i32_84 : i32 to vector<2x128xi32>
    %460 = arith.cmpi sge, %452, %459 : vector<2x128xi32>
    %c96_i32_85 = arith.constant 96 : i32
    %461 = vector.broadcast %c96_i32_85 : i32 to vector<2x128xi32>
    %462 = arith.cmpi slt, %452, %461 : vector<2x128xi32>
    %463 = arith.andi %460, %462 : vector<2x128xi1>
    %464 = arith.select %463, %458, %457 : vector<2x128xi1>, vector<2x128xf32>
    %465 = vector.extract_strided_slice %464 {offsets = [0, 0], sizes = [2, 32], strides = [1, 1]} : vector<2x128xf32> to vector<2x32xf32>
    %466 = vector.extract_strided_slice %464 {offsets = [0, 32], sizes = [2, 32], strides = [1, 1]} : vector<2x128xf32> to vector<2x32xf32>
    %467 = vector.extract_strided_slice %464 {offsets = [0, 64], sizes = [2, 32], strides = [1, 1]} : vector<2x128xf32> to vector<2x32xf32>
    %468 = vector.extract_strided_slice %464 {offsets = [0, 96], sizes = [2, 32], strides = [1, 1]} : vector<2x128xf32> to vector<2x32xf32>
    %469 = arith.mulf %466, %394 : vector<2x32xf32>
    %470 = arith.mulf %465, %467 : vector<2x32xf32>
    %471 = arith.addf %469, %470 : vector<2x32xf32>
    %472 = math.tanh %471 : vector<2x32xf32>
    %473 = arith.mulf %468, %472 : vector<2x32xf32>
    %474 = vector.extract_strided_slice %5 {offsets = [12, 0], sizes = [2, 128], strides = [1, 1]} : vector<16x128xf32> to vector<2x128xf32>
    %cst_86 = arith.constant dense<0.000000e+00> : vector<2x128xf32>
    %475 = tpu.matmul %421, %6, %cst_86 {dimension_numbers = #tpu.dot_dimension_numbers<[1], [0], [0], [1], [0, 0, 1, 1], [], []>} : vector<2x32xf32>, vector<32x128xf32>, vector<2x128xf32> -> vector<2x128xf32>
    %476 = arith.addf %474, %475 : vector<2x128xf32>
    %477 = tpu.iota {dimensions = array<i32: 1>} : vector<2x128xi32>
    %478 = arith.negf %476 : vector<2x128xf32>
    %479 = math.exp %478 : vector<2x128xf32>
    %cst_87 = arith.constant 1.000000e+00 : f32
    %480 = vector.broadcast %cst_87 : f32 to vector<2x128xf32>
    %481 = arith.addf %480, %479 : vector<2x128xf32>
    %482 = arith.divf %480, %481 : vector<2x128xf32>
    %483 = math.tanh %476 : vector<2x128xf32>
    %c64_i32_88 = arith.constant 64 : i32
    %484 = vector.broadcast %c64_i32_88 : i32 to vector<2x128xi32>
    %485 = arith.cmpi sge, %477, %484 : vector<2x128xi32>
    %c96_i32_89 = arith.constant 96 : i32
    %486 = vector.broadcast %c96_i32_89 : i32 to vector<2x128xi32>
    %487 = arith.cmpi slt, %477, %486 : vector<2x128xi32>
    %488 = arith.andi %485, %487 : vector<2x128xi1>
    %489 = arith.select %488, %483, %482 : vector<2x128xi1>, vector<2x128xf32>
    %490 = vector.extract_strided_slice %489 {offsets = [0, 0], sizes = [2, 32], strides = [1, 1]} : vector<2x128xf32> to vector<2x32xf32>
    %491 = vector.extract_strided_slice %489 {offsets = [0, 32], sizes = [2, 32], strides = [1, 1]} : vector<2x128xf32> to vector<2x32xf32>
    %492 = vector.extract_strided_slice %489 {offsets = [0, 64], sizes = [2, 32], strides = [1, 1]} : vector<2x128xf32> to vector<2x32xf32>
    %493 = vector.extract_strided_slice %489 {offsets = [0, 96], sizes = [2, 32], strides = [1, 1]} : vector<2x128xf32> to vector<2x32xf32>
    %494 = arith.mulf %491, %419 : vector<2x32xf32>
    %495 = arith.mulf %490, %492 : vector<2x32xf32>
    %496 = arith.addf %494, %495 : vector<2x32xf32>
    %497 = math.tanh %496 : vector<2x32xf32>
    %498 = arith.mulf %493, %497 : vector<2x32xf32>
    %499 = tpu.concatenate %498, %447 in 1 : vector<2x32xf32>, vector<2x32xf32> -> vector<2x64xf32>
    %cst_90 = arith.constant dense<0.000000e+00> : vector<2x128xf32>
    %500 = tpu.matmul %499, %7, %cst_90 {dimension_numbers = #tpu.dot_dimension_numbers<[1], [0], [0], [1], [0, 0, 1, 1], [], []>} : vector<2x64xf32>, vector<64x128xf32>, vector<2x128xf32> -> vector<2x128xf32>
    %501 = vector.broadcast %8 : vector<1x128xf32> to vector<2x128xf32>
    %502 = arith.addf %500, %501 : vector<2x128xf32>
    %503 = tpu.iota {dimensions = array<i32: 1>} : vector<2x128xi32>
    %504 = arith.negf %502 : vector<2x128xf32>
    %505 = math.exp %504 : vector<2x128xf32>
    %cst_91 = arith.constant 1.000000e+00 : f32
    %506 = vector.broadcast %cst_91 : f32 to vector<2x128xf32>
    %507 = arith.addf %506, %505 : vector<2x128xf32>
    %508 = arith.divf %506, %507 : vector<2x128xf32>
    %509 = math.tanh %502 : vector<2x128xf32>
    %c64_i32_92 = arith.constant 64 : i32
    %510 = vector.broadcast %c64_i32_92 : i32 to vector<2x128xi32>
    %511 = arith.cmpi sge, %503, %510 : vector<2x128xi32>
    %c96_i32_93 = arith.constant 96 : i32
    %512 = vector.broadcast %c96_i32_93 : i32 to vector<2x128xi32>
    %513 = arith.cmpi slt, %503, %512 : vector<2x128xi32>
    %514 = arith.andi %511, %513 : vector<2x128xi1>
    %515 = arith.select %514, %509, %508 : vector<2x128xi1>, vector<2x128xf32>
    %516 = vector.extract_strided_slice %515 {offsets = [0, 0], sizes = [2, 32], strides = [1, 1]} : vector<2x128xf32> to vector<2x32xf32>
    %517 = vector.extract_strided_slice %515 {offsets = [0, 32], sizes = [2, 32], strides = [1, 1]} : vector<2x128xf32> to vector<2x32xf32>
    %518 = vector.extract_strided_slice %515 {offsets = [0, 64], sizes = [2, 32], strides = [1, 1]} : vector<2x128xf32> to vector<2x32xf32>
    %519 = vector.extract_strided_slice %515 {offsets = [0, 96], sizes = [2, 32], strides = [1, 1]} : vector<2x128xf32> to vector<2x32xf32>
    %520 = arith.mulf %517, %445 : vector<2x32xf32>
    %521 = arith.mulf %516, %518 : vector<2x32xf32>
    %522 = arith.addf %520, %521 : vector<2x32xf32>
    %523 = math.tanh %522 : vector<2x32xf32>
    %524 = arith.mulf %519, %523 : vector<2x32xf32>
    %525 = tpu.concatenate %524, %473 in 1 : vector<2x32xf32>, vector<2x32xf32> -> vector<2x64xf32>
    %cst_94 = arith.constant dense<0.000000e+00> : vector<2x128xf32>
    %526 = tpu.matmul %525, %9, %cst_94 {dimension_numbers = #tpu.dot_dimension_numbers<[1], [0], [0], [1], [0, 0, 1, 1], [], []>} : vector<2x64xf32>, vector<64x128xf32>, vector<2x128xf32> -> vector<2x128xf32>
    %527 = vector.broadcast %10 : vector<1x128xf32> to vector<2x128xf32>
    %528 = arith.addf %526, %527 : vector<2x128xf32>
    %529 = tpu.iota {dimensions = array<i32: 1>} : vector<2x128xi32>
    %530 = arith.negf %528 : vector<2x128xf32>
    %531 = math.exp %530 : vector<2x128xf32>
    %cst_95 = arith.constant 1.000000e+00 : f32
    %532 = vector.broadcast %cst_95 : f32 to vector<2x128xf32>
    %533 = arith.addf %532, %531 : vector<2x128xf32>
    %534 = arith.divf %532, %533 : vector<2x128xf32>
    %535 = math.tanh %528 : vector<2x128xf32>
    %c64_i32_96 = arith.constant 64 : i32
    %536 = vector.broadcast %c64_i32_96 : i32 to vector<2x128xi32>
    %537 = arith.cmpi sge, %529, %536 : vector<2x128xi32>
    %c96_i32_97 = arith.constant 96 : i32
    %538 = vector.broadcast %c96_i32_97 : i32 to vector<2x128xi32>
    %539 = arith.cmpi slt, %529, %538 : vector<2x128xi32>
    %540 = arith.andi %537, %539 : vector<2x128xi1>
    %541 = arith.select %540, %535, %534 : vector<2x128xi1>, vector<2x128xf32>
    %542 = vector.extract_strided_slice %541 {offsets = [0, 0], sizes = [2, 32], strides = [1, 1]} : vector<2x128xf32> to vector<2x32xf32>
    %543 = vector.extract_strided_slice %541 {offsets = [0, 32], sizes = [2, 32], strides = [1, 1]} : vector<2x128xf32> to vector<2x32xf32>
    %544 = vector.extract_strided_slice %541 {offsets = [0, 64], sizes = [2, 32], strides = [1, 1]} : vector<2x128xf32> to vector<2x32xf32>
    %545 = vector.extract_strided_slice %541 {offsets = [0, 96], sizes = [2, 32], strides = [1, 1]} : vector<2x128xf32> to vector<2x32xf32>
    %546 = arith.mulf %543, %471 : vector<2x32xf32>
    %547 = arith.mulf %542, %544 : vector<2x32xf32>
    %548 = arith.addf %546, %547 : vector<2x32xf32>
    %549 = math.tanh %548 : vector<2x32xf32>
    %550 = arith.mulf %545, %549 : vector<2x32xf32>
    %551 = vector.extract_strided_slice %5 {offsets = [14, 0], sizes = [2, 128], strides = [1, 1]} : vector<16x128xf32> to vector<2x128xf32>
    %cst_98 = arith.constant dense<0.000000e+00> : vector<2x128xf32>
    %552 = tpu.matmul %498, %6, %cst_98 {dimension_numbers = #tpu.dot_dimension_numbers<[1], [0], [0], [1], [0, 0, 1, 1], [], []>} : vector<2x32xf32>, vector<32x128xf32>, vector<2x128xf32> -> vector<2x128xf32>
    %553 = arith.addf %551, %552 : vector<2x128xf32>
    %554 = tpu.iota {dimensions = array<i32: 1>} : vector<2x128xi32>
    %555 = arith.negf %553 : vector<2x128xf32>
    %556 = math.exp %555 : vector<2x128xf32>
    %cst_99 = arith.constant 1.000000e+00 : f32
    %557 = vector.broadcast %cst_99 : f32 to vector<2x128xf32>
    %558 = arith.addf %557, %556 : vector<2x128xf32>
    %559 = arith.divf %557, %558 : vector<2x128xf32>
    %560 = math.tanh %553 : vector<2x128xf32>
    %c64_i32_100 = arith.constant 64 : i32
    %561 = vector.broadcast %c64_i32_100 : i32 to vector<2x128xi32>
    %562 = arith.cmpi sge, %554, %561 : vector<2x128xi32>
    %c96_i32_101 = arith.constant 96 : i32
    %563 = vector.broadcast %c96_i32_101 : i32 to vector<2x128xi32>
    %564 = arith.cmpi slt, %554, %563 : vector<2x128xi32>
    %565 = arith.andi %562, %564 : vector<2x128xi1>
    %566 = arith.select %565, %560, %559 : vector<2x128xi1>, vector<2x128xf32>
    %567 = vector.extract_strided_slice %566 {offsets = [0, 0], sizes = [2, 32], strides = [1, 1]} : vector<2x128xf32> to vector<2x32xf32>
    %568 = vector.extract_strided_slice %566 {offsets = [0, 32], sizes = [2, 32], strides = [1, 1]} : vector<2x128xf32> to vector<2x32xf32>
    %569 = vector.extract_strided_slice %566 {offsets = [0, 64], sizes = [2, 32], strides = [1, 1]} : vector<2x128xf32> to vector<2x32xf32>
    %570 = vector.extract_strided_slice %566 {offsets = [0, 96], sizes = [2, 32], strides = [1, 1]} : vector<2x128xf32> to vector<2x32xf32>
    %571 = arith.mulf %568, %496 : vector<2x32xf32>
    %572 = arith.mulf %567, %569 : vector<2x32xf32>
    %573 = arith.addf %571, %572 : vector<2x32xf32>
    %574 = math.tanh %573 : vector<2x32xf32>
    %575 = arith.mulf %570, %574 : vector<2x32xf32>
    %576 = tpu.concatenate %575, %524 in 1 : vector<2x32xf32>, vector<2x32xf32> -> vector<2x64xf32>
    %cst_102 = arith.constant dense<0.000000e+00> : vector<2x128xf32>
    %577 = tpu.matmul %576, %7, %cst_102 {dimension_numbers = #tpu.dot_dimension_numbers<[1], [0], [0], [1], [0, 0, 1, 1], [], []>} : vector<2x64xf32>, vector<64x128xf32>, vector<2x128xf32> -> vector<2x128xf32>
    %578 = vector.broadcast %8 : vector<1x128xf32> to vector<2x128xf32>
    %579 = arith.addf %577, %578 : vector<2x128xf32>
    %580 = tpu.iota {dimensions = array<i32: 1>} : vector<2x128xi32>
    %581 = arith.negf %579 : vector<2x128xf32>
    %582 = math.exp %581 : vector<2x128xf32>
    %cst_103 = arith.constant 1.000000e+00 : f32
    %583 = vector.broadcast %cst_103 : f32 to vector<2x128xf32>
    %584 = arith.addf %583, %582 : vector<2x128xf32>
    %585 = arith.divf %583, %584 : vector<2x128xf32>
    %586 = math.tanh %579 : vector<2x128xf32>
    %c64_i32_104 = arith.constant 64 : i32
    %587 = vector.broadcast %c64_i32_104 : i32 to vector<2x128xi32>
    %588 = arith.cmpi sge, %580, %587 : vector<2x128xi32>
    %c96_i32_105 = arith.constant 96 : i32
    %589 = vector.broadcast %c96_i32_105 : i32 to vector<2x128xi32>
    %590 = arith.cmpi slt, %580, %589 : vector<2x128xi32>
    %591 = arith.andi %588, %590 : vector<2x128xi1>
    %592 = arith.select %591, %586, %585 : vector<2x128xi1>, vector<2x128xf32>
    %593 = vector.extract_strided_slice %592 {offsets = [0, 0], sizes = [2, 32], strides = [1, 1]} : vector<2x128xf32> to vector<2x32xf32>
    %594 = vector.extract_strided_slice %592 {offsets = [0, 32], sizes = [2, 32], strides = [1, 1]} : vector<2x128xf32> to vector<2x32xf32>
    %595 = vector.extract_strided_slice %592 {offsets = [0, 64], sizes = [2, 32], strides = [1, 1]} : vector<2x128xf32> to vector<2x32xf32>
    %596 = vector.extract_strided_slice %592 {offsets = [0, 96], sizes = [2, 32], strides = [1, 1]} : vector<2x128xf32> to vector<2x32xf32>
    %597 = arith.mulf %594, %522 : vector<2x32xf32>
    %598 = arith.mulf %593, %595 : vector<2x32xf32>
    %599 = arith.addf %597, %598 : vector<2x32xf32>
    %600 = math.tanh %599 : vector<2x32xf32>
    %601 = arith.mulf %596, %600 : vector<2x32xf32>
    %602 = tpu.concatenate %601, %550 in 1 : vector<2x32xf32>, vector<2x32xf32> -> vector<2x64xf32>
    %cst_106 = arith.constant dense<0.000000e+00> : vector<2x128xf32>
    %603 = tpu.matmul %602, %9, %cst_106 {dimension_numbers = #tpu.dot_dimension_numbers<[1], [0], [0], [1], [0, 0, 1, 1], [], []>} : vector<2x64xf32>, vector<64x128xf32>, vector<2x128xf32> -> vector<2x128xf32>
    %604 = vector.broadcast %10 : vector<1x128xf32> to vector<2x128xf32>
    %605 = arith.addf %603, %604 : vector<2x128xf32>
    %606 = tpu.iota {dimensions = array<i32: 1>} : vector<2x128xi32>
    %607 = arith.negf %605 : vector<2x128xf32>
    %608 = math.exp %607 : vector<2x128xf32>
    %cst_107 = arith.constant 1.000000e+00 : f32
    %609 = vector.broadcast %cst_107 : f32 to vector<2x128xf32>
    %610 = arith.addf %609, %608 : vector<2x128xf32>
    %611 = arith.divf %609, %610 : vector<2x128xf32>
    %612 = math.tanh %605 : vector<2x128xf32>
    %c64_i32_108 = arith.constant 64 : i32
    %613 = vector.broadcast %c64_i32_108 : i32 to vector<2x128xi32>
    %614 = arith.cmpi sge, %606, %613 : vector<2x128xi32>
    %c96_i32_109 = arith.constant 96 : i32
    %615 = vector.broadcast %c96_i32_109 : i32 to vector<2x128xi32>
    %616 = arith.cmpi slt, %606, %615 : vector<2x128xi32>
    %617 = arith.andi %614, %616 : vector<2x128xi1>
    %618 = arith.select %617, %612, %611 : vector<2x128xi1>, vector<2x128xf32>
    %619 = vector.extract_strided_slice %618 {offsets = [0, 0], sizes = [2, 32], strides = [1, 1]} : vector<2x128xf32> to vector<2x32xf32>
    %620 = vector.extract_strided_slice %618 {offsets = [0, 32], sizes = [2, 32], strides = [1, 1]} : vector<2x128xf32> to vector<2x32xf32>
    %621 = vector.extract_strided_slice %618 {offsets = [0, 64], sizes = [2, 32], strides = [1, 1]} : vector<2x128xf32> to vector<2x32xf32>
    %622 = vector.extract_strided_slice %618 {offsets = [0, 96], sizes = [2, 32], strides = [1, 1]} : vector<2x128xf32> to vector<2x32xf32>
    %623 = arith.mulf %620, %548 : vector<2x32xf32>
    %624 = arith.mulf %619, %621 : vector<2x32xf32>
    %625 = arith.addf %623, %624 : vector<2x32xf32>
    %626 = math.tanh %625 : vector<2x32xf32>
    %627 = arith.mulf %622, %626 : vector<2x32xf32>
    %628 = tpu.concatenate %88, %165, %242, %319, %396, %473, %550, %627 in 0 : vector<2x32xf32>, vector<2x32xf32>, vector<2x32xf32>, vector<2x32xf32>, vector<2x32xf32>, vector<2x32xf32>, vector<2x32xf32>, vector<2x32xf32> -> vector<16x32xf32>
    %c0_110 = arith.constant 0 : index
    %c0_111 = arith.constant 0 : index
    %629 = vector.load %arg8[%c0_110, %c0_111] : memref<32x32xf32, #tpu.memory_space<vmem>>, vector<32x32xf32>
    %cst_112 = arith.constant dense<0.000000e+00> : vector<16x32xf32>
    %630 = tpu.matmul %628, %629, %cst_112 {dimension_numbers = #tpu.dot_dimension_numbers<[1], [0], [0], [1], [0, 0, 1, 1], [], []>} : vector<16x32xf32>, vector<32x32xf32>, vector<16x32xf32> -> vector<16x32xf32>
    %c0_113 = arith.constant 0 : index
    %c0_114 = arith.constant 0 : index
    %631 = vector.load %arg9[%c0_113, %c0_114] : memref<1x32xf32, #tpu.memory_space<vmem>>, vector<1x32xf32>
    %632 = vector.broadcast %631 : vector<1x32xf32> to vector<16x32xf32>
    %633 = arith.addf %630, %632 : vector<16x32xf32>
    %634 = vector.extract_strided_slice %0 {offsets = [0, 0], sizes = [16, 32], strides = [1, 1]} : vector<16x64xf32> to vector<16x32xf32>
    %635 = arith.mulf %633, %634 : vector<16x32xf32>
    %cst_115 = arith.constant dense<0xFF800000> : vector<16xf32>
    %636 = vector.multi_reduction <maximumf>, %635, %cst_115 [1] : vector<16x32xf32> to vector<16xf32>
    %637 = vector.shape_cast %636 : vector<16xf32> to vector<16x1xf32>
    %638 = vector.broadcast %637 : vector<16x1xf32> to vector<16x32xf32>
    %639 = arith.subf %635, %638 : vector<16x32xf32>
    %640 = math.exp %639 : vector<16x32xf32>
    %cst_116 = arith.constant dense<0.000000e+00> : vector<16xf32>
    %641 = vector.multi_reduction <add>, %640, %cst_116 [1] : vector<16x32xf32> to vector<16xf32>
    %642 = vector.shape_cast %641 : vector<16xf32> to vector<16x1xf32>
    %643 = math.log %642 : vector<16x1xf32>
    %644 = vector.broadcast %643 : vector<16x1xf32> to vector<16x32xf32>
    %645 = arith.subf %639, %644 : vector<16x32xf32>
    %c0_117 = arith.constant 0 : index
    %c0_118 = arith.constant 0 : index
    %646 = vector.load %arg10[%c0_117, %c0_118] : memref<16x32xf32, #tpu.memory_space<vmem>>, vector<16x32xf32>
    tpu.vector_store %arg10[%c0_117, %c0_118], %645 {strides = array<i32>} : memref<16x32xf32, #tpu.memory_space<vmem>>, vector<16x32xf32>,
    return
  }
}

</mosaic_0001>

<bundles_post_ra>
// kernel: tpu_custom_call.1
= control target key start
LH: loop header
LB: loop body
LE: loop exit
PB: predicated region body
PF: predicated region fallthrough
CT: control target
= control target key end

     0   :  { %15 = vsyncpa [#allocation3], 0  ;;  %s3163_s0 = inlined_call_operand.hbm [shape: f32[16,64], index: 0, kind: input, shape index: {}]   ;;  %s3164_s1 = inlined_call_operand.hbm [shape: f32[64,128], index: 1, kind: input, shape index: {}]   ;;  %s3165_s2 = inlined_call_operand.hbm [shape: f32[32,128], index: 2, kind: input, shape index: {}]   ;;  %s3166_s3 = inlined_call_operand.vmem [shape: f32[1,128], index: 3, kind: input, shape index: {}]   ;;  %s3167_s4 = inlined_call_operand.hbm [shape: f32[64,128], index: 4, kind: input, shape index: {}]   ;;  %s3168_s5 = inlined_call_operand.vmem [shape: f32[1,128], index: 5, kind: input, shape index: {}]   ;;  %s3169_s6 = inlined_call_operand.hbm [shape: f32[64,128], index: 6, kind: input, shape index: {}]   ;;  %s3170_s7 = inlined_call_operand.vmem [shape: f32[1,128], index: 7, kind: input, shape index: {}]   ;;  %s3171_s8 = inlined_call_operand.hbm [shape: f32[32,32], index: 8, kind: input, shape index: {}]   ;;  %s3172_s9 = inlined_call_operand.vmem [shape: f32[1,32], index: 9, kind: input, shape index: {}]   ;;  %s3173_s10 = inlined_call_operand.hbm [shape: f32[16,32], index: 10, kind: output, shape index: {}]  }
   0x1   :  { %16 = vsyncpa [#allocation6], 0 }
   0x2   :  { %17 = vsyncpa [#allocation9], 0 }
   0x3   :  { %18 = vsyncpa [#allocation12], 0 }
   0x4   :  { %19 = vsyncpa [#allocation4], 0  ;;  %s37_s15 = sshll.u32 %s3164_s1, 4  ;;  %s2451_s16 = smov [#allocation5]   ;;  %s38_s15 = int_to_ptr.hbm [resolvable:$true] %s37_s15 }
   0x5   :  { %s39_s17 = sshll.u32 %s2451_s16, 4  ;;  %s65_s20 = sshll.u32 %s3167_s4, 4  ;;  %s40_s17 = int_to_ptr.vmem [resolvable:$true] %s39_s17  ;;  %s66_s20 = int_to_ptr.hbm [resolvable:$true] %s65_s20 }
   0x6   :  { %s2452_s21 = smov 128   ;;  %s2453_s22 = smov 8  }
   0x7   :  { %45 = dma.hbm_to_vmem [thread:$0]  %s38_s15, 1024, %s40_s17, [#allocation6], %s2452_s21, %s2452_s21, %s2453_s22  }
   0x8   :  { %s2454_s23 = smov [#allocation8]   ;;  %s24_s1 = sshll.u32 %s3163_s0, 4  ;;  %s25_s1 = int_to_ptr.hbm [resolvable:$true] %s24_s1 }
   0x9   :  { %s67_s24 = sshll.u32 %s2454_s23, 4  ;;  %s50_s28 = sshll.u32 %s3165_s2, 4  ;;  %s68_s24 = int_to_ptr.vmem [resolvable:$true] %s67_s24  ;;  %s51_s28 = int_to_ptr.hbm [resolvable:$true] %s50_s28 }
   0xa   :  { %73 = dma.hbm_to_vmem [thread:$0]  %s66_s20, 1024, %s68_s24, [#allocation9], %s2452_s21, %s2452_s21, %s2453_s22  }
   0xb   :  { %s2455_s29 = smov [#allocation2]   ;;  %s2456_s11 = smov [#allocation7]  }
   0xc   :  { %s26_s30 = sshll.u32 %s2455_s29, 4  ;;  %s52_s0 = sshll.u32 %s2456_s11, 4  ;;  %s27_s30 = int_to_ptr.vmem [resolvable:$true] %s26_s30  ;;  %s53_s0 = int_to_ptr.vmem [resolvable:$true] %s52_s0 }
   0xd   :  { %32 = dma.hbm_to_vmem [thread:$0]  %s25_s1, 256, %s27_s30, [#allocation3], %s2452_s21, %s2452_s21, %s2453_s22  }
   0xe   :  { %s80_s14 = sshll.u32 %s3169_s6, 4  ;;  %s95_s16 = sshll.u32 %s3171_s8, 4  ;;  %s81_s14 = int_to_ptr.hbm [resolvable:$true] %s80_s14  ;;  %s96_s16 = int_to_ptr.hbm [resolvable:$true] %s95_s16 }
   0xf   :  { %58 = dma.hbm_to_vmem [thread:$0]  %s51_s28, 512, %s53_s0, [#allocation6], %s2452_s21, %s2452_s21, %s2453_s22  }
  0x10   :  { %s2457_s17 = smov [#allocation10]   ;;  %s2458_s19 = smov [#allocation11]  }
  0x11   :  { %s82_s18 = sshll.u32 %s2457_s17, 4  ;;  %s97_s6 = sshll.u32 %s2458_s19, 4  ;;  %s83_s18 = int_to_ptr.vmem [resolvable:$true] %s82_s18  ;;  %s98_s6 = int_to_ptr.vmem [resolvable:$true] %s97_s6 }
  0x12   :  { %88 = dma.hbm_to_vmem [thread:$0]  %s81_s14, 1024, %s83_s18, [#allocation9], %s2452_s21, %s2452_s21, %s2453_s22  }
  0x13   :  { %103 = dma.hbm_to_vmem [thread:$0]  %s96_s16, 512, %s98_s6, [#allocation12], %s2452_s21, %s2452_s21, %s2453_s22  }
  0x14   :  { %2441 = dma.done.wait [#allocation3], 256  }
  0x15   :  { %2442 = vsyncadd [#allocation3], 4294967040 }
  0x16   :  { %2443 = dma.done.wait [#allocation6], 1536  }
  0x17   :  { %2444 = vsyncadd [#allocation6], 4294965760 }
  0x18   :  { %2445 = dma.done.wait [#allocation9], 2048  }
  0x19   :  { %2446 = vsyncadd [#allocation9], 4294965248 }
  0x1a   :  { %2447 = dma.done.wait [#allocation12], 512  }
  0x1b   :  { %2448 = vsyncadd [#allocation12], 4294966784  ;;  %v139_v0 = vld [vmem:[#allocation5 + $0x38] sm:$0xff]  ;;  %v138_v1 = vld [vmem:[#allocation5 + $0x30] sm:$0xff]  ;;  %v2459_v11 = vmov 0.0   ;;  %vm144_vm0 = vcmask 523264   ;;  %v221_v22 = vlaneseq }
  0x1c   :  { %159 = vmatpush.msra.mxu0 %v139_v0  ;;  %v137_v2 = vld [vmem:[#allocation5 + $0x28] sm:$0xff]  ;;  %v2554_v3 = vld [vmem:[#allocation7 + $0x18] sm:$0xff]  ;;  %v2556_v4 = vld [vmem:[#allocation7 + $0x10] sm:$0xff]  ;;  %s2460_s23 = smov 64   ;;  %s2461_s24 = smov 32   ;;  %vm196_vm8 = vcmask 261120  }
  0x1d   :  { %212 = vmatpush.msra.mxu1 %v2554_v3  ;;  %v136_v5 = vld [vmem:[#allocation5 + $0x20] sm:$0xff]  ;;  %v2559_v6 = vld [vmem:[#allocation7 + $0x8] sm:$0xff]  ;;  %v135_v7 = vld [vmem:[#allocation5 + $0x18] sm:$0xff]  ;;  %v222_v24 = vand.u32 127, %v221_v22  ;;  %s1965_s14 = sshll.u32 %s3173_s10, 4  ;;  %s1966_s14 = int_to_ptr.hbm [resolvable:$true] %s1965_s14 }
  0x1e   :  { %160 = vmatpush.msra.mxu0 %v138_v1  ;;  %v2562_v8 = vld [vmem:[#allocation7] sm:$0xff]  ;;  %v134_v9 = vld [vmem:[#allocation5 + $0x10] sm:$0xff]  ;;  %v133_v10 = vld [vmem:[#allocation5 + $0x8] sm:$0xff] }
  0x1f   :  { %213 = vmatpush.msra.mxu1 %v2556_v4  ;;  %v132_v12 = vld [vmem:[#allocation5] sm:$0xff]  ;;  %v130_v13 = vld [vmem:[#allocation2] sm:$0xff]  ;;  %vm243_vm1 = vcmp.ge.s32.totalorder %v222_v24, 64  ;;  %vm244_vm2 = vcmp.lt.s32.totalorder %v222_v24, 96  ;;  %v2589_v43 = vld [vmem:[#allocation8 + $0x38] sm:$0xff] }
  0x20   :  { %161 = vmatpush.msra.mxu0 %v137_v2  ;;  %v2044_v14 = vld [vmem:[%s3166_s3] ss:$0 sm:$0xff]  ;;  %vm2577_vm5 = vmand %vm243_vm1, %vm244_vm2  ;;  %283 = vmatpush.msra.mxu2 %v2589_v43  ;;  %v2595_v45 = vld [vmem:[#allocation8 + $0x28] sm:$0xff] }
  0x21   :  { %214 = vmatpush.msra.mxu1 %v2559_v6  ;;  %v2591_v44 = vld [vmem:[#allocation8 + $0x30] sm:$0xff]  ;;  %v2599_v46 = vld [vmem:[#allocation8 + $0x20] sm:$0xff]  ;;  %v2603_v47 = vld [vmem:[#allocation8 + $0x18] sm:$0xff] }
  0x22   :  { %162 = vmatpush.msra.mxu0 %v136_v5  ;;  %284 = vmatpush.msra.mxu2 %v2591_v44  ;;  %v2607_v48 = vld [vmem:[#allocation8 + $0x10] sm:$0xff]  ;;  %v2611_v49 = vld [vmem:[#allocation8 + $0x8] sm:$0xff]  ;;  %v2618_v52 = vld [vmem:[#allocation8] sm:$0xff] }
  0x23   :  { %215 = vmatpush.msra.mxu1 %v2562_v8  ;;  %v2637_v58 = vld [vmem:[%s3168_s5] ss:$0 sm:$0xff] }
  0x24   :  { %163 = vmatpush.msra.mxu0 %v135_v7  ;;  %216 = vmatmul.f32.vlgmr.msra.gmra.mxu1 %v2459_v11 }
  0x25   :  { %416 = vmatpush.msrb.mxu1 %v2554_v3  ;;  %285 = vmatpush.msra.mxu2 %v2595_v45 }
  0x26   :  { %164 = vmatpush.msra.mxu0 %v134_v9 }
  0x27   :  { %417 = vmatpush.msrb.mxu1 %v2556_v4  ;;  %286 = vmatpush.msra.mxu2 %v2599_v46 }
  0x28   :  { %165 = vmatpush.msra.mxu0 %v133_v10 }
  0x29   :  { %418 = vmatpush.msrb.mxu1 %v2559_v6  ;;  %287 = vmatpush.msra.mxu2 %v2603_v47 }
  0x2a   :  { %166 = vmatpush.msra.mxu0 %v132_v12 }
  0x2b   :  { %1981 = vmatmul.msk.f32.vlgmr.msra.gmra.mxu0 %vm144_vm0, %v130_v13  ;;  %419 = vmatpush.msrb.mxu1 %v2562_v8 }
  0x2c   :  { %490 = vmatpush.msrb.mxu0 %v2589_v43  ;;  %288 = vmatpush.msra.mxu2 %v2607_v48 }
  0x2e   :  { %491 = vmatpush.msrb.mxu0 %v2591_v44  ;;  %289 = vmatpush.msra.mxu2 %v2611_v49 }
  0x30   :  { %492 = vmatpush.msrb.mxu0 %v2595_v45  ;;  %290 = vmatpush.msra.mxu2 %v2618_v52 }
  0x32   :  { %493 = vmatpush.msrb.mxu0 %v2599_v46  ;;  %627 = vmatpush.msrb.mxu2 %v2554_v3 }
  0x34   :  { %494 = vmatpush.msrb.mxu0 %v2603_v47  ;;  %628 = vmatpush.msrb.mxu2 %v2556_v4 }
  0x36   :  { %495 = vmatpush.msrb.mxu0 %v2607_v48  ;;  %629 = vmatpush.msrb.mxu2 %v2559_v6 }
  0x38   :  { %496 = vmatpush.msrb.mxu0 %v2611_v49  ;;  %630 = vmatpush.msrb.mxu2 %v2562_v8 }
  0x3a   :  { %497 = vmatpush.msrb.mxu0 %v2618_v52 }
  0x3c   :  { %1049 = vmatpush.msra.mxu0 %v2554_v3 }
  0x3e   :  { %1050 = vmatpush.msra.mxu0 %v2556_v4 }
  0x40   :  { %1051 = vmatpush.msra.mxu0 %v2559_v6 }
  0x42   :  { %1052 = vmatpush.msra.mxu0 %v2562_v8 }
  0xa1   :  { %v217_v16 = vpop.f32.mrf.mxu1 }
  0xa8   :  { %v168_v15 = vpop.f32.mrf.mxu0 }
  0xa9   :  { %v2574_v17 = vadd.f32 %v2044_v14, %v168_v15 }
  0xab   :  { %v220_v18 = vadd.f32 %v217_v16, %v2574_v17 }
  0xad   :  { %v1983_v19 = vmul.f32 -1.442695, %v220_v18 }
  0xaf   :  { %2048 = vpow2.f32 %v1983_v19 }
  0xb5   :  { %v2049_v20 = vpop.eup %2048 }
  0xb6   :  { %v226_v21 = vadd.f32 1.0, %v2049_v20 }
  0xb8   :  { %2050 = vrcp.f32 %v226_v21  ;;  %v238_v27 = vand.u32 2147483648, %v226_v21  ;;  %v236_v29 = vand.u32 2147483647, %v226_v21  ;;  %vm232_vm4 = vweird.f32 %v226_v21 }
  0xb9   :  { %2052 = vtanh.f32 %v220_v18 }
  0xba   :  { %v239_v32 = vor.u32 1.1754944e-38, %v238_v27  ;;  %vm237_vm7 = vcmp.eq.f32.partialorder %v236_v29, 8.507059e+37 }
  0xbe   :  { %v2051_v23 = vpop.eup %2050 }
  0xbf   :  { %v228_v25 = vmul.f32 %v2051_v23, %v226_v21  ;;  %vm233_vm3 = vweird.f32 %v2051_v23  ;;  %v2053_v34 = vpop.eup %2052 }
  0xc0   :  { %vm234_vm6 = vmor %vm232_vm4, %vm233_vm3 }
  0xc1   :  { %v229_v26 = vsub.f32 1.0, %v228_v25 }
  0xc3   :  { %v230_v28 = vmul.f32 %v2051_v23, %v229_v26 }
  0xc5   :  { %v231_v30 = vadd.f32 %v2051_v23, %v230_v28 }
  0xc7   :  { %v235_v33 = vsel %vm234_vm6, %v2051_v23, %v231_v30 }
  0xc8   :  { %v240_v35 = vsel %vm237_vm7, %v239_v32, %v235_v33 }
  0xc9   :  { %v246_v36 = vsel %vm2577_vm5, %v2053_v34, %v240_v35 }
  0xca   :  { %249 = vrot.lane.b32.xlu0 %v246_v36, %s2460_s23  ;;  %v247_v39 = vmul.f32 0.0, %v246_v36 }
 0x13c   :  { %v250_v37 = vpop.permute.xlu0 %249 }
 0x13d   :  { %v252_v38 = vmul.f32 %v250_v37, %v246_v36 }
 0x13f   :  { %254 = vrot.lane.b32.xlu0 %v252_v38, %s2461_s24 }
 0x1b1   :  { %v255_v40 = vpop.permute.xlu0 %254 }
 0x1b2   :  { %v2585_v41 = vadd.f32 %v255_v40, %v247_v39 }
 0x1b4   :  { %2054 = vtanh.f32 %v2585_v41  ;;  %v450_v37 = vrot.slane %v2585_v41, 6 }
 0x1ba   :  { %v2055_v42 = vpop.eup %2054 }
 0x1bb   :  { %260 = vrot.lane.b32.xlu1 %v2055_v42, %s2460_s23 }
 0x22d   :  { %v261_v50 = vpop.permute.xlu1 %260 }
 0x22e   :  { %v263_v51 = vmul.f32 %v261_v50, %v246_v36 }
 0x230   :  { %265 = vrot.lane.b32.xlu1 %v263_v51, %s2461_s24 }
 0x2a2   :  { %v266_v53 = vpop.permute.xlu1 %265 }
 0x2a3   :  { %1988 = vmatmul.msk.f32.vlgmr.msrb.gmra.mxu1 %vm196_vm8, %v266_v53  ;;  %v268_v54 = vsel %vm196_vm8, %v266_v53, 0.0 }
 0x2a4   :  { %1984 = vmatmul.msk.f32.vlgmr.msra.gmra.mxu2 %vm144_vm0, %v268_v54 }
 0x320   :  { %v421_v55 = vpop.f32.mrf.mxu1 }
 0x321   :  { %v425_v56 = vrot.slane %v421_v55, 6 }
 0x323   :  { %v427_v57 = vadd.f32 %v425_v56, %v2574_v17 }
 0x325   :  { %v1989_v59 = vmul.f32 -1.442695, %v427_v57 }
 0x327   :  { %2056 = vpow2.f32 %v1989_v59  ;;  %v292_v60 = vpop.f32.mrf.mxu2 }
 0x328   :  { %v293_v61 = vadd.f32 %v2637_v58, %v292_v60 }
 0x32a   :  { %v1985_v62 = vmul.f32 -1.442695, %v293_v61 }
 0x32c   :  { %2058 = vpow2.f32 %v1985_v62  ;;  %v2663_v62 = vld [vmem:[#allocation10 + $0x30] sm:$0xff] }
 0x32d   :  { %v2057_v63 = vpop.eup %2056 }
 0x32e   :  { %v431_v0 = vadd.f32 1.0, %v2057_v63  ;;  %v2667_v63 = vld [vmem:[#allocation10 + $0x28] sm:$0xff] }
 0x330   :  { %2060 = vrcp.f32 %v431_v0  ;;  %v443_v10 = vand.u32 2147483648, %v431_v0  ;;  %v441_v13 = vand.u32 2147483647, %v431_v0  ;;  %vm437_vm10 = vweird.f32 %v431_v0 }
 0x332   :  { %v2059_v1 = vpop.eup %2058  ;;  %v444_v16 = vor.u32 1.1754944e-38, %v443_v10  ;;  %vm442_vm12 = vcmp.eq.f32.partialorder %v441_v13, 8.507059e+37 }
 0x333   :  { %v298_v2 = vadd.f32 1.0, %v2059_v1  ;;  %v2672_v1 = vld [vmem:[#allocation10 + $0x20] sm:$0xff] }
 0x335   :  { %2062 = vrcp.f32 %v298_v2  ;;  %v310_v23 = vand.u32 2147483648, %v298_v2  ;;  %v308_v25 = vand.u32 2147483647, %v298_v2  ;;  %vm304_vm14 = vweird.f32 %v298_v2 }
 0x336   :  { %v2061_v5 = vpop.eup %2060  ;;  %2064 = vtanh.f32 %v427_v57 }
 0x337   :  { %v433_v7 = vmul.f32 %v2061_v5, %v431_v0  ;;  %vm438_vm9 = vweird.f32 %v2061_v5  ;;  %2066 = vtanh.f32 %v293_v61  ;;  %v311_v28 = vor.u32 1.1754944e-38, %v310_v23  ;;  %v2661_v61 = vld [vmem:[#allocation10 + $0x38] sm:$0xff] }
 0x338   :  { %vm439_vm11 = vmor %vm437_vm10, %vm438_vm9  ;;  %vm309_vm1 = vcmp.eq.f32.partialorder %v308_v25, 8.507059e+37  ;;  %352 = vmatpush.msra.mxu3 %v2661_v61  ;;  %560 = vmatpush.msra.mxu1 %v2661_v61  ;;  %v131_v0 = vld [vmem:[#allocation2 + $0x8] sm:$0xff] }
 0x339   :  { %v434_v9 = vsub.f32 1.0, %v433_v7  ;;  %771 = vmatpush.msra.mxu2 %v2661_v61  ;;  %1982 = vmatmul.msk.f32.gmra.mxu0 %vm144_vm0, %v131_v0  ;;  %v2687_v7 = vld [vmem:[#allocation10 + $0x8] sm:$0xff] }
 0x33a   :  { %353 = vmatpush.msra.mxu3 %v2663_v62  ;;  %561 = vmatpush.msra.mxu1 %v2663_v62 }
 0x33b   :  { %v2063_v11 = vpop.eup %2062  ;;  %v435_v12 = vmul.f32 %v2061_v5, %v434_v9  ;;  %772 = vmatpush.msra.mxu2 %v2663_v62  ;;  %v2697_v9 = vld [vmem:[#allocation10] sm:$0xff] }
 0x33c   :  { %v300_v14 = vmul.f32 %v2063_v11, %v298_v2  ;;  %v2065_v20 = vpop.eup %2064  ;;  %vm305_vm13 = vweird.f32 %v2063_v11  ;;  %354 = vmatpush.msra.mxu3 %v2667_v63  ;;  %v2677_v2 = vld [vmem:[#allocation10 + $0x18] sm:$0xff]  ;;  %562 = vmatpush.msra.mxu1 %v2667_v63 }
 0x33d   :  { %v436_v15 = vadd.f32 %v2061_v5, %v435_v12  ;;  %vm306_vm15 = vmor %vm304_vm14, %vm305_vm13  ;;  %v2067_v30 = vpop.eup %2066  ;;  %773 = vmatpush.msra.mxu2 %v2667_v63 }
 0x33e   :  { %v301_v18 = vsub.f32 1.0, %v300_v14  ;;  %355 = vmatpush.msra.mxu3 %v2672_v1  ;;  %563 = vmatpush.msra.mxu1 %v2672_v1 }
 0x33f   :  { %v440_v19 = vsel %vm439_vm11, %v2061_v5, %v436_v15  ;;  %v2682_v5 = vld [vmem:[#allocation10 + $0x10] sm:$0xff]  ;;  %774 = vmatpush.msra.mxu2 %v2672_v1 }
 0x340   :  { %v445_v21 = vsel %vm442_vm12, %v444_v16, %v440_v19  ;;  %v302_v22 = vmul.f32 %v2063_v11, %v301_v18  ;;  %356 = vmatpush.msra.mxu3 %v2677_v2  ;;  %564 = vmatpush.msra.mxu1 %v2677_v2 }
 0x341   :  { %v448_v24 = vsel %vm2577_vm5, %v2065_v20, %v445_v21  ;;  %775 = vmatpush.msra.mxu2 %v2677_v2 }
 0x342   :  { %454 = vrot.lane.b32.xlu2 %v448_v24, %s2460_s23  ;;  %v303_v26 = vadd.f32 %v2063_v11, %v302_v22  ;;  %v452_v38 = vmul.f32 %v450_v37, %v448_v24  ;;  %357 = vmatpush.msra.mxu3 %v2682_v5 }
 0x343   :  { %565 = vmatpush.msra.mxu1 %v2682_v5  ;;  %776 = vmatpush.msra.mxu2 %v2682_v5 }
 0x344   :  { %v307_v27 = vsel %vm306_vm15, %v2063_v11, %v303_v26  ;;  %358 = vmatpush.msra.mxu3 %v2687_v7 }
 0x345   :  { %v312_v29 = vsel %vm309_vm1, %v311_v28, %v307_v27  ;;  %566 = vmatpush.msra.mxu1 %v2687_v7  ;;  %777 = vmatpush.msra.mxu2 %v2687_v7 }
 0x346   :  { %v315_v32 = vsel %vm2577_vm5, %v2067_v30, %v312_v29  ;;  %359 = vmatpush.msra.mxu3 %v2697_v9 }
 0x347   :  { %v316_v42 = vmul.f32 0.0, %v315_v32  ;;  %567 = vmatpush.msra.mxu1 %v2697_v9  ;;  %778 = vmatpush.msra.mxu2 %v2697_v9 }
 0x348   :  { %701 = vmatpush.msrb.mxu3 %v2589_v43 }
 0x349   :  { %912 = vmatpush.msrb.mxu1 %v2589_v43 }
 0x34a   :  { %318 = vrot.lane.b32.xlu2 %v315_v32, %s2460_s23  ;;  %702 = vmatpush.msrb.mxu3 %v2591_v44 }
 0x34b   :  { %913 = vmatpush.msrb.mxu1 %v2591_v44 }
 0x34c   :  { %703 = vmatpush.msrb.mxu3 %v2595_v45 }
 0x34d   :  { %914 = vmatpush.msrb.mxu1 %v2595_v45 }
 0x34e   :  { %704 = vmatpush.msrb.mxu3 %v2599_v46 }
 0x34f   :  { %915 = vmatpush.msrb.mxu1 %v2599_v46 }
 0x350   :  { %705 = vmatpush.msrb.mxu3 %v2603_v47 }
 0x351   :  { %916 = vmatpush.msrb.mxu1 %v2603_v47 }
 0x352   :  { %706 = vmatpush.msrb.mxu3 %v2607_v48 }
 0x353   :  { %917 = vmatpush.msrb.mxu1 %v2607_v48 }
 0x354   :  { %707 = vmatpush.msrb.mxu3 %v2611_v49 }
 0x355   :  { %918 = vmatpush.msrb.mxu1 %v2611_v49 }
 0x356   :  { %708 = vmatpush.msrb.mxu3 %v2618_v52 }
 0x357   :  { %919 = vmatpush.msrb.mxu1 %v2618_v52 }
 0x39c   :  { %v455_v33 = vpop.permute.xlu2 %454 }
 0x39d   :  { %v457_v34 = vmul.f32 %v455_v33, %v448_v24 }
 0x39f   :  { %459 = vrot.lane.b32.xlu0 %v457_v34, %s2461_s24 }
 0x3a4   :  { %v319_v35 = vpop.permute.xlu2 %318 }
 0x3a5   :  { %v321_v36 = vmul.f32 %v319_v35, %v315_v32 }
 0x3a7   :  { %323 = vrot.lane.b32.xlu1 %v321_v36, %s2461_s24 }
 0x411   :  { %v460_v39 = vpop.permute.xlu0 %459 }
 0x412   :  { %v2649_v40 = vadd.f32 %v460_v39, %v452_v38 }
 0x414   :  { %2068 = vtanh.f32 %v2649_v40 }
 0x419   :  { %v324_v50 = vpop.permute.xlu1 %323 }
 0x41a   :  { %v2069_v51 = vpop.eup %2068  ;;  %v2652_v53 = vadd.f32 %v324_v50, %v316_v42 }
 0x41b   :  { %465 = vrot.lane.b32.xlu2 %v2069_v51, %s2460_s23 }
 0x41c   :  { %2070 = vtanh.f32 %v2652_v53 }
 0x422   :  { %v2071_v54 = vpop.eup %2070 }
 0x423   :  { %329 = vrot.lane.b32.xlu0 %v2071_v54, %s2460_s23 }
 0x475   :  { %v466_v55 = vpop.permute.xlu2 %465 }
 0x476   :  { %v468_v41 = vmul.f32 %v466_v55, %v448_v24  ;;  %v2744_v24 = vpop.f32.mrf.mxu0 }
 0x478   :  { %v610_v56 = vrot.slane %v468_v41, 2  ;;  %470 = vrot.lane.b32.xlu2 %v468_v41, %s2461_s24 }
 0x47a   :  { %611 = vrot.lane.b32.xlu1 %v610_v56, %s2461_s24 }
 0x495   :  { %v330_v57 = vpop.permute.xlu0 %329 }
 0x496   :  { %v332_v59 = vmul.f32 %v330_v57, %v315_v32  ;;  %v2749_v32 = vld [vmem:[%s3170_s7] ss:$0 sm:$0xff] }
 0x498   :  { %v473_v60 = vrot.slane %v332_v59, 6  ;;  %334 = vrot.lane.b32.xlu1 %v332_v59, %s2461_s24 }
 0x49a   :  { %474 = vrot.lane.b32.xlu0 %v473_v60, %s2460_s23 }
 0x4d2   :  { %v471_v13 = vpop.permute.xlu2 %470 }
 0x4ec   :  { %v612_v10 = vpop.permute.xlu1 %611 }
 0x4ed   :  { %1994 = vmatmul.msk.f32.vlgmr.msrb.gmra.mxu2 %vm196_vm8, %v612_v10 }
 0x4ee   :  { %838 = vmatpush.msrb.mxu2 %v2554_v3 }
 0x4f0   :  { %839 = vmatpush.msrb.mxu2 %v2556_v4 }
 0x4f2   :  { %840 = vmatpush.msrb.mxu2 %v2559_v6 }
 0x4f4   :  { %841 = vmatpush.msrb.mxu2 %v2562_v8 }
 0x50a   :  { %v335_v11 = vpop.permute.xlu1 %334 }
 0x50b   :  { %v337_v12 = vsel %vm196_vm8, %v335_v11, 0.0 }
 0x50c   :  { %1986 = vmatmul.msk.f32.vlgmr.msra.gmra.mxu3 %vm144_vm0, %v337_v12  ;;  %v475_v14 = vpop.permute.xlu0 %474 }
 0x50d   :  { %v477_v15 = vsel %vm196_vm8, %v471_v13, %v475_v14  ;;  %982 = vmatpush.msra.mxu3 %v2661_v61 }
 0x50e   :  { %v479_v16 = vrot.slane %v477_v15, 2 }
 0x50f   :  { %983 = vmatpush.msra.mxu3 %v2663_v62 }
 0x510   :  { %1990 = vmatmul.msk.f32.vlgmr.msrb.gmra.mxu0 %vm144_vm0, %v479_v16 }
 0x511   :  { %984 = vmatpush.msra.mxu3 %v2667_v63  ;;  %1188 = vmatpush.msrb.mxu0 %v2661_v61 }
 0x513   :  { %985 = vmatpush.msra.mxu3 %v2672_v1  ;;  %1189 = vmatpush.msrb.mxu0 %v2663_v62 }
 0x515   :  { %986 = vmatpush.msra.mxu3 %v2677_v2  ;;  %1190 = vmatpush.msrb.mxu0 %v2667_v63 }
 0x517   :  { %987 = vmatpush.msra.mxu3 %v2682_v5  ;;  %1191 = vmatpush.msrb.mxu0 %v2672_v1 }
 0x519   :  { %988 = vmatpush.msra.mxu3 %v2687_v7  ;;  %1192 = vmatpush.msrb.mxu0 %v2677_v2 }
 0x51b   :  { %989 = vmatpush.msra.mxu3 %v2697_v9  ;;  %1193 = vmatpush.msrb.mxu0 %v2682_v5 }
 0x51d   :  { %1194 = vmatpush.msrb.mxu0 %v2687_v7 }
 0x51f   :  { %1195 = vmatpush.msrb.mxu0 %v2697_v9 }
 0x570   :  { %v632_v18 = vpop.f32.mrf.mxu2 }
 0x571   :  { %v636_v19 = vrot.slane %v632_v18, 4 }
 0x573   :  { %v638_v20 = vadd.f32 %v636_v19, %v2574_v17 }
 0x575   :  { %v1995_v21 = vmul.f32 -1.442695, %v638_v20 }
 0x577   :  { %2072 = vpow2.f32 %v1995_v21 }
 0x57d   :  { %v2073_v22 = vpop.eup %2072 }
 0x57e   :  { %v642_v23 = vadd.f32 1.0, %v2073_v22 }
 0x580   :  { %2074 = vrcp.f32 %v642_v23  ;;  %v654_v28 = vand.u32 2147483648, %v642_v23  ;;  %v652_v30 = vand.u32 2147483647, %v642_v23  ;;  %vm648_vm3 = vweird.f32 %v642_v23 }
 0x581   :  { %2076 = vtanh.f32 %v638_v20 }
 0x582   :  { %v655_v36 = vor.u32 1.1754944e-38, %v654_v28  ;;  %vm653_vm6 = vcmp.eq.f32.partialorder %v652_v30, 8.507059e+37 }
 0x586   :  { %v2075_v25 = vpop.eup %2074 }
 0x587   :  { %v644_v26 = vmul.f32 %v2075_v25, %v642_v23  ;;  %vm649_vm2 = vweird.f32 %v2075_v25  ;;  %v2077_v39 = vpop.eup %2076 }
 0x588   :  { %vm650_vm4 = vmor %vm648_vm3, %vm649_vm2 }
 0x589   :  { %v645_v27 = vsub.f32 1.0, %v644_v26 }
 0x58b   :  { %v646_v29 = vmul.f32 %v2075_v25, %v645_v27 }
 0x58d   :  { %v499_v33 = vpop.f32.mrf.mxu0  ;;  %v647_v34 = vadd.f32 %v2075_v25, %v646_v29 }
 0x58e   :  { %v500_v35 = vadd.f32 %v2637_v58, %v499_v33 }
 0x58f   :  { %v361_v37 = vpop.f32.mrf.mxu3  ;;  %v651_v38 = vsel %vm650_vm4, %v2075_v25, %v647_v34 }
 0x590   :  { %v1991_v42 = vmul.f32 -1.442695, %v500_v35  ;;  %v362_v50 = vadd.f32 %v2749_v32, %v361_v37  ;;  %v656_v51 = vsel %vm653_vm6, %v655_v36, %v651_v38 }
 0x591   :  { %v2755_v54 = vsel %vm2577_vm5, %v2077_v39, %v656_v51 }
 0x592   :  { %2078 = vpow2.f32 %v1991_v42  ;;  %v1987_v55 = vmul.f32 -1.442695, %v362_v50  ;;  %665 = vrot.lane.b32.xlu0 %v2755_v54, %s2460_s23 }
 0x594   :  { %2080 = vpow2.f32 %v1987_v55 }
 0x598   :  { %v2079_v41 = vpop.eup %2078 }
 0x599   :  { %v505_v56 = vadd.f32 1.0, %v2079_v41 }
 0x59a   :  { %v2081_v57 = vpop.eup %2080 }
 0x59b   :  { %2082 = vrcp.f32 %v505_v56  ;;  %v367_v59 = vadd.f32 1.0, %v2081_v57  ;;  %v517_v13 = vand.u32 2147483648, %v505_v56  ;;  %v515_v15 = vand.u32 2147483647, %v505_v56 }
 0x59c   :  { %vm511_vm9 = vweird.f32 %v505_v56  ;;  %v661_v57 = vrot.slane %v2649_v40, 6 }
 0x59d   :  { %2084 = vrcp.f32 %v367_v59  ;;  %v379_v18 = vand.u32 2147483648, %v367_v59  ;;  %v377_v21 = vand.u32 2147483647, %v367_v59  ;;  %v518_v22 = vor.u32 1.1754944e-38, %v517_v13 }
 0x59e   :  { %2086 = vtanh.f32 %v500_v35  ;;  %vm516_vm12 = vcmp.eq.f32.partialorder %v515_v15, 8.507059e+37  ;;  %vm373_vm13 = vweird.f32 %v367_v59 }
 0x59f   :  { %2088 = vtanh.f32 %v362_v50  ;;  %v380_v28 = vor.u32 1.1754944e-38, %v379_v18  ;;  %vm378_vm15 = vcmp.eq.f32.partialorder %v377_v21, 8.507059e+37 }
 0x5a1   :  { %v2083_v60 = vpop.eup %2082 }
 0x5a2   :  { %v507_v0 = vmul.f32 %v2083_v60, %v505_v56  ;;  %vm512_vm7 = vweird.f32 %v2083_v60 }
 0x5a3   :  { %v2085_v10 = vpop.eup %2084  ;;  %vm513_vm11 = vmor %vm511_vm9, %vm512_vm7 }
 0x5a4   :  { %v508_v11 = vsub.f32 1.0, %v507_v0  ;;  %v369_v12 = vmul.f32 %v2085_v10, %v367_v59  ;;  %vm374_vm10 = vweird.f32 %v2085_v10  ;;  %v2087_v26 = vpop.eup %2086  ;;  %v663_v59 = vmul.f32 %v661_v57, %v2755_v54 }
 0x5a5   :  { %vm375_vm14 = vmor %vm373_vm13, %vm374_vm10  ;;  %v2089_v33 = vpop.eup %2088 }
 0x5a6   :  { %v509_v14 = vmul.f32 %v2083_v60, %v508_v11  ;;  %v370_v16 = vsub.f32 1.0, %v369_v12 }
 0x5a8   :  { %v510_v19 = vadd.f32 %v2083_v60, %v509_v14  ;;  %v371_v20 = vmul.f32 %v2085_v10, %v370_v16 }
 0x5aa   :  { %v514_v23 = vsel %vm513_vm11, %v2083_v60, %v510_v19  ;;  %v372_v25 = vadd.f32 %v2085_v10, %v371_v20 }
 0x5ab   :  { %v519_v27 = vsel %vm516_vm12, %v518_v22, %v514_v23 }
 0x5ac   :  { %v522_v29 = vsel %vm2577_vm5, %v2087_v26, %v519_v27  ;;  %v376_v30 = vsel %vm375_vm14, %v2085_v10, %v372_v25 }
 0x5ad   :  { %525 = vrot.lane.b32.xlu2 %v522_v29, %s2460_s23  ;;  %v381_v34 = vsel %vm378_vm15, %v380_v28, %v376_v30  ;;  %v523_v51 = vmul.f32 %v522_v29, %v2652_v53 }
 0x5ae   :  { %v384_v35 = vsel %vm2577_vm5, %v2089_v33, %v381_v34 }
 0x5af   :  { %387 = vrot.lane.b32.xlu1 %v384_v35, %s2460_s23  ;;  %v385_v53 = vmul.f32 0.0, %v384_v35 }
 0x604   :  { %v666_v36 = vpop.permute.xlu0 %665 }
 0x605   :  { %v668_v37 = vmul.f32 %v666_v36, %v2755_v54 }
 0x607   :  { %v526_v38 = vpop.permute.xlu2 %525  ;;  %670 = vrot.lane.b32.xlu0 %v668_v37, %s2461_s24 }
 0x608   :  { %v528_v39 = vmul.f32 %v526_v38, %v522_v29 }
 0x60a   :  { %530 = vrot.lane.b32.xlu2 %v528_v39, %s2461_s24 }
 0x621   :  { %v388_v42 = vpop.permute.xlu1 %387 }
 0x622   :  { %v390_v50 = vmul.f32 %v388_v42, %v384_v35 }
 0x624   :  { %392 = vrot.lane.b32.xlu1 %v390_v50, %s2461_s24 }
 0x664   :  { %v531_v55 = vpop.permute.xlu2 %530 }
 0x665   :  { %v2770_v41 = vadd.f32 %v531_v55, %v523_v51 }
 0x667   :  { %2090 = vtanh.f32 %v2770_v41 }
 0x66d   :  { %v2091_v56 = vpop.eup %2090 }
 0x66e   :  { %536 = vrot.lane.b32.xlu2 %v2091_v56, %s2460_s23 }
 0x679   :  { %v671_v60 = vpop.permute.xlu0 %670 }
 0x67a   :  { %v2776_v0 = vadd.f32 %v671_v60, %v663_v59 }
 0x67c   :  { %2092 = vtanh.f32 %v2776_v0 }
 0x682   :  { %v2093_v10 = vpop.eup %2092 }
 0x683   :  { %676 = vrot.lane.b32.xlu0 %v2093_v10, %s2460_s23 }
 0x696   :  { %v393_v11 = vpop.permute.xlu1 %392 }
 0x697   :  { %v2780_v12 = vadd.f32 %v393_v11, %v385_v53 }
 0x699   :  { %2094 = vtanh.f32 %v2780_v12 }
 0x69f   :  { %v2095_v13 = vpop.eup %2094 }
 0x6a0   :  { %398 = vrot.lane.b32.xlu1 %v2095_v13, %s2460_s23 }
 0x6c8   :  { %v537_v40 = vpop.permute.xlu2 %536 }
 0x6c9   :  { %v539_v14 = vmul.f32 %v537_v40, %v522_v29 }
 0x6cb   :  { %v684_v15 = vrot.slane %v539_v14, 4  ;;  %541 = vrot.lane.b32.xlu1 %v539_v14, %s2461_s24 }
 0x6cd   :  { %685 = vrot.lane.b32.xlu0 %v684_v15, %s2460_s23 }
 0x6f5   :  { %v677_v16 = vpop.permute.xlu0 %676 }
 0x6f6   :  { %v2787_v18 = vmul.f32 %v677_v16, %v2755_v54 }
 0x6f8   :  { %681 = vrot.lane.b32.xlu2 %v2787_v18, %s2461_s24 }
 0x712   :  { %v399_v19 = vpop.permute.xlu1 %398 }
 0x713   :  { %v2791_v20 = vmul.f32 %v399_v19, %v384_v35 }
 0x715   :  { %545 = vrot.lane.b32.xlu2 %v2791_v20, %s2460_s23 }
 0x73d   :  { %v542_v54 = vpop.permute.xlu1 %541 }
 0x73f   :  { %v686_v21 = vpop.permute.xlu0 %685 }
 0x752   :  { %v682_v22 = vpop.permute.xlu2 %681 }
 0x753   :  { %v688_v23 = vsel %vm196_vm8, %v682_v22, %v686_v21 }
 0x754   :  { %v690_v25 = vrot.slane %v688_v23, 4 }
 0x756   :  { %1996 = vmatmul.msk.f32.vlgmr.msrb.gmra.mxu3 %vm144_vm0, %v690_v25 }
 0x757   :  { %1326 = vmatpush.msrb.mxu3 %v2589_v43 }
 0x759   :  { %1327 = vmatpush.msrb.mxu3 %v2591_v44 }
 0x75b   :  { %1328 = vmatpush.msrb.mxu3 %v2595_v45 }
 0x75d   :  { %1329 = vmatpush.msrb.mxu3 %v2599_v46 }
 0x75f   :  { %1330 = vmatpush.msrb.mxu3 %v2603_v47 }
 0x761   :  { %1331 = vmatpush.msrb.mxu3 %v2607_v48 }
 0x763   :  { %1332 = vmatpush.msrb.mxu3 %v2611_v49 }
 0x765   :  { %1333 = vmatpush.msrb.mxu3 %v2618_v52 }
 0x76f   :  { %v546_v26 = vpop.permute.xlu2 %545 }
 0x770   :  { %v548_v27 = vsel %vm196_vm8, %v542_v54, %v546_v26 }
 0x771   :  { %1992 = vmatmul.msk.f32.vlgmr.msra.gmra.mxu1 %vm144_vm0, %v548_v27 }
 0x772   :  { %1252 = vmatpush.msra.mxu1 %v2554_v3 }
 0x774   :  { %1253 = vmatpush.msra.mxu1 %v2556_v4 }
 0x776   :  { %1254 = vmatpush.msra.mxu1 %v2559_v6 }
 0x778   :  { %1255 = vmatpush.msra.mxu1 %v2562_v8 }
 0x7d9   :  { %v710_v28 = vpop.f32.mrf.mxu3 }
 0x7da   :  { %v711_v29 = vadd.f32 %v2637_v58, %v710_v28 }
 0x7dc   :  { %v1997_v30 = vmul.f32 -1.442695, %v711_v29 }
 0x7de   :  { %2096 = vpow2.f32 %v1997_v30 }
 0x7e4   :  { %v2097_v33 = vpop.eup %2096 }
 0x7e5   :  { %v716_v34 = vadd.f32 1.0, %v2097_v33 }
 0x7e7   :  { %2098 = vrcp.f32 %v716_v34  ;;  %v728_v50 = vand.u32 2147483648, %v716_v34  ;;  %v726_v55 = vand.u32 2147483647, %v716_v34  ;;  %vm722_vm2 = vweird.f32 %v716_v34 }
 0x7e8   :  { %2100 = vtanh.f32 %v711_v29 }
 0x7e9   :  { %v729_v57 = vor.u32 1.1754944e-38, %v728_v50  ;;  %vm727_vm4 = vcmp.eq.f32.partialorder %v726_v55, 8.507059e+37 }
 0x7ed   :  { %v2099_v35 = vpop.eup %2098 }
 0x7ee   :  { %v569_v36 = vpop.f32.mrf.mxu1  ;;  %v718_v37 = vmul.f32 %v2099_v35, %v716_v34  ;;  %vm723_vm1 = vweird.f32 %v2099_v35  ;;  %v2101_v60 = vpop.eup %2100 }
 0x7ef   :  { %v570_v38 = vadd.f32 %v2749_v32, %v569_v36  ;;  %vm724_vm3 = vmor %vm722_vm2, %vm723_vm1 }
 0x7f0   :  { %v719_v39 = vsub.f32 1.0, %v718_v37 }
 0x7f1   :  { %v1993_v42 = vmul.f32 -1.442695, %v570_v38 }
 0x7f2   :  { %v720_v51 = vmul.f32 %v2099_v35, %v719_v39 }
 0x7f3   :  { %2102 = vpow2.f32 %v1993_v42 }
 0x7f4   :  { %v721_v56 = vadd.f32 %v2099_v35, %v720_v51 }
 0x7f6   :  { %v725_v59 = vsel %vm724_vm3, %v2099_v35, %v721_v56 }
 0x7f7   :  { %v730_v10 = vsel %vm727_vm4, %v729_v57, %v725_v59 }
 0x7f8   :  { %v733_v53 = vsel %vm2577_vm5, %v2101_v60, %v730_v10 }
 0x7f9   :  { %v2103_v11 = vpop.eup %2102  ;;  %736 = vrot.lane.b32.xlu1 %v733_v53, %s2460_s23  ;;  %v734_v37 = vmul.f32 %v733_v53, %v2770_v41 }
 0x7fa   :  { %v575_v13 = vadd.f32 1.0, %v2103_v11 }
 0x7fc   :  { %2104 = vrcp.f32 %v575_v13  ;;  %v587_v16 = vand.u32 2147483648, %v575_v13  ;;  %v585_v21 = vand.u32 2147483647, %v575_v13  ;;  %vm581_vm7 = vweird.f32 %v575_v13 }
 0x7fd   :  { %2106 = vtanh.f32 %v570_v38 }
 0x7fe   :  { %v588_v23 = vor.u32 1.1754944e-38, %v587_v16  ;;  %vm586_vm10 = vcmp.eq.f32.partialorder %v585_v21, 8.507059e+37 }
 0x802   :  { %v2105_v40 = vpop.eup %2104 }
 0x803   :  { %v577_v14 = vmul.f32 %v2105_v40, %v575_v13  ;;  %vm582_vm6 = vweird.f32 %v2105_v40  ;;  %v2107_v54 = vpop.eup %2106 }
 0x804   :  { %vm583_vm9 = vmor %vm581_vm7, %vm582_vm6 }
 0x805   :  { %v578_v15 = vsub.f32 1.0, %v577_v14 }
 0x807   :  { %v579_v19 = vmul.f32 %v2105_v40, %v578_v15 }
 0x809   :  { %v580_v22 = vadd.f32 %v2105_v40, %v579_v19 }
 0x80b   :  { %v584_v25 = vsel %vm583_vm9, %v2105_v40, %v580_v22 }
 0x80c   :  { %v589_v26 = vsel %vm586_vm10, %v588_v23, %v584_v25 }
 0x80d   :  { %v592_v27 = vsel %vm2577_vm5, %v2107_v54, %v589_v26 }
 0x80e   :  { %595 = vrot.lane.b32.xlu0 %v592_v27, %s2460_s23  ;;  %v593_v34 = vmul.f32 %v592_v27, %v2780_v12  ;;  %v821_v12 = vrot.slane %v2787_v18, 4 }
 0x86b   :  { %v737_v28 = vpop.permute.xlu1 %736 }
 0x86c   :  { %v739_v29 = vmul.f32 %v737_v28, %v733_v53 }
 0x86e   :  { %741 = vrot.lane.b32.xlu0 %v739_v29, %s2461_s24  ;;  %v872_v29 = vrot.slane %v2776_v0, 6 }
 0x880   :  { %v596_v30 = vpop.permute.xlu0 %595 }
 0x881   :  { %v598_v33 = vmul.f32 %v596_v30, %v592_v27 }
 0x883   :  { %600 = vrot.lane.b32.xlu2 %v598_v33, %s2461_s24 }
 0x8dd   :  { %v601_v35 = vpop.permute.xlu2 %600 }
 0x8de   :  { %v2822_v36 = vadd.f32 %v601_v35, %v593_v34 }
 0x8e0   :  { %2108 = vtanh.f32 %v2822_v36  ;;  %v742_v38 = vpop.permute.xlu0 %741 }
 0x8e1   :  { %v2826_v39 = vadd.f32 %v742_v38, %v734_v37 }
 0x8e3   :  { %2110 = vtanh.f32 %v2826_v39 }
 0x8e6   :  { %v2109_v42 = vpop.eup %2108 }
 0x8e7   :  { %606 = vrot.lane.b32.xlu1 %v2109_v42, %s2460_s23 }
 0x8e9   :  { %v2111_v50 = vpop.eup %2110 }
 0x8ea   :  { %747 = vrot.lane.b32.xlu2 %v2111_v50, %s2460_s23 }
 0x8f2   :  { %822 = vrot.lane.b32.xlu2 %v821_v12, %s2461_s24 }
 0x944   :  { %v748_v51 = vpop.permute.xlu2 %747 }
 0x945   :  { %v750_v55 = vmul.f32 %v748_v51, %v733_v53 }
 0x947   :  { %752 = vrot.lane.b32.xlu0 %v750_v55, %s2461_s24  ;;  %v895_v28 = vrot.slane %v750_v55, 2 }
 0x94c   :  { %v823_v18 = vpop.permute.xlu2 %822 }
 0x959   :  { %v607_v41 = vpop.permute.xlu1 %606 }
 0x95a   :  { %v2834_v56 = vmul.f32 %v607_v41, %v592_v27 }
 0x95c   :  { %756 = vrot.lane.b32.xlu1 %v2834_v56, %s2460_s23 }
 0x9b9   :  { %v753_v57 = vpop.permute.xlu0 %752 }
 0x9ce   :  { %v757_v59 = vpop.permute.xlu1 %756 }
 0x9cf   :  { %v759_v60 = vsel %vm196_vm8, %v753_v57, %v757_v59 }
 0x9d0   :  { %1998 = vmatmul.msk.f32.vlgmr.msra.gmra.mxu2 %vm144_vm0, %v759_v60 }
 0x9d1   :  { %1118 = vmatpush.msra.mxu2 %v2589_v43 }
 0x9d3   :  { %1119 = vmatpush.msra.mxu2 %v2591_v44 }
 0x9d5   :  { %1120 = vmatpush.msra.mxu2 %v2595_v45 }
 0x9d7   :  { %1121 = vmatpush.msra.mxu2 %v2599_v46 }
 0x9d8   :  { %2000 = vmatmul.msk.f32.vlgmr.msrb.gmra.mxu2 %vm196_vm8, %v823_v18 }
 0x9d9   :  { %1122 = vmatpush.msra.mxu2 %v2603_v47 }
 0x9db   :  { %1123 = vmatpush.msra.mxu2 %v2607_v48 }
 0x9dd   :  { %1124 = vmatpush.msra.mxu2 %v2611_v49 }
 0x9df   :  { %1125 = vmatpush.msra.mxu2 %v2618_v52 }
 0x9e1   :  { %1463 = vmatpush.msrb.mxu2 %v2554_v3 }
 0x9e3   :  { %1464 = vmatpush.msrb.mxu2 %v2556_v4 }
 0x9e5   :  { %1465 = vmatpush.msrb.mxu2 %v2559_v6 }
 0x9e7   :  { %1466 = vmatpush.msrb.mxu2 %v2562_v8 }
 0xa53   :  { %v780_v10 = vpop.f32.mrf.mxu2 }
 0xa54   :  { %v781_v37 = vadd.f32 %v2749_v32, %v780_v10 }
 0xa56   :  { %v1999_v38 = vmul.f32 -1.442695, %v781_v37 }
 0xa5b   :  { %v843_v53 = vpop.f32.mrf.mxu2 }
 0xa5c   :  { %v847_v11 = vrot.slane %v843_v53, 2 }
 0xa5e   :  { %v849_v13 = vadd.f32 %v847_v11, %v2574_v17 }
 0xa60   :  { %v2001_v40 = vmul.f32 -1.442695, %v849_v13 }
 0xa62   :  { %2112 = vpow2.f32 %v2001_v40 }
 0xa68   :  { %v2113_v14 = vpop.eup %2112 }
 0xa69   :  { %v853_v15 = vadd.f32 1.0, %v2113_v14 }
 0xa6b   :  { %2114 = vrcp.f32 %v853_v15  ;;  %v865_v3 = vand.u32 2147483648, %v853_v15  ;;  %v863_v6 = vand.u32 2147483647, %v853_v15  ;;  %vm859_vm12 = vweird.f32 %v853_v15 }
 0xa6c   :  { %2116 = vtanh.f32 %v849_v13 }
 0xa6d   :  { %v866_v8 = vor.u32 1.1754944e-38, %v865_v3  ;;  %vm864_vm14 = vcmp.eq.f32.partialorder %v863_v6, 8.507059e+37 }
 0xa71   :  { %v2115_v16 = vpop.eup %2114 }
 0xa72   :  { %v855_v19 = vmul.f32 %v2115_v16, %v853_v15  ;;  %vm860_vm11 = vweird.f32 %v2115_v16  ;;  %v2117_v17 = vpop.eup %2116 }
 0xa73   :  { %vm861_vm13 = vmor %vm859_vm12, %vm860_vm11 }
 0xa74   :  { %v856_v21 = vsub.f32 1.0, %v855_v19 }
 0xa76   :  { %v857_v4 = vmul.f32 %v2115_v16, %v856_v21 }
 0xa78   :  { %v858_v22 = vadd.f32 %v2115_v16, %v857_v4 }
 0xa7a   :  { %v862_v23 = vsel %vm861_vm13, %v2115_v16, %v858_v22 }
 0xa7b   :  { %v867_v25 = vsel %vm864_vm14, %v866_v8, %v862_v23 }
 0xa7c   :  { %v870_v54 = vsel %vm2577_vm5, %v2117_v17, %v867_v25 }
 0xa7d   :  { %876 = vrot.lane.b32.xlu0 %v870_v54, %s2460_s23  ;;  %v874_v30 = vmul.f32 %v872_v29, %v870_v54 }
 0xaef   :  { %v877_v26 = vpop.permute.xlu0 %876 }
 0xaf0   :  { %v879_v27 = vmul.f32 %v877_v26, %v870_v54 }
 0xaf2   :  { %881 = vrot.lane.b32.xlu1 %v879_v27, %s2461_s24 }
 0xafa   :  { %896 = vrot.lane.b32.xlu1 %v895_v28, %s2460_s23 }
 0xb64   :  { %v882_v33 = vpop.permute.xlu1 %881 }
 0xb65   :  { %v2860_v34 = vadd.f32 %v882_v33, %v874_v30 }
 0xb67   :  { %2118 = vtanh.f32 %v2860_v34 }
 0xb68   :  { %2120 = vpow2.f32 %v1999_v38 }
 0xb6d   :  { %v2119_v35 = vpop.eup %2118 }
 0xb6e   :  { %887 = vrot.lane.b32.xlu2 %v2119_v35, %s2460_s23  ;;  %v2121_v42 = vpop.eup %2120 }
 0xb6f   :  { %v786_v50 = vadd.f32 1.0, %v2121_v42 }
 0xb71   :  { %2122 = vrcp.f32 %v786_v50  ;;  %v798_v18 = vand.u32 2147483648, %v786_v50  ;;  %vm792_vm1 = vweird.f32 %v786_v50  ;;  %v796_v53 = vand.u32 2147483647, %v786_v50 }
 0xb72   :  { %2124 = vtanh.f32 %v781_v37 }
 0xb73   :  { %v799_v11 = vor.u32 1.1754944e-38, %v798_v18  ;;  %vm797_vm3 = vcmp.eq.f32.partialorder %v796_v53, 8.507059e+37 }
 0xb77   :  { %v2123_v12 = vpop.eup %2122 }
 0xb78   :  { %v788_v51 = vmul.f32 %v2123_v12, %v786_v50  ;;  %vm793_vm15 = vweird.f32 %v2123_v12  ;;  %v2125_v40 = vpop.eup %2124 }
 0xb79   :  { %vm794_vm2 = vmor %vm792_vm1, %vm793_vm15 }
 0xb7a   :  { %v789_v55 = vsub.f32 1.0, %v788_v51 }
 0xb7c   :  { %v790_v0 = vmul.f32 %v2123_v12, %v789_v55 }
 0xb7e   :  { %v791_v59 = vadd.f32 %v2123_v12, %v790_v0 }
 0xb80   :  { %v795_v10 = vsel %vm794_vm2, %v2123_v12, %v791_v59 }
 0xb81   :  { %v800_v13 = vsel %vm797_vm3, %v799_v11, %v795_v10 }
 0xb82   :  { %v2869_v14 = vsel %vm2577_vm5, %v2125_v40, %v800_v13 }
 0xbc8   :  { %v888_v41 = vpop.permute.xlu2 %887 }
 0xbc9   :  { %v890_v57 = vmul.f32 %v888_v41, %v870_v54 }
 0xbcb   :  { %v1032_v60 = vrot.slane %v890_v57, 6  ;;  %892 = vrot.lane.b32.xlu0 %v890_v57, %s2461_s24 }
 0xbcd   :  { %1033 = vrot.lane.b32.xlu2 %v1032_v60, %s2461_s24 }
 0xbd5   :  { %806 = vrot.lane.b32.xlu2 %v2869_v14, %s2460_s23 }
 0xc27   :  { %v1034_v15 = vpop.permute.xlu2 %1033 }
 0xc28   :  { %2006 = vmatmul.msk.f32.vlgmr.msra.gmra.mxu0 %vm196_vm8, %v1034_v15  ;;  %v1080_v15 = vrot.slane %v2860_v34, 6 }
 0xc29   :  { %1537 = vmatpush.msra.mxu0 %v2589_v43  ;;  %v897_v43 = vpop.permute.xlu1 %896 }
 0xc2b   :  { %1538 = vmatpush.msra.mxu0 %v2591_v44 }
 0xc2d   :  { %1539 = vmatpush.msra.mxu0 %v2595_v45 }
 0xc2f   :  { %v807_v16 = vpop.permute.xlu2 %806  ;;  %1540 = vmatpush.msra.mxu0 %v2599_v46  ;;  %v804_v46 = vmul.f32 %v2869_v14, %v2822_v36 }
 0xc30   :  { %v809_v19 = vmul.f32 %v807_v16, %v2869_v14 }
 0xc31   :  { %1541 = vmatpush.msra.mxu0 %v2603_v47 }
 0xc32   :  { %811 = vrot.lane.b32.xlu2 %v809_v19, %s2461_s24 }
 0xc33   :  { %1542 = vmatpush.msra.mxu0 %v2607_v48 }
 0xc35   :  { %1543 = vmatpush.msra.mxu0 %v2611_v49 }
 0xc37   :  { %1544 = vmatpush.msra.mxu0 %v2618_v52  ;;  %v2248_v52 = vld [vmem:[%s3166_s3] ss:$0 sm:$0xff] }
 0xc3d   :  { %v893_v21 = vpop.permute.xlu0 %892 }
 0xc3e   :  { %v899_v44 = vsel %vm196_vm8, %v893_v21, %v897_v43 }
 0xc3f   :  { %v901_v45 = vrot.slane %v899_v44, 6 }
 0xc41   :  { %2002 = vmatmul.msk.f32.vlgmr.msrb.gmra.mxu1 %vm144_vm0, %v901_v45 }
 0xc42   :  { %1396 = vmatpush.msrb.mxu1 %v2661_v61  ;;  %v2904_v61 = vadd.f32 %v2248_v52, %v2744_v24 }
 0xc44   :  { %1397 = vmatpush.msrb.mxu1 %v2663_v62 }
 0xc46   :  { %1398 = vmatpush.msrb.mxu1 %v2667_v63 }
 0xc48   :  { %1399 = vmatpush.msrb.mxu1 %v2672_v1 }
 0xc4a   :  { %1400 = vmatpush.msrb.mxu1 %v2677_v2 }
 0xc4c   :  { %1401 = vmatpush.msrb.mxu1 %v2682_v5 }
 0xc4e   :  { %1402 = vmatpush.msrb.mxu1 %v2687_v7 }
 0xc50   :  { %1403 = vmatpush.msrb.mxu1 %v2697_v9 }
 0xc8c   :  { %v812_v47 = vpop.permute.xlu2 %811 }
 0xc8d   :  { %v2896_v48 = vadd.f32 %v812_v47, %v804_v46 }
 0xc8f   :  { %2126 = vtanh.f32 %v2896_v48 }
 0xc95   :  { %v2127_v49 = vpop.eup %2126 }
 0xc96   :  { %817 = vrot.lane.b32.xlu2 %v2127_v49, %s2460_s23 }
 0xca5   :  { %v1054_v62 = vpop.f32.mrf.mxu0 }
 0xca6   :  { %v1057_v3 = vadd.f32 %v1054_v62, %v2904_v61 }
 0xca8   :  { %v2007_v4 = vmul.f32 -1.442695, %v1057_v3 }
 0xcaa   :  { %2128 = vpow2.f32 %v2007_v4 }
 0xcb0   :  { %v2129_v36 = vpop.eup %2128 }
 0xcb1   :  { %v1061_v6 = vadd.f32 1.0, %v2129_v36  ;;  %v2249_v36 = vld [vmem:[#allocation8 + $0x38] sm:$0xff] }
 0xcb3   :  { %2130 = vrcp.f32 %v1061_v6  ;;  %v1073_v17 = vand.u32 2147483648, %v1061_v6  ;;  %v1071_v26 = vand.u32 2147483647, %v1061_v6  ;;  %vm1067_vm6 = vweird.f32 %v1061_v6 }
 0xcb4   :  { %2132 = vtanh.f32 %v1057_v3 }
 0xcb5   :  { %v1074_v29 = vor.u32 1.1754944e-38, %v1073_v17  ;;  %vm1072_vm9 = vcmp.eq.f32.partialorder %v1071_v26, 8.507059e+37  ;;  %v2255_v26 = vld [vmem:[#allocation8 + $0x10] sm:$0xff] }
 0xcb9   :  { %v2131_v22 = vpop.eup %2130 }
 0xcba   :  { %v1063_v8 = vmul.f32 %v2131_v22, %v1061_v6  ;;  %vm1068_vm4 = vweird.f32 %v2131_v22  ;;  %v2133_v33 = vpop.eup %2132  ;;  %v2250_v6 = vld [vmem:[#allocation8 + $0x30] sm:$0xff] }
 0xcbb   :  { %vm1069_vm7 = vmor %vm1067_vm6, %vm1068_vm4 }
 0xcbc   :  { %v1064_v23 = vsub.f32 1.0, %v1063_v8 }
 0xcbe   :  { %v921_v25 = vpop.f32.mrf.mxu1  ;;  %v1065_v54 = vmul.f32 %v2131_v22, %v1064_v23  ;;  %v2252_v23 = vld [vmem:[#allocation8 + $0x20] sm:$0xff] }
 0xcbf   :  { %v922_v24 = vadd.f32 %v2637_v58, %v921_v25  ;;  %v2253_v25 = vld [vmem:[#allocation8 + $0x18] sm:$0xff] }
 0xcc0   :  { %v1066_v27 = vadd.f32 %v2131_v22, %v1065_v54  ;;  %v2254_v54 = vld [vmem:[#allocation7 + $0x18] sm:$0xff] }
 0xcc1   :  { %v2003_v28 = vmul.f32 -1.442695, %v922_v24 }
 0xcc2   :  { %v1070_v30 = vsel %vm1069_vm7, %v2131_v22, %v1066_v27  ;;  %v2251_v22 = vld [vmem:[#allocation8 + $0x28] sm:$0xff] }
 0xcc3   :  { %2134 = vpow2.f32 %v2003_v28  ;;  %v1075_v35 = vsel %vm1072_vm9, %v1074_v29, %v1070_v30  ;;  %v2257_v27 = vld [vmem:[#allocation8 + $0x8] sm:$0xff]  ;;  %v2259_v29 = vld [vmem:[#allocation8] sm:$0xff] }
 0xcc4   :  { %v1078_v37 = vsel %vm2577_vm5, %v2133_v33, %v1075_v35  ;;  %v2258_v28 = vld [vmem:[#allocation7 + $0x8] sm:$0xff]  ;;  %v2260_v30 = vld [vmem:[#allocation7] sm:$0xff] }
 0xcc5   :  { %1084 = vrot.lane.b32.xlu1 %v1078_v37, %s2460_s23  ;;  %v1082_v16 = vmul.f32 %v1080_v15, %v1078_v37 }
 0xcc9   :  { %v2135_v38 = vpop.eup %2134 }
 0xcca   :  { %v927_v42 = vadd.f32 1.0, %v2135_v38  ;;  %v2942_v38 = vld [vmem:[#allocation10 + $0x30] sm:$0xff] }
 0xccc   :  { %2136 = vrcp.f32 %v927_v42  ;;  %v939_v51 = vand.u32 2147483648, %v927_v42  ;;  %v937_v0 = vand.u32 2147483647, %v927_v42  ;;  %vm933_vm11 = vweird.f32 %v927_v42 }
 0xccd   :  { %2138 = vtanh.f32 %v922_v24  ;;  %v2256_v24 = vld [vmem:[#allocation7 + $0x10] sm:$0xff] }
 0xcce   :  { %v940_v57 = vor.u32 1.1754944e-38, %v939_v51  ;;  %vm938_vm13 = vcmp.eq.f32.partialorder %v937_v0, 8.507059e+37 }
 0xcd2   :  { %v2137_v50 = vpop.eup %2136 }
 0xcd3   :  { %v929_v58 = vmul.f32 %v2137_v50, %v927_v42  ;;  %vm934_vm10 = vweird.f32 %v2137_v50  ;;  %v2139_v60 = vpop.eup %2138 }
 0xcd4   :  { %vm935_vm12 = vmor %vm933_vm11, %vm934_vm10 }
 0xcd5   :  { %v930_v12 = vsub.f32 1.0, %v929_v58 }
 0xcd7   :  { %v931_v55 = vmul.f32 %v2137_v50, %v930_v12 }
 0xcd9   :  { %v932_v41 = vadd.f32 %v2137_v50, %v931_v55 }
 0xcdb   :  { %v936_v59 = vsel %vm935_vm12, %v2137_v50, %v932_v41 }
 0xcdc   :  { %v941_v18 = vsel %vm938_vm13, %v940_v57, %v936_v59  ;;  %vm1881_vm13 = vcmask 1041408  }
 0xcdd   :  { %v944_v53 = vsel %vm2577_vm5, %v2139_v60, %v941_v18 }
 0xcde   :  { %947 = vrot.lane.b32.xlu0 %v944_v53, %s2460_s23  ;;  %v945_v44 = vmul.f32 %v944_v53, %v2826_v39 }
 0xcf0   :  { %v818_v52 = vpop.permute.xlu2 %817 }
 0xcf1   :  { %v2928_v62 = vmul.f32 %v818_v52, %v2869_v14 }
 0xd37   :  { %v1085_v10 = vpop.permute.xlu1 %1084 }
 0xd38   :  { %v1087_v11 = vmul.f32 %v1085_v10, %v1078_v37 }
 0xd3a   :  { %1089 = vrot.lane.b32.xlu1 %v1087_v11, %s2461_s24 }
 0xd50   :  { %v948_v13 = vpop.permute.xlu0 %947 }
 0xd51   :  { %v950_v40 = vmul.f32 %v948_v13, %v944_v53 }
 0xd53   :  { %952 = vrot.lane.b32.xlu0 %v950_v40, %s2461_s24  ;;  %v2956_v40 = vld [vmem:[%s3168_s5] ss:$0 sm:$0xff] }
 0xdac   :  { %v1090_v19 = vpop.permute.xlu1 %1089 }
 0xdad   :  { %v2917_v43 = vadd.f32 %v1090_v19, %v1082_v16 }
 0xdaf   :  { %2140 = vtanh.f32 %v2917_v43 }
 0xdb5   :  { %v2141_v21 = vpop.eup %2140 }
 0xdb6   :  { %1095 = vrot.lane.b32.xlu1 %v2141_v21, %s2460_s23 }
 0xdc5   :  { %v953_v45 = vpop.permute.xlu0 %952 }
 0xdc6   :  { %v2922_v46 = vadd.f32 %v953_v45, %v945_v44 }
 0xdc8   :  { %2142 = vtanh.f32 %v2922_v46 }
 0xdce   :  { %v2143_v47 = vpop.eup %2142 }
 0xdcf   :  { %958 = vrot.lane.b32.xlu0 %v2143_v47, %s2460_s23 }
 0xe28   :  { %v1096_v34 = vpop.permute.xlu1 %1095 }
 0xe29   :  { %v1098_v49 = vmul.f32 %v1096_v34, %v1078_v37  ;;  %v2939_v37 = vld [vmem:[#allocation10 + $0x38] sm:$0xff] }
 0xe2b   :  { %1100 = vrot.lane.b32.xlu0 %v1098_v49, %s2461_s24 }
 0xe33   :  { %967 = vrot.lane.b32.xlu0 %v2928_v62, %s2460_s23 }
 0xe41   :  { %v959_v39 = vpop.permute.xlu0 %958 }
 0xe42   :  { %v961_v3 = vmul.f32 %v959_v39, %v944_v53 }
 0xe44   :  { %1103 = vrot.lane.b32.xlu1 %v961_v3, %s2460_s23  ;;  %963 = vrot.lane.b32.xlu2 %v961_v3, %s2461_s24 }
 0xe9d   :  { %v1101_v4 = vpop.permute.xlu0 %1100 }
 0xe9e   :  { %2012 = vmatmul.msk.f32.vlgmr.msra.gmra.mxu1 %vm196_vm8, %v1101_v4  ;;  %v964_v14 = vpop.permute.xlu2 %963 }
 0xe9f   :  { %1748 = vmatpush.msra.mxu1 %v2249_v36 }
 0xea1   :  { %1749 = vmatpush.msra.mxu1 %v2250_v6 }
 0xea3   :  { %1750 = vmatpush.msra.mxu1 %v2251_v22 }
 0xea5   :  { %v968_v8 = vpop.permute.xlu0 %967  ;;  %1751 = vmatpush.msra.mxu1 %v2252_v23 }
 0xea6   :  { %v970_v17 = vsel %vm196_vm8, %v964_v14, %v968_v8 }
 0xea7   :  { %2004 = vmatmul.msk.f32.vlgmr.msra.gmra.mxu3 %vm144_vm0, %v970_v17  ;;  %1752 = vmatpush.msra.mxu1 %v2253_v25 }
 0xea8   :  { %1674 = vmatpush.msra.mxu3 %v2254_v54 }
 0xea9   :  { %1753 = vmatpush.msra.mxu1 %v2255_v26 }
 0xeaa   :  { %1675 = vmatpush.msra.mxu3 %v2256_v24 }
 0xeab   :  { %1754 = vmatpush.msra.mxu1 %v2257_v27 }
 0xeac   :  { %1676 = vmatpush.msra.mxu3 %v2258_v28 }
 0xead   :  { %1755 = vmatpush.msra.mxu1 %v2259_v29 }
 0xeae   :  { %1677 = vmatpush.msra.mxu3 %v2260_v30 }
 0xeb6   :  { %v1104_v33 = vpop.permute.xlu1 %1103 }
 0xeb7   :  { %v1106_v35 = vsel %vm196_vm8, %v1101_v4, %v1104_v33 }
 0xeb8   :  { %2008 = vmatmul.msk.f32.vlgmr.msra.gmra.mxu2 %vm144_vm0, %v1106_v35 }
 0xeb9   :  { %1607 = vmatpush.msra.mxu2 %v2939_v37 }
 0xebb   :  { %1608 = vmatpush.msra.mxu2 %v2942_v38 }
 0xebd   :  { %1609 = vmatpush.msra.mxu2 %v2667_v63 }
 0xebf   :  { %1610 = vmatpush.msra.mxu2 %v2672_v1 }
 0xec1   :  { %1611 = vmatpush.msra.mxu2 %v2677_v2 }
 0xec3   :  { %1612 = vmatpush.msra.mxu2 %v2682_v5 }
 0xec5   :  { %1613 = vmatpush.msra.mxu2 %v2687_v7 }
 0xec7   :  { %1614 = vmatpush.msra.mxu2 %v2697_v9 }
 0xf1b   :  { %v1257_v42 = vpop.f32.mrf.mxu1 }
 0xf1c   :  { %v1261_v50 = vrot.slane %v1257_v42, 6 }
 0xf1e   :  { %v1263_v58 = vadd.f32 %v1261_v50, %v2904_v61 }
 0xf20   :  { %v2013_v12 = vmul.f32 -1.442695, %v1263_v58 }
 0xf22   :  { %2144 = vpow2.f32 %v2013_v12 }
 0xf28   :  { %v2145_v51 = vpop.eup %2144 }
 0xf29   :  { %v1267_v55 = vadd.f32 1.0, %v2145_v51 }
 0xf2a   :  { %v991_v0 = vpop.f32.mrf.mxu3 }
 0xf2b   :  { %2146 = vrcp.f32 %v1267_v55  ;;  %v992_v63 = vadd.f32 %v2749_v32, %v991_v0  ;;  %v1279_v9 = vand.u32 2147483648, %v1267_v55  ;;  %v1277_v60 = vand.u32 2147483647, %v1267_v55 }
 0xf2c   :  { %vm1273_vm15 = vweird.f32 %v1267_v55 }
 0xf2d   :  { %v2005_v1 = vmul.f32 -1.442695, %v992_v63  ;;  %v1280_v53 = vor.u32 1.1754944e-38, %v1279_v9  ;;  %vm1278_vm2 = vcmp.eq.f32.partialorder %v1277_v60, 8.507059e+37 }
 0xf2f   :  { %2148 = vpow2.f32 %v2005_v1 }
 0xf30   :  { %2150 = vtanh.f32 %v1263_v58 }
 0xf31   :  { %v2147_v2 = vpop.eup %2146 }
 0xf32   :  { %v1269_v5 = vmul.f32 %v2147_v2, %v1267_v55  ;;  %vm1274_vm14 = vweird.f32 %v2147_v2  ;;  %v1286_v55 = vrot.slane %v2917_v43, 6 }
 0xf33   :  { %vm1275_vm1 = vmor %vm1273_vm15, %vm1274_vm14  ;;  %vm1883_vm14 = vcmask 1043456   ;;  %vm1885_vm15 = vcmask 1045504  }
 0xf34   :  { %v1270_v41 = vsub.f32 1.0, %v1269_v5 }
 0xf35   :  { %v2149_v7 = vpop.eup %2148 }
 0xf36   :  { %v997_v57 = vadd.f32 1.0, %v2149_v7  ;;  %v1271_v59 = vmul.f32 %v2147_v2, %v1270_v41  ;;  %v2151_v32 = vpop.eup %2150 }
 0xf38   :  { %2152 = vrcp.f32 %v997_v57  ;;  %v1272_v18 = vadd.f32 %v2147_v2, %v1271_v59  ;;  %v1009_v47 = vand.u32 2147483648, %v997_v57  ;;  %v1007_v49 = vand.u32 2147483647, %v997_v57 }
 0xf39   :  { %vm1003_vm4 = vweird.f32 %v997_v57 }
 0xf3a   :  { %v1276_v10 = vsel %vm1275_vm1, %v2147_v2, %v1272_v18  ;;  %v1010_v3 = vor.u32 1.1754944e-38, %v1009_v47  ;;  %vm1008_vm7 = vcmp.eq.f32.partialorder %v1007_v49, 8.507059e+37  ;;  %v2264_v49 = vld [vmem:[#allocation10 + $0x28] sm:$0xff] }
 0xf3b   :  { %v1127_v11 = vpop.f32.mrf.mxu2  ;;  %v1281_v13 = vsel %vm1278_vm2, %v1280_v53, %v1276_v10  ;;  %v1868_v10 = vrot.slane %v2834_v56, 6 }
 0xf3c   :  { %v1128_v15 = vadd.f32 %v2956_v40, %v1127_v11  ;;  %v2961_v16 = vsel %vm2577_vm5, %v2151_v32, %v1281_v13 }
 0xf3d   :  { %1290 = vrot.lane.b32.xlu2 %v2961_v16, %s2460_s23  ;;  %v1288_v0 = vmul.f32 %v1286_v55, %v2961_v16 }
 0xf3e   :  { %v2153_v19 = vpop.eup %2152  ;;  %v2009_v21 = vmul.f32 -1.442695, %v1128_v15 }
 0xf3f   :  { %v999_v44 = vmul.f32 %v2153_v19, %v997_v57  ;;  %vm1004_vm3 = vweird.f32 %v2153_v19 }
 0xf40   :  { %2154 = vpow2.f32 %v2009_v21  ;;  %vm1005_vm6 = vmor %vm1003_vm4, %vm1004_vm3 }
 0xf41   :  { %v1000_v45 = vsub.f32 1.0, %v999_v44  ;;  %2156 = vtanh.f32 %v992_v63 }
 0xf43   :  { %v1001_v34 = vmul.f32 %v2153_v19, %v1000_v45 }
 0xf45   :  { %v1002_v52 = vadd.f32 %v2153_v19, %v1001_v34 }
 0xf46   :  { %v2155_v39 = vpop.eup %2154 }
 0xf47   :  { %v1133_v4 = vadd.f32 1.0, %v2155_v39  ;;  %v1006_v36 = vsel %vm1005_vm6, %v2153_v19, %v1002_v52  ;;  %v2157_v6 = vpop.eup %2156  ;;  %v2265_v52 = vld [vmem:[#allocation10 + $0x20] sm:$0xff]  ;;  %v2266_v39 = vld [vmem:[#allocation10 + $0x18] sm:$0xff] }
 0xf48   :  { %v1011_v22 = vsel %vm1008_vm7, %v1010_v3, %v1006_v36  ;;  %v2267_v3 = vld [vmem:[#allocation10 + $0x10] sm:$0xff]  ;;  %v2269_v36 = vld [vmem:[#allocation10] sm:$0xff] }
 0xf49   :  { %2158 = vrcp.f32 %v1133_v4  ;;  %v1014_v14 = vsel %vm2577_vm5, %v2157_v6, %v1011_v22  ;;  %v1145_v25 = vand.u32 2147483648, %v1133_v4  ;;  %v1143_v26 = vand.u32 2147483647, %v1133_v4 }
 0xf4a   :  { %1017 = vrot.lane.b32.xlu0 %v1014_v14, %s2460_s23  ;;  %2160 = vtanh.f32 %v1128_v15  ;;  %vm1139_vm10 = vweird.f32 %v1133_v4  ;;  %v1015_v5 = vmul.f32 %v1014_v14, %v2896_v48  ;;  %v1882_v15 = vsel %vm1881_vm13, %v2791_v20, %v1868_v10 }
 0xf4b   :  { %v1146_v27 = vor.u32 1.1754944e-38, %v1145_v25  ;;  %vm1144_vm12 = vcmp.eq.f32.partialorder %v1143_v26, 8.507059e+37 }
 0xf4f   :  { %v2159_v8 = vpop.eup %2158 }
 0xf50   :  { %v1135_v23 = vmul.f32 %v2159_v8, %v1133_v4  ;;  %vm1140_vm9 = vweird.f32 %v2159_v8  ;;  %v2161_v29 = vpop.eup %2160  ;;  %v2268_v4 = vld [vmem:[#allocation10 + $0x8] sm:$0xff] }
 0xf51   :  { %vm1141_vm11 = vmor %vm1139_vm10, %vm1140_vm9 }
 0xf52   :  { %v1136_v17 = vsub.f32 1.0, %v1135_v23 }
 0xf54   :  { %v1137_v54 = vmul.f32 %v2159_v8, %v1136_v17 }
 0xf56   :  { %v1138_v24 = vadd.f32 %v2159_v8, %v1137_v54 }
 0xf58   :  { %v1142_v28 = vsel %vm1141_vm11, %v2159_v8, %v1138_v24 }
 0xf59   :  { %v1147_v30 = vsel %vm1144_vm12, %v1146_v27, %v1142_v28 }
 0xf5a   :  { %v1150_v33 = vsel %vm2577_vm5, %v2161_v29, %v1147_v30 }
 0xf5b   :  { %1153 = vrot.lane.b32.xlu1 %v1150_v33, %s2460_s23  ;;  %v1151_v43 = vmul.f32 %v1150_v33, %v2922_v46  ;;  %v1870_v46 = vrot.slane %v2928_v62, 4 }
 0xf97   :  { %v1291_v35 = vpop.permute.xlu2 %1290 }
 0xf98   :  { %v1293_v42 = vmul.f32 %v1291_v35, %v2961_v16 }
 0xf9a   :  { %1295 = vrot.lane.b32.xlu2 %v1293_v42, %s2461_s24 }
 0xfbc   :  { %v1018_v50 = vpop.permute.xlu0 %1017 }
 0xfbd   :  { %v1020_v58 = vmul.f32 %v1018_v50, %v1014_v14 }
 0xfbf   :  { %1022 = vrot.lane.b32.xlu0 %v1020_v58, %s2461_s24 }
 0xfcd   :  { %v1154_v12 = vpop.permute.xlu1 %1153 }
 0xfce   :  { %v1156_v51 = vmul.f32 %v1154_v12, %v1150_v33 }
 0xfd0   :  { %1158 = vrot.lane.b32.xlu1 %v1156_v51, %s2461_s24 }
 0xff4   :  { %v1296_v63 = vpop.permute.xlu2 %1295 }
 0xff5   :  { %v2977_v1 = vadd.f32 %v1296_v63, %v1288_v0 }
 0xff7   :  { %2162 = vtanh.f32 %v2977_v1 }
 0xffd   :  { %v2163_v2 = vpop.eup %2162 }
 0xffe   :  { %1301 = vrot.lane.b32.xlu2 %v2163_v2, %s2460_s23 }
0x1031   :  { %v1023_v41 = vpop.permute.xlu0 %1022 }
0x1032   :  { %v2982_v7 = vadd.f32 %v1023_v41, %v1015_v5  ;;  %v3023_v5 = vld [vmem:[%s3170_s7] ss:$0 sm:$0xff] }
0x1034   :  { %2164 = vtanh.f32 %v2982_v7 }
0x103a   :  { %v2165_v9 = vpop.eup %2164 }
0x103b   :  { %1028 = vrot.lane.b32.xlu0 %v2165_v9, %s2460_s23 }
0x1042   :  { %v1159_v57 = vpop.permute.xlu1 %1158 }
0x1043   :  { %v2987_v59 = vadd.f32 %v1159_v57, %v1151_v43 }
0x1045   :  { %2166 = vtanh.f32 %v2987_v59 }
0x104b   :  { %v2167_v60 = vpop.eup %2166 }
0x104c   :  { %1164 = vrot.lane.b32.xlu1 %v2167_v60, %s2460_s23 }
0x1058   :  { %v1302_v18 = vpop.permute.xlu2 %1301 }
0x1059   :  { %v1304_v48 = vmul.f32 %v1302_v18, %v2961_v16  ;;  %v1884_v16 = vsel %vm1883_vm14, %v1882_v15, %v1870_v46 }
0x105b   :  { %v1446_v53 = vrot.slane %v1304_v48, 2  ;;  %1306 = vrot.lane.b32.xlu1 %v1304_v48, %s2461_s24 }
0x105d   :  { %1447 = vrot.lane.b32.xlu0 %v1446_v53, %s2461_s24 }
0x10ad   :  { %v1029_v32 = vpop.permute.xlu0 %1028 }
0x10ae   :  { %v1031_v11 = vmul.f32 %v1029_v32, %v1014_v14 }
0x10b0   :  { %v1872_v13 = vrot.slane %v1031_v11, 2 }
0x10b2   :  { %v3000_v19 = vsel %vm1885_vm15, %v1884_v16, %v1872_v13 }
0x10be   :  { %v1165_v21 = vpop.permute.xlu1 %1164 }
0x10bf   :  { %v1167_v44 = vmul.f32 %v1165_v21, %v1150_v33 }
0x10c1   :  { %v1309_v45 = vrot.slane %v1167_v44, 6  ;;  %1169 = vrot.lane.b32.xlu1 %v1167_v44, %s2461_s24 }
0x10c3   :  { %1310 = vrot.lane.b32.xlu2 %v1309_v45, %s2460_s23 }
0x10cb   :  { %1173 = vrot.lane.b32.xlu2 %v1031_v11, %s2460_s23 }
0x10cd   :  { %v1307_v62 = vpop.permute.xlu1 %1306 }
0x10cf   :  { %v1448_v56 = vpop.permute.xlu0 %1447 }
0x10d0   :  { %2018 = vmatmul.msk.f32.vlgmr.msrb.gmra.mxu2 %vm196_vm8, %v1448_v56 }
0x111d   :  { %v1311_v47 = vpop.permute.xlu2 %1310 }
0x111e   :  { %v1313_v20 = vsel %vm196_vm8, %v1307_v62, %v1311_v47 }
0x111f   :  { %v1315_v34 = vrot.slane %v1313_v20, 2 }
0x1121   :  { %2014 = vmatmul.msk.f32.vlgmr.msrb.gmra.mxu3 %vm144_vm0, %v1315_v34 }
0x1122   :  { %1818 = vmatpush.msrb.mxu3 %v2939_v37 }
0x1124   :  { %1819 = vmatpush.msrb.mxu3 %v2942_v38 }
0x1125   :  { %v1174_v6 = vpop.permute.xlu2 %1173 }
0x1126   :  { %1820 = vmatpush.msrb.mxu3 %v2264_v49 }
0x1128   :  { %1821 = vmatpush.msrb.mxu3 %v2265_v52 }
0x112a   :  { %1822 = vmatpush.msrb.mxu3 %v2266_v39 }
0x112c   :  { %1823 = vmatpush.msrb.mxu3 %v2267_v3 }
0x112e   :  { %1824 = vmatpush.msrb.mxu3 %v2268_v4 }
0x1130   :  { %1825 = vmatpush.msrb.mxu3 %v2269_v36 }
0x1133   :  { %v1170_v22 = vpop.permute.xlu1 %1169 }
0x1134   :  { %v1176_v14 = vsel %vm196_vm8, %v1170_v22, %v1174_v6 }
0x1135   :  { %2010 = vmatmul.msk.f32.vlgmr.msrb.gmra.mxu0 %vm144_vm0, %v1176_v14 }
0x1153   :  { %v1468_v37 = vpop.f32.mrf.mxu2 }
0x1154   :  { %v1472_v38 = vrot.slane %v1468_v37, 4 }
0x1156   :  { %v1474_v8 = vadd.f32 %v1472_v38, %v2904_v61 }
0x1158   :  { %v2019_v23 = vmul.f32 -1.442695, %v1474_v8 }
0x115a   :  { %2168 = vpow2.f32 %v2019_v23 }
0x1160   :  { %v2169_v17 = vpop.eup %2168 }
0x1161   :  { %v1478_v25 = vadd.f32 1.0, %v2169_v17 }
0x1163   :  { %2170 = vrcp.f32 %v1478_v25  ;;  %v1490_v27 = vand.u32 2147483648, %v1478_v25  ;;  %v1488_v29 = vand.u32 2147483647, %v1478_v25  ;;  %vm1484_vm2 = vweird.f32 %v1478_v25 }
0x1164   :  { %2172 = vtanh.f32 %v1474_v8  ;;  %v1497_v8 = vrot.slane %v2977_v1, 6 }
0x1165   :  { %v1491_v33 = vor.u32 1.1754944e-38, %v1490_v27  ;;  %vm1489_vm4 = vcmp.eq.f32.partialorder %v1488_v29, 8.507059e+37 }
0x1169   :  { %v2171_v54 = vpop.eup %2170 }
0x116a   :  { %v1480_v26 = vmul.f32 %v2171_v54, %v1478_v25  ;;  %vm1485_vm1 = vweird.f32 %v2171_v54  ;;  %v2173_v42 = vpop.eup %2172 }
0x116b   :  { %vm1486_vm3 = vmor %vm1484_vm2, %vm1485_vm1 }
0x116c   :  { %v1481_v24 = vsub.f32 1.0, %v1480_v26 }
0x116e   :  { %v1482_v28 = vmul.f32 %v2171_v54, %v1481_v24 }
0x1170   :  { %v1483_v30 = vadd.f32 %v2171_v54, %v1482_v28 }
0x1172   :  { %v1487_v35 = vsel %vm1486_vm3, %v2171_v54, %v1483_v30 }
0x1173   :  { %v1492_v50 = vsel %vm1489_vm4, %v1491_v33, %v1487_v35 }
0x1174   :  { %v3015_v58 = vsel %vm2577_vm5, %v2173_v42, %v1492_v50 }
0x1175   :  { %1501 = vrot.lane.b32.xlu0 %v3015_v58, %s2460_s23  ;;  %v1499_v23 = vmul.f32 %v1497_v8, %v3015_v58 }
0x11a4   :  { %v1335_v12 = vpop.f32.mrf.mxu3 }
0x11a5   :  { %v1336_v51 = vadd.f32 %v2956_v40, %v1335_v12 }
0x11a7   :  { %v2015_v55 = vmul.f32 -1.442695, %v1336_v51 }
0x11a9   :  { %2174 = vpow2.f32 %v2015_v55 }
0x11af   :  { %v2175_v0 = vpop.eup %2174 }
0x11b0   :  { %v1341_v63 = vadd.f32 1.0, %v2175_v0 }
0x11b2   :  { %2176 = vrcp.f32 %v1341_v63  ;;  %v1197_v2 = vpop.f32.mrf.mxu0  ;;  %v1353_v18 = vand.u32 2147483648, %v1341_v63  ;;  %v1351_v10 = vand.u32 2147483647, %v1341_v63  ;;  %vm1347_vm7 = vweird.f32 %v1341_v63 }
0x11b3   :  { %v1198_v41 = vadd.f32 %v3023_v5, %v1197_v2 }
0x11b4   :  { %v1354_v11 = vor.u32 1.1754944e-38, %v1353_v18  ;;  %vm1352_vm10 = vcmp.eq.f32.partialorder %v1351_v10, 8.507059e+37 }
0x11b5   :  { %v2011_v9 = vmul.f32 -1.442695, %v1198_v41 }
0x11b7   :  { %2178 = vpow2.f32 %v2011_v9 }
0x11b8   :  { %v2177_v43 = vpop.eup %2176  ;;  %2180 = vtanh.f32 %v1336_v51 }
0x11b9   :  { %v1343_v57 = vmul.f32 %v2177_v43, %v1341_v63  ;;  %vm1348_vm6 = vweird.f32 %v2177_v43 }
0x11ba   :  { %vm1349_vm9 = vmor %vm1347_vm7, %vm1348_vm6 }
0x11bb   :  { %v1344_v60 = vsub.f32 1.0, %v1343_v57 }
0x11bd   :  { %v2179_v48 = vpop.eup %2178  ;;  %v1345_v53 = vmul.f32 %v2177_v43, %v1344_v60 }
0x11be   :  { %v1203_v46 = vadd.f32 1.0, %v2179_v48  ;;  %v2181_v15 = vpop.eup %2180 }
0x11bf   :  { %v1346_v32 = vadd.f32 %v2177_v43, %v1345_v53 }
0x11c0   :  { %2182 = vrcp.f32 %v1203_v46  ;;  %v1215_v62 = vand.u32 2147483648, %v1203_v46  ;;  %v1213_v20 = vand.u32 2147483647, %v1203_v46  ;;  %vm1209_vm12 = vweird.f32 %v1203_v46 }
0x11c1   :  { %v1350_v13 = vsel %vm1349_vm9, %v2177_v43, %v1346_v32  ;;  %2184 = vtanh.f32 %v1198_v41 }
0x11c2   :  { %v1355_v16 = vsel %vm1352_vm10, %v1354_v11, %v1350_v13  ;;  %v1216_v49 = vor.u32 1.1754944e-38, %v1215_v62  ;;  %vm1214_vm2 = vcmp.eq.f32.partialorder %v1213_v20, 8.507059e+37 }
0x11c3   :  { %v1358_v21 = vsel %vm2577_vm5, %v2181_v15, %v1355_v16 }
0x11c4   :  { %1361 = vrot.lane.b32.xlu1 %v1358_v21, %s2460_s23  ;;  %v1359_v1 = vmul.f32 %v1358_v21, %v2987_v59 }
0x11c6   :  { %v2183_v44 = vpop.eup %2182 }
0x11c7   :  { %v1205_v45 = vmul.f32 %v2183_v44, %v1203_v46  ;;  %vm1210_vm11 = vweird.f32 %v2183_v44  ;;  %v2185_v39 = vpop.eup %2184 }
0x11c8   :  { %vm1211_vm1 = vmor %vm1209_vm12, %vm1210_vm11 }
0x11c9   :  { %v1206_v56 = vsub.f32 1.0, %v1205_v45 }
0x11cb   :  { %v1207_v47 = vmul.f32 %v2183_v44, %v1206_v56 }
0x11cd   :  { %v1208_v34 = vadd.f32 %v2183_v44, %v1207_v47 }
0x11cf   :  { %v1212_v52 = vsel %vm1211_vm1, %v2183_v44, %v1208_v34 }
0x11d0   :  { %v1217_v3 = vsel %vm1214_vm2, %v1216_v49, %v1212_v52 }
0x11d1   :  { %v1220_v4 = vsel %vm2577_vm5, %v2185_v39, %v1217_v3 }
0x11d2   :  { %1223 = vrot.lane.b32.xlu2 %v1220_v4, %s2460_s23  ;;  %v1221_v26 = vmul.f32 %v1220_v4, %v2982_v7 }
0x11e7   :  { %v1502_v36 = vpop.permute.xlu0 %1501 }
0x11e8   :  { %v1504_v6 = vmul.f32 %v1502_v36, %v3015_v58 }
0x11ea   :  { %1506 = vrot.lane.b32.xlu0 %v1504_v6, %s2461_s24 }
0x122c   :  { %v1224_v22 = vpop.permute.xlu2 %1223 }
0x122d   :  { %v1226_v14 = vmul.f32 %v1224_v22, %v1220_v4 }
0x122f   :  { %1228 = vrot.lane.b32.xlu2 %v1226_v14, %s2461_s24 }
0x1236   :  { %v1362_v37 = vpop.permute.xlu1 %1361 }
0x1237   :  { %v1364_v38 = vmul.f32 %v1362_v37, %v1358_v21 }
0x1239   :  { %1366 = vrot.lane.b32.xlu1 %v1364_v38, %s2461_s24 }
0x125c   :  { %v1507_v17 = vpop.permute.xlu0 %1506 }
0x125d   :  { %v3038_v25 = vadd.f32 %v1507_v17, %v1499_v23 }
0x125f   :  { %2186 = vtanh.f32 %v3038_v25 }
0x1265   :  { %v2187_v54 = vpop.eup %2186 }
0x1266   :  { %1512 = vrot.lane.b32.xlu0 %v2187_v54, %s2460_s23 }
0x1289   :  { %v1229_v24 = vpop.permute.xlu2 %1228 }
0x128a   :  { %v3043_v27 = vadd.f32 %v1229_v24, %v1221_v26 }
0x128c   :  { %2188 = vtanh.f32 %v3043_v27 }
0x1292   :  { %v2189_v28 = vpop.eup %2188 }
0x1293   :  { %1234 = vrot.lane.b32.xlu2 %v2189_v28, %s2460_s23 }
0x12ab   :  { %v1367_v29 = vpop.permute.xlu1 %1366 }
0x12ac   :  { %v3048_v30 = vadd.f32 %v1367_v29, %v1359_v1 }
0x12ae   :  { %2190 = vtanh.f32 %v3048_v30 }
0x12b4   :  { %v2191_v33 = vpop.eup %2190 }
0x12b5   :  { %1372 = vrot.lane.b32.xlu1 %v2191_v33, %s2460_s23 }
0x12d8   :  { %v1513_v35 = vpop.permute.xlu0 %1512 }
0x12d9   :  { %v1515_v7 = vmul.f32 %v1513_v35, %v3015_v58 }
0x12db   :  { %v1657_v42 = vrot.slane %v1515_v7, 4  ;;  %1517 = vrot.lane.b32.xlu1 %v1515_v7, %s2461_s24 }
0x12dd   :  { %1658 = vrot.lane.b32.xlu0 %v1657_v42, %s2461_s24 }
0x12ed   :  { %v1235_v50 = vpop.permute.xlu2 %1234 }
0x12ee   :  { %v3055_v12 = vmul.f32 %v1235_v50, %v1220_v4 }
0x12f0   :  { %1381 = vrot.lane.b32.xlu1 %v3055_v12, %s2460_s23 }
0x1327   :  { %v1373_v59 = vpop.permute.xlu1 %1372 }
0x1328   :  { %v1375_v51 = vmul.f32 %v1373_v59, %v1358_v21 }
0x132a   :  { %v1520_v55 = vrot.slane %v1375_v51, 4  ;;  %1377 = vrot.lane.b32.xlu0 %v1375_v51, %s2461_s24 }
0x132c   :  { %1521 = vrot.lane.b32.xlu2 %v1520_v55, %s2460_s23 }
0x134d   :  { %v1518_v58 = vpop.permute.xlu1 %1517 }
0x134f   :  { %v1659_v0 = vpop.permute.xlu0 %1658 }
0x1350   :  { %2024 = vmatmul.msk.f32.vlgmr.msra.gmra.mxu3 %vm196_vm8, %v1659_v0 }
0x1362   :  { %v1382_v9 = vpop.permute.xlu1 %1381 }
0x1386   :  { %v1522_v63 = vpop.permute.xlu2 %1521 }
0x1387   :  { %v1524_v2 = vsel %vm196_vm8, %v1518_v58, %v1522_v63 }
0x1388   :  { %v1526_v41 = vrot.slane %v1524_v2, 4 }
0x138a   :  { %2020 = vmatmul.msk.f32.vlgmr.msra.gmra.mxu0 %vm144_vm0, %v1526_v41 }
0x139c   :  { %v1378_v43 = vpop.permute.xlu0 %1377 }
0x139d   :  { %v1384_v57 = vsel %vm196_vm8, %v1378_v43, %v1382_v9 }
0x139e   :  { %2016 = vmatmul.msk.f32.vlgmr.msrb.gmra.mxu1 %vm144_vm0, %v1384_v57 }
0x13d3   :  { %v1679_v60 = vpop.f32.mrf.mxu3 }
0x13d4   :  { %v1683_v18 = vrot.slane %v1679_v60, 2 }
0x13d6   :  { %v1685_v48 = vadd.f32 %v1683_v18, %v2904_v61 }
0x13d8   :  { %v2025_v53 = vmul.f32 -1.442695, %v1685_v48 }
0x13da   :  { %2192 = vpow2.f32 %v2025_v53 }
0x13e0   :  { %v2193_v10 = vpop.eup %2192 }
0x13e1   :  { %v1689_v46 = vadd.f32 1.0, %v2193_v10 }
0x13e3   :  { %2194 = vrcp.f32 %v1689_v46  ;;  %v1701_v15 = vand.u32 2147483648, %v1689_v46  ;;  %v1699_v21 = vand.u32 2147483647, %v1689_v46  ;;  %vm1695_vm4 = vweird.f32 %v1689_v46 }
0x13e4   :  { %2196 = vtanh.f32 %v1685_v48  ;;  %v1708_v48 = vrot.slane %v3038_v25, 6 }
0x13e5   :  { %v1702_v45 = vor.u32 1.1754944e-38, %v1701_v15  ;;  %vm1700_vm7 = vcmp.eq.f32.partialorder %v1699_v21, 8.507059e+37 }
0x13e9   :  { %v2195_v32 = vpop.eup %2194 }
0x13ea   :  { %v1691_v11 = vmul.f32 %v2195_v32, %v1689_v46  ;;  %vm1696_vm3 = vweird.f32 %v2195_v32  ;;  %v2197_v61 = vpop.eup %2196 }
0x13eb   :  { %vm1697_vm6 = vmor %vm1695_vm4, %vm1696_vm3 }
0x13ec   :  { %v1692_v13 = vsub.f32 1.0, %v1691_v11 }
0x13ee   :  { %v1693_v16 = vmul.f32 %v2195_v32, %v1692_v13 }
0x13f0   :  { %v1694_v44 = vadd.f32 %v2195_v32, %v1693_v16 }
0x13f2   :  { %v1698_v56 = vsel %vm1697_vm6, %v2195_v32, %v1694_v44 }
0x13f3   :  { %v1703_v62 = vsel %vm1700_vm7, %v1702_v45, %v1698_v56 }
0x13f4   :  { %v3069_v47 = vsel %vm2577_vm5, %v2197_v61, %v1703_v62 }
0x13f5   :  { %1712 = vrot.lane.b32.xlu1 %v3069_v47, %s2460_s23  ;;  %v1710_v53 = vmul.f32 %v1708_v48, %v3069_v47 }
0x1407   :  { %v1546_v20 = vpop.f32.mrf.mxu0 }
0x1408   :  { %v1547_v34 = vadd.f32 %v2956_v40, %v1546_v20 }
0x140a   :  { %v2021_v49 = vmul.f32 -1.442695, %v1547_v34 }
0x140c   :  { %2198 = vpow2.f32 %v2021_v49 }
0x1412   :  { %v2199_v52 = vpop.eup %2198 }
0x1413   :  { %v1552_v39 = vadd.f32 1.0, %v2199_v52 }
0x1415   :  { %2200 = vrcp.f32 %v1552_v39  ;;  %v1564_v37 = vand.u32 2147483648, %v1552_v39  ;;  %v1562_v8 = vand.u32 2147483647, %v1552_v39  ;;  %vm1558_vm10 = vweird.f32 %v1552_v39 }
0x1416   :  { %2202 = vtanh.f32 %v1547_v34 }
0x1417   :  { %v1565_v17 = vor.u32 1.1754944e-38, %v1564_v37  ;;  %vm1563_vm12 = vcmp.eq.f32.partialorder %v1562_v8, 8.507059e+37 }
0x141b   :  { %v2201_v3 = vpop.eup %2200  ;;  %v1405_v4 = vpop.f32.mrf.mxu1 }
0x141c   :  { %v1406_v36 = vadd.f32 %v3023_v5, %v1405_v4  ;;  %v1554_v6 = vmul.f32 %v2201_v3, %v1552_v39  ;;  %vm1559_vm9 = vweird.f32 %v2201_v3  ;;  %v2203_v26 = vpop.eup %2202 }
0x141d   :  { %vm1560_vm11 = vmor %vm1558_vm10, %vm1559_vm9 }
0x141e   :  { %v2017_v22 = vmul.f32 -1.442695, %v1406_v36  ;;  %v1555_v14 = vsub.f32 1.0, %v1554_v6 }
0x1420   :  { %2204 = vpow2.f32 %v2017_v22  ;;  %v1556_v38 = vmul.f32 %v2201_v3, %v1555_v14 }
0x1422   :  { %v1557_v23 = vadd.f32 %v2201_v3, %v1556_v38 }
0x1424   :  { %v1561_v54 = vsel %vm1560_vm11, %v2201_v3, %v1557_v23 }
0x1425   :  { %v1566_v24 = vsel %vm1563_vm12, %v1565_v17, %v1561_v54 }
0x1426   :  { %v2205_v28 = vpop.eup %2204  ;;  %v1569_v1 = vsel %vm2577_vm5, %v2203_v26, %v1566_v24 }
0x1427   :  { %v1411_v29 = vadd.f32 1.0, %v2205_v28  ;;  %1572 = vrot.lane.b32.xlu0 %v1569_v1, %s2460_s23  ;;  %v1570_v25 = vmul.f32 %v1569_v1, %v3048_v30 }
0x1429   :  { %2206 = vrcp.f32 %v1411_v29  ;;  %v1423_v42 = vand.u32 2147483648, %v1411_v29  ;;  %v1421_v59 = vand.u32 2147483647, %v1411_v29  ;;  %vm1417_vm2 = vweird.f32 %v1411_v29 }
0x142a   :  { %2208 = vtanh.f32 %v1406_v36 }
0x142b   :  { %v1424_v55 = vor.u32 1.1754944e-38, %v1423_v42  ;;  %vm1422_vm4 = vcmp.eq.f32.partialorder %v1421_v59, 8.507059e+37 }
0x142f   :  { %v2207_v33 = vpop.eup %2206 }
0x1430   :  { %v1413_v35 = vmul.f32 %v2207_v33, %v1411_v29  ;;  %vm1418_vm1 = vweird.f32 %v2207_v33  ;;  %v2209_v58 = vpop.eup %2208 }
0x1431   :  { %vm1419_vm3 = vmor %vm1417_vm2, %vm1418_vm1 }
0x1432   :  { %v1414_v7 = vsub.f32 1.0, %v1413_v35 }
0x1434   :  { %v1415_v50 = vmul.f32 %v2207_v33, %v1414_v7 }
0x1436   :  { %v1416_v51 = vadd.f32 %v2207_v33, %v1415_v50 }
0x1438   :  { %v1420_v0 = vsel %vm1419_vm3, %v2207_v33, %v1416_v51 }
0x1439   :  { %v1425_v63 = vsel %vm1422_vm4, %v1424_v55, %v1420_v0 }
0x143a   :  { %v1428_v2 = vsel %vm2577_vm5, %v2209_v58, %v1425_v63 }
0x143b   :  { %1431 = vrot.lane.b32.xlu2 %v1428_v2, %s2460_s23  ;;  %v1429_v11 = vmul.f32 %v1428_v2, %v3043_v27 }
0x1467   :  { %v1713_v41 = vpop.permute.xlu1 %1712 }
0x1468   :  { %v1715_v9 = vmul.f32 %v1713_v41, %v3069_v47 }
0x146a   :  { %1717 = vrot.lane.b32.xlu1 %v1715_v9, %s2461_s24 }
0x1495   :  { %v1432_v43 = vpop.permute.xlu2 %1431 }
0x1496   :  { %v1434_v57 = vmul.f32 %v1432_v43, %v1428_v2 }
0x1498   :  { %1436 = vrot.lane.b32.xlu2 %v1434_v57, %s2461_s24 }
0x1499   :  { %v1573_v60 = vpop.permute.xlu0 %1572 }
0x149a   :  { %v1575_v18 = vmul.f32 %v1573_v60, %v1569_v1 }
0x149c   :  { %1577 = vrot.lane.b32.xlu0 %v1575_v18, %s2461_s24 }
0x14dc   :  { %v1718_v10 = vpop.permute.xlu1 %1717 }
0x14dd   :  { %v1720_v46 = vadd.f32 %v1718_v10, %v1710_v53 }
0x14df   :  { %2210 = vtanh.f32 %v1720_v46 }
0x14e5   :  { %v2211_v32 = vpop.eup %2210 }
0x14e6   :  { %1723 = vrot.lane.b32.xlu1 %v2211_v32, %s2460_s23 }
0x14f2   :  { %v1437_v13 = vpop.permute.xlu2 %1436 }
0x14f3   :  { %v3089_v15 = vadd.f32 %v1437_v13, %v1429_v11 }
0x14f5   :  { %2212 = vtanh.f32 %v3089_v15 }
0x14fb   :  { %v2213_v16 = vpop.eup %2212 }
0x14fc   :  { %1442 = vrot.lane.b32.xlu2 %v2213_v16, %s2460_s23 }
0x150e   :  { %v1578_v21 = vpop.permute.xlu0 %1577 }
0x150f   :  { %v3094_v44 = vadd.f32 %v1578_v21, %v1570_v25 }
0x1511   :  { %2214 = vtanh.f32 %v3094_v44 }
0x1517   :  { %v2215_v45 = vpop.eup %2214 }
0x1518   :  { %1583 = vrot.lane.b32.xlu0 %v2215_v45, %s2460_s23 }
0x1556   :  { %v1443_v56 = vpop.permute.xlu2 %1442 }
0x1557   :  { %v3098_v27 = vmul.f32 %v1443_v56, %v1428_v2 }
0x1558   :  { %v1724_v61 = vpop.permute.xlu1 %1723 }
0x1559   :  { %v1726_v62 = vmul.f32 %v1724_v61, %v3069_v47  ;;  %1592 = vrot.lane.b32.xlu0 %v3098_v27, %s2460_s23 }
0x155b   :  { %1728 = vrot.lane.b32.xlu1 %v1726_v62, %s2461_s24  ;;  %v1874_v62 = vrot.slane %v3098_v27, 6 }
0x158a   :  { %v1584_v30 = vpop.permute.xlu0 %1583 }
0x158b   :  { %v1586_v20 = vmul.f32 %v1584_v30, %v1569_v1 }
0x158d   :  { %1588 = vrot.lane.b32.xlu2 %v1586_v20, %s2461_s24  ;;  %v1731_v34 = vrot.slane %v1586_v20, 2 }
0x1595   :  { %1732 = vrot.lane.b32.xlu2 %v1731_v34, %s2460_s23 }
0x15cb   :  { %v1593_v49 = vpop.permute.xlu0 %1592 }
0x15cd   :  { %v1729_v3 = vpop.permute.xlu1 %1728 }
0x15e7   :  { %v1589_v52 = vpop.permute.xlu2 %1588 }
0x15e8   :  { %v1595_v39 = vsel %vm196_vm8, %v1589_v52, %v1593_v49  ;;  %v1887_v49 = vsel %vm1881_vm13, %v3055_v12, %v1874_v62 }
0x15e9   :  { %2022 = vmatmul.msk.f32.vlgmr.msra.gmra.mxu2 %vm144_vm0, %v1595_v39 }
0x15ef   :  { %v1733_v47 = vpop.permute.xlu2 %1732 }
0x15f0   :  { %v1735_v4 = vsel %vm196_vm8, %v1729_v3, %v1733_v47 }
0x15f1   :  { %v1737_v36 = vrot.slane %v1735_v4, 6 }
0x15f3   :  { %2026 = vmatmul.msk.f32.vlgmr.msra.gmra.mxu1 %vm144_vm0, %v1737_v36 }
0x166c   :  { %v1616_v6 = vpop.f32.mrf.mxu2 }
0x166d   :  { %v1617_v22 = vadd.f32 %v3023_v5, %v1616_v6 }
0x166f   :  { %v2023_v14 = vmul.f32 -1.442695, %v1617_v22 }
0x1670   :  { %v1757_v37 = vpop.f32.mrf.mxu1 }
0x1671   :  { %2216 = vpow2.f32 %v2023_v14  ;;  %v1758_v38 = vadd.f32 %v2956_v40, %v1757_v37 }
0x1673   :  { %v2027_v8 = vmul.f32 -1.442695, %v1758_v38 }
0x1675   :  { %2218 = vpow2.f32 %v2027_v8 }
0x1677   :  { %v2217_v23 = vpop.eup %2216 }
0x1678   :  { %v1622_v17 = vadd.f32 1.0, %v2217_v23 }
0x167a   :  { %2220 = vrcp.f32 %v1622_v17  ;;  %v1632_v33 = vand.u32 2147483647, %v1622_v17  ;;  %v1634_v35 = vand.u32 2147483648, %v1622_v17  ;;  %vm1628_vm7 = vweird.f32 %v1622_v17 }
0x167b   :  { %v2219_v54 = vpop.eup %2218 }
0x167c   :  { %v1763_v26 = vadd.f32 1.0, %v2219_v54  ;;  %vm1633_vm10 = vcmp.eq.f32.partialorder %v1632_v33, 8.507059e+37  ;;  %v1635_v59 = vor.u32 1.1754944e-38, %v1634_v35  ;;  %v1891_v33 = vld [vmem:[#allocation11 + $0x8] sm:$0xff]  ;;  %v1890_v35 = vld [vmem:[#allocation11] sm:$0xff] }
0x167e   :  { %2222 = vrcp.f32 %v1763_v26  ;;  %v1775_v51 = vand.u32 2147483648, %v1763_v26  ;;  %v1773_v58 = vand.u32 2147483647, %v1763_v26  ;;  %vm1769_vm12 = vweird.f32 %v1763_v26 }
0x167f   :  { %2224 = vtanh.f32 %v1617_v22 }
0x1680   :  { %v2221_v24 = vpop.eup %2220  ;;  %2226 = vtanh.f32 %v1758_v38  ;;  %v1776_v43 = vor.u32 1.1754944e-38, %v1775_v51  ;;  %vm1774_vm2 = vcmp.eq.f32.partialorder %v1773_v58, 8.507059e+37  ;;  %v2047_v51 = vld [vmem:[%s3172_s9] ss:$0 sm:$0xff]  ;;  %s2462_s9 = smov [#allocation13]  }
0x1681   :  { %v1624_v28 = vmul.f32 %v2221_v24, %v1622_v17  ;;  %vm1629_vm6 = vweird.f32 %v2221_v24  ;;  %v2271_v58 = vld [vmem:[#allocation2] sm:$0xff]  ;;  %s1963_s0 = sshll.u32 %s2462_s9, 4  ;;  %s1964_s0 = int_to_ptr.vmem [resolvable:$true] %s1963_s0 }
0x1682   :  { %vm1630_vm9 = vmor %vm1628_vm7, %vm1629_vm6 }
0x1683   :  { %v1625_v1 = vsub.f32 1.0, %v1624_v28 }
0x1684   :  { %v2223_v29 = vpop.eup %2222 }
0x1685   :  { %v1626_v7 = vmul.f32 %v2221_v24, %v1625_v1  ;;  %v1765_v42 = vmul.f32 %v2223_v29, %v1763_v26  ;;  %vm1770_vm11 = vweird.f32 %v2223_v29  ;;  %v2225_v63 = vpop.eup %2224  ;;  %v1893_v1 = vld [vmem:[#allocation11 + $0x18] sm:$0xff] }
0x1686   :  { %vm1771_vm1 = vmor %vm1769_vm12, %vm1770_vm11  ;;  %v2227_v60 = vpop.eup %2226  ;;  %1920 = vmatpush.msrb.mxu0 %v1893_v1 }
0x1687   :  { %v1627_v50 = vadd.f32 %v2221_v24, %v1626_v7  ;;  %v1766_v40 = vsub.f32 1.0, %v1765_v42 }
0x1689   :  { %v1631_v55 = vsel %vm1630_vm9, %v2221_v24, %v1627_v50  ;;  %v1767_v0 = vmul.f32 %v2223_v29, %v1766_v40 }
0x168a   :  { %v1636_v2 = vsel %vm1633_vm10, %v1635_v59, %v1631_v55 }
0x168b   :  { %v1639_v41 = vsel %vm2577_vm5, %v2225_v63, %v1636_v2  ;;  %v1768_v9 = vadd.f32 %v2223_v29, %v1767_v0 }
0x168c   :  { %1642 = vrot.lane.b32.xlu0 %v1639_v41, %s2460_s23  ;;  %v1640_v11 = vmul.f32 %v1639_v41, %v3089_v15 }
0x168d   :  { %v1772_v57 = vsel %vm1771_vm1, %v2223_v29, %v1768_v9  ;;  %v1892_v29 = vld [vmem:[#allocation11 + $0x10] sm:$0xff] }
0x168e   :  { %v1777_v18 = vsel %vm1774_vm2, %v1776_v43, %v1772_v57  ;;  %1921 = vmatpush.msrb.mxu0 %v1892_v29 }
0x168f   :  { %v1780_v48 = vsel %vm2577_vm5, %v2227_v60, %v1777_v18 }
0x1690   :  { %1783 = vrot.lane.b32.xlu1 %v1780_v48, %s2460_s23  ;;  %v1781_v21 = vmul.f32 %v1780_v48, %v3094_v44  ;;  %1922 = vmatpush.msrb.mxu0 %v1891_v33 }
0x1692   :  { %1923 = vmatpush.msrb.mxu0 %v1890_v35 }
0x16fe   :  { %v1643_v53 = vpop.permute.xlu0 %1642 }
0x16ff   :  { %v1645_v10 = vmul.f32 %v1643_v53, %v1639_v41 }
0x1701   :  { %1647 = vrot.lane.b32.xlu2 %v1645_v10, %s2461_s24 }
0x1702   :  { %v1784_v46 = vpop.permute.xlu1 %1783 }
0x1703   :  { %v1786_v32 = vmul.f32 %v1784_v46, %v1780_v48 }
0x1705   :  { %1788 = vrot.lane.b32.xlu0 %v1786_v32, %s2461_s24 }
0x175b   :  { %v1648_v13 = vpop.permute.xlu2 %1647 }
0x175c   :  { %v3121_v16 = vadd.f32 %v1648_v13, %v1640_v11 }
0x175e   :  { %2228 = vtanh.f32 %v3121_v16 }
0x1764   :  { %v2229_v25 = vpop.eup %2228 }
0x1765   :  { %1653 = vrot.lane.b32.xlu1 %v2229_v25, %s2460_s23 }
0x1777   :  { %v1789_v45 = vpop.permute.xlu0 %1788 }
0x1778   :  { %v1791_v56 = vadd.f32 %v1789_v45, %v1781_v21  ;;  %v2272_v45 = vld [vmem:[#allocation2 + $0x8] sm:$0xff] }
0x177a   :  { %2230 = vtanh.f32 %v1791_v56 }
0x1780   :  { %v2231_v61 = vpop.eup %2230 }
0x1781   :  { %1794 = vrot.lane.b32.xlu2 %v2231_v61, %s2460_s23 }
0x17d7   :  { %v1654_v30 = vpop.permute.xlu1 %1653 }
0x17d8   :  { %v1656_v15 = vmul.f32 %v1654_v30, %v1639_v41 }
0x17da   :  { %v1876_v20 = vrot.slane %v1656_v15, 4  ;;  %1803 = vrot.lane.b32.xlu1 %v1656_v15, %s2460_s23 }
0x17db   :  { %v1795_v34 = vpop.permute.xlu2 %1794 }
0x17dc   :  { %v1797_v52 = vmul.f32 %v1795_v34, %v1780_v48  ;;  %v1888_v44 = vsel %vm1883_vm14, %v1887_v49, %v1876_v20 }
0x17de   :  { %1799 = vrot.lane.b32.xlu0 %v1797_v52, %s2461_s24 }
0x184c   :  { %v1804_v39 = vpop.permute.xlu1 %1803 }
0x1850   :  { %v1800_v3 = vpop.permute.xlu0 %1799 }
0x1851   :  { %v1806_v47 = vsel %vm196_vm8, %v1800_v3, %v1804_v39 }
0x1852   :  { %2028 = vmatmul.msk.f32.vlgmr.msrb.gmra.mxu3 %vm144_vm0, %v1806_v47 }
0x18d5   :  { %v1827_v27 = vpop.f32.mrf.mxu3 }
0x18d6   :  { %v1828_v4 = vadd.f32 %v3023_v5, %v1827_v27 }
0x18d8   :  { %v2029_v36 = vmul.f32 -1.442695, %v1828_v4 }
0x18da   :  { %2232 = vpow2.f32 %v2029_v36 }
0x18e0   :  { %v2233_v6 = vpop.eup %2232 }
0x18e1   :  { %v1833_v22 = vadd.f32 1.0, %v2233_v6 }
0x18e3   :  { %2234 = vrcp.f32 %v1833_v22  ;;  %v1845_v38 = vand.u32 2147483648, %v1833_v22  ;;  %v1843_v23 = vand.u32 2147483647, %v1833_v22  ;;  %vm1839_vm14 = vweird.f32 %v1833_v22 }
0x18e4   :  { %2236 = vtanh.f32 %v1828_v4 }
0x18e5   :  { %v1846_v54 = vor.u32 1.1754944e-38, %v1845_v38  ;;  %vm1844_vm0 = vcmp.eq.f32.partialorder %v1843_v23, 8.507059e+37 }
0x18e9   :  { %v2235_v12 = vpop.eup %2234 }
0x18ea   :  { %v1835_v14 = vmul.f32 %v2235_v12, %v1833_v22  ;;  %vm1840_vm13 = vweird.f32 %v2235_v12  ;;  %v2237_v5 = vpop.eup %2236 }
0x18eb   :  { %vm1841_vm3 = vmor %vm1839_vm14, %vm1840_vm13 }
0x18ec   :  { %v1836_v37 = vsub.f32 1.0, %v1835_v14 }
0x18ee   :  { %v1837_v8 = vmul.f32 %v2235_v12, %v1836_v37 }
0x18f0   :  { %v1838_v17 = vadd.f32 %v2235_v12, %v1837_v8 }
0x18f2   :  { %v1842_v26 = vsel %vm1841_vm3, %v2235_v12, %v1838_v17 }
0x18f3   :  { %v1847_v24 = vsel %vm1844_vm0, %v1846_v54, %v1842_v26 }
0x18f4   :  { %v1850_v28 = vsel %vm2577_vm5, %v2237_v5, %v1847_v24 }
0x18f5   :  { %1853 = vrot.lane.b32.xlu2 %v1850_v28, %s2460_s23  ;;  %v1851_v31 = vmul.f32 %v1850_v28, %v3121_v16 }
0x18fd   :  { %1900 = vrot.lane.b32.xlu2 %v3000_v19, %s2461_s24 }
0x194f   :  { %v1854_v7 = vpop.permute.xlu2 %1853 }
0x1950   :  { %v1856_v42 = vmul.f32 %v1854_v7, %v1850_v28 }
0x1952   :  { %1858 = vrot.lane.b32.xlu0 %v1856_v42, %s2461_s24 }
0x1957   :  { %v1901_v50 = vpop.permute.xlu2 %1900 }
0x1958   :  { %2030 = vmatmul.msk.f32.vlgmr.msrb.gmra.mxu0 %vm196_vm8, %v1901_v50 }
0x19c4   :  { %v1859_v40 = vpop.permute.xlu0 %1858 }
0x19c5   :  { %v1861_v59 = vadd.f32 %v1859_v40, %v1851_v31 }
0x19c7   :  { %2238 = vtanh.f32 %v1861_v59 }
0x19cd   :  { %v2239_v19 = vpop.eup %2238 }
0x19ce   :  { %1864 = vrot.lane.b32.xlu1 %v2239_v19, %s2460_s23 }
0x19d5   :  { %v1925_v55 = vpop.f32.mrf.mxu0 }
0x19d6   :  { %v1926_v0 = vadd.f32 %v2047_v51, %v1925_v55 }
0x19d8   :  { %v1931_v63 = vmul.f32 %v2271_v58, %v1926_v0 }
0x19da   :  { %v1933_v2 = vsel %vm196_vm8, %v1931_v63, -inf }
0x19f8   :  { %1934 = vmax.xlane.f32.xlu1 %v1933_v2 }
0x1a40   :  { %v1865_v41 = vpop.permute.xlu1 %1864 }
0x1a41   :  { %v1867_v9 = vmul.f32 %v1865_v41, %v1850_v28 }
0x1a43   :  { %v1879_v43 = vrot.slane %v1867_v9, 2 }
0x1a45   :  { %v1889_v57 = vsel %vm1885_vm15, %v1888_v44, %v1879_v43 }
0x1a46   :  { %1902 = vrot.lane.b32.xlu0 %v1889_v57, %s2461_s24 }
0x1a6b   :  { %v1935_v60 = vpop.xlane.xlu1 %1934 }
0x1a6c   :  { %v1939_v18 = vsub.f32 %v1931_v63, %v1935_v60 }
0x1a6e   :  { %v1941_v48 = vmul.f32 1.442695, %v1939_v18 }
0x1a70   :  { %2240 = vpow2.f32 %v1941_v48 }
0x1a76   :  { %v2241_v53 = vpop.eup %2240 }
0x1a77   :  { %v1945_v10 = vsel %vm196_vm8, %v2241_v53, 0.0 }
0x1a78   :  { %1946 = vadd.xlane.f32.xlu0 %v1945_v10 }
0x1ab8   :  { %v1903_v46 = vpop.permute.xlu0 %1902 }
0x1ab9   :  { %2031 = vmatmul.msk.f32.gmra.mxu0 %vm196_vm8, %v1903_v46 }
0x1aeb   :  { %v1947_v32 = vpop.xlane.xlu0 %1946 }
0x1aec   :  { %2242 = vlog2.f32 %v1947_v32 }
0x1af2   :  { %v2243_v11 = vpop.eup %2242 }
0x1af3   :  { %v1952_v13 = vmul.f32 0.6931472, %v2243_v11 }
0x1af5   :  { %v1955_v16 = vsub.f32 %v1939_v18, %v1952_v13 }
0x1af7   :  { %1957 = vst.msk [vmem:[#allocation13] sm:$0xff] %vm196_vm8, %v1955_v16 }
0x1b36   :  { %v1928_v25 = vpop.f32.mrf.mxu0 }
0x1b37   :  { %v1929_v21 = vadd.f32 %v2047_v51, %v1928_v25 }
0x1b39   :  { %v1932_v56 = vmul.f32 %v2272_v45, %v1929_v21 }
0x1b3b   :  { %v1936_v61 = vsel %vm196_vm8, %v1932_v56, -inf }
0x1b3c   :  { %1937 = vmax.xlane.f32.xlu2 %v1936_v61 }
0x1baf   :  { %v1938_v62 = vpop.xlane.xlu2 %1937 }
0x1bb0   :  { %v1940_v30 = vsub.f32 %v1932_v56, %v1938_v62 }
0x1bb2   :  { %v1943_v15 = vmul.f32 1.442695, %v1940_v30 }
0x1bb4   :  { %2244 = vpow2.f32 %v1943_v15 }
0x1bba   :  { %v2245_v20 = vpop.eup %2244 }
0x1bbb   :  { %v1948_v34 = vsel %vm196_vm8, %v2245_v20, 0.0 }
0x1bbc   :  { %1949 = vadd.xlane.f32.xlu2 %v1948_v34 }
0x1c2f   :  { %v1950_v49 = vpop.xlane.xlu2 %1949 }
0x1c30   :  { %2246 = vlog2.f32 %v1950_v49 }
0x1c36   :  { %v2247_v52 = vpop.eup %2246 }
0x1c37   :  { %v1954_v44 = vmul.f32 0.6931472, %v2247_v52 }
0x1c39   :  { %v1956_v39 = vsub.f32 %v1940_v30, %v1954_v44 }
0x1c3b   :  { %1958 = vst.msk [vmem:[#allocation13 + $0x8] sm:$0xff] %vm196_vm8, %v1956_v39 }
0x1c3c   :  { %1971 = dma.vmem_to_hbm [thread:$0]  %s1964_s0, 256, %s1966_s14, [#allocation4], %s2452_s21, %s2452_s21, %s2453_s22  }
0x1c3d   :  { %2449 = dma.done.wait [#allocation4], 256  }
0x1c3e   :  { %2450 = vsyncadd [#allocation4], 4294967040 }
0x1c3f   :  { %1976 = vsyncpa [#allocation3], 1 }
0x1c40   :  { %1977 = vsyncpa [#allocation6], 1 }
0x1c41   :  { %1978 = vsyncpa [#allocation9], 1 }
0x1c42   :  { %1979 = vsyncpa [#allocation12], 1 }
0x1c43   :  { %1980 = vsyncpa [#allocation4], 1 }

</bundles_post_ra>
